<compile_context>
chip_gen: v5e
topology: v5e:2x2
jax: 0.10.0
libtpu: 0.0.40
codegen_flags: <defaults>
</compile_context>

<pallas_src>
import jax
import jax.numpy as jnp
import numpy as np
from jax.experimental import pallas as pl
from jax.experimental.pallas import tpu as pltpu


# ----------------------------- kernel ---------------------------------------

def _make_mean_vfe_kernel(n_points: int, n_channels: int):
    """Kernel over one voxel tile: f32 point-sum (lane-sliced tree) then mean."""

    def kernel(feat_ref, npts_ref, out_ref):
        # Upcast once: exact f32 accumulation even for bf16/fp16 inputs (no-op for f32).
        x = feat_ref[...].astype(jnp.float32)            # [tile_v, P*C], point-major
        groups = n_points
        width = n_points * n_channels
        # Tree-reduce point groups along the lane axis while the count is even.
        while groups > 1 and groups % 2 == 0:
            half = width // 2
            x = x[:, :half] + x[:, half:width]           # point p += point p + groups/2
            width, groups = half, groups // 2
        # Linear tail for an odd number of remaining point groups.
        acc = x[:, :n_channels]
        for g in range(1, groups):
            acc = acc + x[:, g * n_channels:(g + 1) * n_channels]
        # Clamp divisor (empty voxels / ragged-last-block garbage rows), exact EUP
        # reciprocal, broadcast multiply on the VPU.
        inv = pl.reciprocal(jnp.maximum(npts_ref[...], 1.0))   # [tile_v, 1], f32
        out_ref[...] = (acc * inv).astype(out_ref.dtype)

    return kernel


# ----------------------------- wrapper ---------------------------------------

def mean_vfe_pallas(features, num_points, coors=None, *,
                    num_input_features=4, tile_v=8192,
                    vmem_limit_bytes=48 << 20):
    """features: [N, P, C]; num_points: [N]  ->  [N, C] per-voxel mean."""
    del coors  # unused, as in the PyTorch module
    n, p, c = features.shape
    assert c == num_input_features, "num_input_features must match features.shape[-1]"

    feat2d = features.reshape(n, p * c)                 # free row-major collapse
    npts = num_points.astype(jnp.float32).reshape(n, 1)

    # --- VMEM-aware tile sizing (counts the 128-lane padding of the narrow blocks) ---
    itemsize = jnp.dtype(features.dtype).itemsize
    per_row = 2 * 128 * itemsize          # features block: 32 -> 128 lane pad, x2 bufs
    per_row += 2 * 128 * 4                # counts block (f32): 1 -> 128 lane pad, x2
    per_row += 2 * 128 * itemsize         # output block: 4 -> 128 lane pad, x2
    per_row += per_row // 2               # headroom for in-kernel temporaries
    budget = (int(vmem_limit_bytes) * 3) // 4
    tile_cap = max(8, (budget // per_row) // 8 * 8)
    tile_v = min(int(tile_v), int(tile_cap))
    if tile_v >= n:
        tile_v = n                        # one block covering the full extent (legal)
    else:
        tile_v = max(8, (tile_v // 8) * 8)

    grid = (pl.cdiv(n, tile_v),)          # ragged last block handled by Pallas masking

    out = pl.pallas_call(
        _make_mean_vfe_kernel(p, c),
        out_shape=jax.ShapeDtypeStruct((n, c), features.dtype),
        grid=grid,
        in_specs=[
            pl.BlockSpec((tile_v, p * c), lambda i: (i, 0)),  # voxel tile of features
            pl.BlockSpec((tile_v, 1), lambda i: (i, 0)),      # points per voxel (f32)
        ],
        out_specs=pl.BlockSpec((tile_v, c), lambda i: (i, 0)),
        compiler_params=pltpu.CompilerParams(
            dimension_semantics=("parallel",),
            vmem_limit_bytes=int(vmem_limit_bytes)),
    )(feat2d, npts)
    return out


# ----------------------------- demo ------------------------------------------

if __name__ == "__main__":
    key = jax.random.PRNGKey(0)
    N, P, C = 500, 8, 4                   # voxels, max points per voxel, channels
                                          # (N deliberately not a tile multiple)

    kf, kn = jax.random.split(key)
    num_points = jax.random.randint(kn, (N,), 1, P + 1)
    feats = jax.random.uniform(kf, (N, P, C), jnp.float32, 0.1, 1.0)
    # zero-pad points beyond num_points[i], like a real voxelizer output
    valid = (jnp.arange(P)[None, :] < num_points[:, None]).astype(jnp.float32)
    feats = feats * valid[:, :, None]

    # pure-JAX reference of the module math: sum over points / num_points
    ref = jnp.sum(feats, axis=1) / num_points.astype(jnp.float32)[:, None]

    # 1) default large-tile path (single block here since N is small)
    out = mean_vfe_pallas(feats, num_points, num_input_features=C)
    out = jax.block_until_ready(out)
    np.testing.assert_allclose(np.asarray(out), np.asarray(ref),
                               rtol=1e-5, atol=1e-6)

    # 2) multi-step path with a ragged last block (no padding, no output slice)
    out2 = mean_vfe_pallas(feats, num_points, num_input_features=C, tile_v=128)
    out2 = jax.block_until_ready(out2)
    np.testing.assert_allclose(np.asarray(out2), np.asarray(ref),
                               rtol=1e-5, atol=1e-6)

    assert out.shape == (N, C) and out.dtype == jnp.float32
    print("KERNEL_OK")
</pallas_src>

<mosaic_0001>
module attributes {stable_mosaic.version = 11 : i64} {
  func.func @kernel(%arg0: i32, %arg1: memref<500x32xf32, #tpu.memory_space<vmem>>, %arg2: memref<500x1xf32, #tpu.memory_space<vmem>>, %arg3: memref<500x4xf32, #tpu.memory_space<vmem>>) attributes {dimension_semantics = [#tpu.dimension_semantics<parallel>], iteration_bounds = array<i64: 1>, scalar_prefetch = 0 : i64, scratch_operands = 0 : i64, tpu.core_type = #tpu.core_type<tc>, window_params = [{transform_indices = @transform_0, window_bounds = array<i64: 500, 32>}, {transform_indices = @transform_1, window_bounds = array<i64: 500, 1>}, {transform_indices = @transform_2, window_bounds = array<i64: 500, 4>}]} {
    %c0 = arith.constant 0 : index
    %c0_0 = arith.constant 0 : index
    %0 = vector.load %arg1[%c0, %c0_0] : memref<500x32xf32, #tpu.memory_space<vmem>>, vector<500x32xf32>
    %1 = vector.extract_strided_slice %0 {offsets = [0, 0], sizes = [500, 16], strides = [1, 1]} : vector<500x32xf32> to vector<500x16xf32>
    %2 = vector.extract_strided_slice %0 {offsets = [0, 16], sizes = [500, 16], strides = [1, 1]} : vector<500x32xf32> to vector<500x16xf32>
    %3 = arith.addf %1, %2 : vector<500x16xf32>
    %4 = vector.extract_strided_slice %3 {offsets = [0, 0], sizes = [500, 8], strides = [1, 1]} : vector<500x16xf32> to vector<500x8xf32>
    %5 = vector.extract_strided_slice %3 {offsets = [0, 8], sizes = [500, 8], strides = [1, 1]} : vector<500x16xf32> to vector<500x8xf32>
    %6 = arith.addf %4, %5 : vector<500x8xf32>
    %7 = vector.extract_strided_slice %6 {offsets = [0, 0], sizes = [500, 4], strides = [1, 1]} : vector<500x8xf32> to vector<500x4xf32>
    %8 = vector.extract_strided_slice %6 {offsets = [0, 4], sizes = [500, 4], strides = [1, 1]} : vector<500x8xf32> to vector<500x4xf32>
    %9 = arith.addf %7, %8 : vector<500x4xf32>
    %c0_1 = arith.constant 0 : index
    %c0_2 = arith.constant 0 : index
    %10 = vector.load %arg2[%c0_1, %c0_2] : memref<500x1xf32, #tpu.memory_space<vmem>>, vector<500x1xf32>
    %cst = arith.constant 1.000000e+00 : f32
    %11 = vector.broadcast %cst : f32 to vector<500x1xf32>
    %12 = arith.maximumf %10, %11 : vector<500x1xf32>
    %13 = tpu.reciprocal %12 : vector<500x1xf32> -> vector<500x1xf32>
    %14 = vector.broadcast %13 : vector<500x1xf32> to vector<500x4xf32>
    %15 = arith.mulf %9, %14 : vector<500x4xf32>
    %c0_3 = arith.constant 0 : index
    %c0_4 = arith.constant 0 : index
    %16 = vector.load %arg3[%c0_3, %c0_4] : memref<500x4xf32, #tpu.memory_space<vmem>>, vector<500x4xf32>
    tpu.vector_store %arg3[%c0_3, %c0_4], %15 {strides = array<i32>} : memref<500x4xf32, #tpu.memory_space<vmem>>, vector<500x4xf32>,
    return
  }
  func.func @transform_0(%arg0: i32) -> (i32, i32) {
    %c0_i32 = arith.constant 0 : i32
    %c0_i32_0 = arith.constant 0 : i32
    return %arg0, %c0_i32 : i32, i32
  }
  func.func @transform_1(%arg0: i32) -> (i32, i32) {
    %c0_i32 = arith.constant 0 : i32
    %c0_i32_0 = arith.constant 0 : i32
    return %arg0, %c0_i32 : i32, i32
  }
  func.func @transform_2(%arg0: i32) -> (i32, i32) {
    %c0_i32 = arith.constant 0 : i32
    %c0_i32_0 = arith.constant 0 : i32
    return %arg0, %c0_i32 : i32, i32
  }
}

</mosaic_0001>

<bundles_post_ra>
// kernel: tpu_custom_call.1
= control target key start
LH: loop header
LB: loop body
LE: loop exit
PB: predicated region body
PF: predicated region fallthrough
CT: control target
= control target key end

     0   :  { %s2607_s15 = smov 112   ;;  %s6186_s0 = inlined_call_operand.vmem [shape: f32[500,32], index: 0, kind: input, shape index: {}]   ;;  %s6187_s1 = inlined_call_operand.vmem [shape: f32[500,1], index: 1, kind: input, shape index: {}]   ;;  %s6188_s2 = inlined_call_operand.vmem [shape: f32[500,4], index: 2, kind: output, shape index: {}]  }
   0x1   :  { %v2629_v0 = vld [vmem:[%s6186_s0 + $0x20] sm:$0xff]  ;;  %v2634_v1 = vld [vmem:[%s6186_s0 + $0x10] sm:$0xff]  ;;  %v2650_v3 = vld [vmem:[%s6186_s0 + $0x28] sm:$0xff] }
   0x2   :  { %v2639_v2 = vld [vmem:[%s6186_s0] sm:$0xff]  ;;  %145 = vrot.lane.b32.xlu2 %v2629_v0, %s2607_s15  ;;  %141 = vrot.lane.b32.xlu1 %v2634_v1, %s2607_s15  ;;  %v2655_v4 = vld [vmem:[%s6186_s0 + $0x18] sm:$0xff] }
   0x3   :  { %137 = vrot.lane.b32.xlu0 %v2639_v2, %s2607_s15  ;;  %v2660_v5 = vld [vmem:[%s6186_s0 + $0x8] sm:$0xff]  ;;  %v2671_v6 = vld [vmem:[%s6186_s0 + $0x40] sm:$0xff]  ;;  %v2676_v7 = vld [vmem:[%s6186_s0 + $0x38] sm:$0xff] }
   0x4   :  { %v2681_v8 = vld [vmem:[%s6186_s0 + $0x30] sm:$0xff]  ;;  %v2692_v9 = vld [vmem:[%s6186_s0 + $0x58] sm:$0xff]  ;;  %v2702_v11 = vld [vmem:[%s6186_s0 + $0x48] sm:$0xff] }
   0x5   :  { %v2697_v10 = vld [vmem:[%s6186_s0 + $0x50] sm:$0xff]  ;;  %v2718_v13 = vld [vmem:[%s6186_s0 + $0x68] sm:$0xff]  ;;  %v2723_v14 = vld [vmem:[%s6186_s0 + $0x60] sm:$0xff] }
   0x6   :  { %v2713_v12 = vld [vmem:[%s6186_s0 + $0x70] sm:$0xff]  ;;  %v2734_v15 = vld [vmem:[%s6186_s0 + $0x88] sm:$0xff]  ;;  %v2739_v16 = vld [vmem:[%s6186_s0 + $0x80] sm:$0xff] }
   0x7   :  { %v2744_v17 = vld [vmem:[%s6186_s0 + $0x78] sm:$0xff]  ;;  %v2755_v18 = vld [vmem:[%s6186_s0 + $0xa0] sm:$0xff]  ;;  %v2765_v20 = vld [vmem:[%s6186_s0 + $0x90] sm:$0xff] }
   0x8   :  { %v2760_v19 = vld [vmem:[%s6186_s0 + $0x98] sm:$0xff]  ;;  %v2781_v22 = vld [vmem:[%s6186_s0 + $0xb0] sm:$0xff]  ;;  %v2786_v23 = vld [vmem:[%s6186_s0 + $0xa8] sm:$0xff] }
   0x9   :  { %v2776_v21 = vld [vmem:[%s6186_s0 + $0xb8] sm:$0xff]  ;;  %v2797_v24 = vld [vmem:[%s6186_s0 + $0xd0] sm:$0xff]  ;;  %v2802_v25 = vld [vmem:[%s6186_s0 + $0xc8] sm:$0xff] }
   0xa   :  { %147 = vrot.lane.b32.xlu2 %v2650_v3, %s2607_s15  ;;  %143 = vrot.lane.b32.xlu1 %v2655_v4, %s2607_s15  ;;  %v2807_v26 = vld [vmem:[%s6186_s0 + $0xc0] sm:$0xff]  ;;  %v2818_v27 = vld [vmem:[%s6186_s0 + $0xe8] sm:$0xff] }
   0xb   :  { %139 = vrot.lane.b32.xlu0 %v2660_v5, %s2607_s15  ;;  %v2823_v28 = vld [vmem:[%s6186_s0 + $0xe0] sm:$0xff]  ;;  %v2828_v29 = vld [vmem:[%s6186_s0 + $0xd8] sm:$0xff]  ;;  %v2849_v32 = vld [vmem:[%s6186_s0 + $0xf0] sm:$0xff] }
   0xc   :  { %v2839_v30 = vld [vmem:[%s6186_s0 + $0x100] sm:$0xff]  ;;  %v2844_v31 = vld [vmem:[%s6186_s0 + $0xf8] sm:$0xff]  ;;  %v2865_v34 = vld [vmem:[%s6186_s0 + $0x110] sm:$0xff] }
   0xd   :  { %v2860_v33 = vld [vmem:[%s6186_s0 + $0x118] sm:$0xff]  ;;  %6293 = vst [vmem:[#allocation2_spill] sm:$0xff] %v2865_v34  ;;  %v2870_v35 = vld [vmem:[%s6186_s0 + $0x108] sm:$0xff]  ;;  %v2883_v37 = vld [vmem:[%s6186_s0 + $0x130] sm:$0xff] }
   0xe   :  { %6294 = vst [vmem:[#allocation3_spill] sm:$0xff] %v2870_v35  ;;  %v2888_v38 = vld [vmem:[%s6186_s0 + $0x128] sm:$0xff]  ;;  %v2893_v39 = vld [vmem:[%s6186_s0 + $0x120] sm:$0xff]  ;;  %v2916_v43 = vld [vmem:[%s6186_s0 + $0x138] sm:$0xff] }
   0xf   :  { %6295 = vst [vmem:[#allocation4_spill] sm:$0xff] %v2883_v37  ;;  %v2906_v41 = vld [vmem:[%s6186_s0 + $0x148] sm:$0xff]  ;;  %v2911_v42 = vld [vmem:[%s6186_s0 + $0x140] sm:$0xff]  ;;  %v2934_v46 = vld [vmem:[%s6186_s0 + $0x158] sm:$0xff] }
  0x10   :  { %6296 = vst [vmem:[#allocation5_spill] sm:$0xff] %v2888_v38  ;;  %v2929_v45 = vld [vmem:[%s6186_s0 + $0x160] sm:$0xff]  ;;  %v2939_v47 = vld [vmem:[%s6186_s0 + $0x150] sm:$0xff]  ;;  %v2952_v51 = vld [vmem:[%s6186_s0 + $0x178] sm:$0xff] }
  0x11   :  { %6297 = vst [vmem:[#allocation6_spill] sm:$0xff] %v2893_v39  ;;  %v2957_v52 = vld [vmem:[%s6186_s0 + $0x170] sm:$0xff]  ;;  %v2962_v53 = vld [vmem:[%s6186_s0 + $0x168] sm:$0xff]  ;;  %v2985_v59 = vld [vmem:[%s6186_s0 + $0x180] sm:$0xff] }
  0x12   :  { %153 = vrot.lane.b32.xlu2 %v2671_v6, %s2607_s15  ;;  %151 = vrot.lane.b32.xlu1 %v2676_v7, %s2607_s15  ;;  %6298 = vst [vmem:[#allocation7_spill] sm:$0xff] %v2906_v41  ;;  %v2975_v57 = vld [vmem:[%s6186_s0 + $0x190] sm:$0xff]  ;;  %v2980_v58 = vld [vmem:[%s6186_s0 + $0x188] sm:$0xff] }
  0x13   :  { %149 = vrot.lane.b32.xlu0 %v2681_v8, %s2607_s15  ;;  %6299 = vst [vmem:[#allocation8_spill] sm:$0xff] %v2911_v42  ;;  %v2998_v63 = vld [vmem:[%s6186_s0 + $0x1a8] sm:$0xff] }
  0x14   :  { %6300 = vst [vmem:[#allocation9_spill] sm:$0xff] %v2916_v43 }
  0x15   :  { %6301 = vst [vmem:[#allocation10_spill] sm:$0xff] %v2929_v45 }
  0x16   :  { %6302 = vst [vmem:[#allocation11_spill] sm:$0xff] %v2934_v46 }
  0x17   :  { %6303 = vst [vmem:[#allocation12_spill] sm:$0xff] %v2939_v47 }
  0x18   :  { %6304 = vst [vmem:[#allocation13_spill] sm:$0xff] %v2952_v51 }
  0x19   :  { %6305 = vst [vmem:[#allocation14_spill] sm:$0xff] %v2957_v52 }
  0x1a   :  { %159 = vrot.lane.b32.xlu2 %v2692_v9, %s2607_s15  ;;  %157 = vrot.lane.b32.xlu1 %v2697_v10, %s2607_s15  ;;  %6306 = vst [vmem:[#allocation15_spill] sm:$0xff] %v2962_v53 }
  0x1b   :  { %155 = vrot.lane.b32.xlu0 %v2702_v11, %s2607_s15  ;;  %6307 = vst [vmem:[#allocation16_spill] sm:$0xff] %v2975_v57 }
  0x1c   :  { %6308 = vst [vmem:[#allocation17_spill] sm:$0xff] %v2980_v58 }
  0x1d   :  { %6309 = vst [vmem:[#allocation18_spill] sm:$0xff] %v2985_v59 }
  0x1e   :  { %6310 = vst [vmem:[#allocation19_spill] sm:$0xff] %v2998_v63 }
  0x22   :  { %165 = vrot.lane.b32.xlu2 %v2713_v12, %s2607_s15  ;;  %163 = vrot.lane.b32.xlu1 %v2718_v13, %s2607_s15 }
  0x23   :  { %161 = vrot.lane.b32.xlu0 %v2723_v14, %s2607_s15 }
  0x2a   :  { %171 = vrot.lane.b32.xlu2 %v2734_v15, %s2607_s15  ;;  %169 = vrot.lane.b32.xlu1 %v2739_v16, %s2607_s15 }
  0x2b   :  { %167 = vrot.lane.b32.xlu0 %v2744_v17, %s2607_s15 }
  0x32   :  { %177 = vrot.lane.b32.xlu2 %v2755_v18, %s2607_s15  ;;  %175 = vrot.lane.b32.xlu1 %v2760_v19, %s2607_s15 }
  0x33   :  { %173 = vrot.lane.b32.xlu0 %v2765_v20, %s2607_s15 }
  0x3a   :  { %183 = vrot.lane.b32.xlu2 %v2776_v21, %s2607_s15  ;;  %181 = vrot.lane.b32.xlu1 %v2781_v22, %s2607_s15 }
  0x3b   :  { %179 = vrot.lane.b32.xlu0 %v2786_v23, %s2607_s15 }
  0x42   :  { %189 = vrot.lane.b32.xlu2 %v2797_v24, %s2607_s15  ;;  %187 = vrot.lane.b32.xlu1 %v2802_v25, %s2607_s15 }
  0x43   :  { %185 = vrot.lane.b32.xlu0 %v2807_v26, %s2607_s15 }
  0x4a   :  { %195 = vrot.lane.b32.xlu2 %v2818_v27, %s2607_s15  ;;  %193 = vrot.lane.b32.xlu1 %v2823_v28, %s2607_s15 }
  0x4b   :  { %191 = vrot.lane.b32.xlu0 %v2828_v29, %s2607_s15 }
  0x52   :  { %201 = vrot.lane.b32.xlu2 %v2839_v30, %s2607_s15  ;;  %199 = vrot.lane.b32.xlu1 %v2844_v31, %s2607_s15 }
  0x53   :  { %197 = vrot.lane.b32.xlu0 %v2849_v32, %s2607_s15 }
  0x5a   :  { %207 = vrot.lane.b32.xlu2 %v2860_v33, %s2607_s15  ;;  %205 = vrot.lane.b32.xlu1 %v2865_v34, %s2607_s15 }
  0x5b   :  { %203 = vrot.lane.b32.xlu0 %v2870_v35, %s2607_s15 }
  0x5c   :  { %v2878_v36 = vpop.permute.xlu2 %145 }
  0x62   :  { %213 = vrot.lane.b32.xlu2 %v2883_v37, %s2607_s15  ;;  %211 = vrot.lane.b32.xlu1 %v2888_v38, %s2607_s15 }
  0x63   :  { %209 = vrot.lane.b32.xlu0 %v2893_v39, %s2607_s15  ;;  %v3072_v39 = vld [vmem:[%s6186_s0 + $0x1e8] sm:$0xff] }
  0x64   :  { %v2901_v40 = vpop.permute.xlu2 %147 }
  0x6a   :  { %219 = vrot.lane.b32.xlu2 %v2906_v41, %s2607_s15  ;;  %217 = vrot.lane.b32.xlu1 %v2911_v42, %s2607_s15  ;;  %v3067_v41 = vld [vmem:[%s6186_s0 + $0x1f0] sm:$0xf] }
  0x6b   :  { %215 = vrot.lane.b32.xlu0 %v2916_v43, %s2607_s15  ;;  %v3049_v43 = vld [vmem:[%s6186_s0 + $0x1d0] sm:$0xff] }
  0x6c   :  { %v2924_v44 = vpop.permute.xlu2 %153  ;;  %6317 = vst [vmem:[#allocation26_spill] sm:$0xff] %v3049_v43 }
  0x72   :  { %225 = vrot.lane.b32.xlu2 %v2929_v45, %s2607_s15  ;;  %223 = vrot.lane.b32.xlu1 %v2934_v46, %s2607_s15  ;;  %v3044_v45 = vld [vmem:[%s6186_s0 + $0x1d8] sm:$0xff] }
  0x73   :  { %221 = vrot.lane.b32.xlu0 %v2939_v47, %s2607_s15  ;;  %v3026_v47 = vld [vmem:[%s6186_s0 + $0x1b8] sm:$0xff]  ;;  %6316 = vst [vmem:[#allocation25_spill] sm:$0xff] %v3044_v45 }
  0x74   :  { %v2947_v48 = vpop.permute.xlu2 %159  ;;  %v142_v49 = vpop.permute.xlu1 %141  ;;  %6314 = vst [vmem:[#allocation23_spill] sm:$0xff] %v3026_v47 }
  0x75   :  { %v138_v50 = vpop.permute.xlu0 %137  ;;  %v3088_v37 = vadd.f32 %v142_v49, %v2634_v1 }
  0x76   :  { %v3094_v34 = vadd.f32 %v138_v50, %v2639_v2  ;;  %v3110_v2 = vadd.f32 %v2901_v40, %v2650_v3  ;;  %v3125_v3 = vadd.f32 %v2924_v44, %v2671_v6 }
  0x7a   :  { %231 = vrot.lane.b32.xlu2 %v2952_v51, %s2607_s15  ;;  %229 = vrot.lane.b32.xlu1 %v2957_v52, %s2607_s15  ;;  %v3021_v51 = vld [vmem:[%s6186_s0 + $0x1c0] sm:$0xff] }
  0x7b   :  { %227 = vrot.lane.b32.xlu0 %v2962_v53, %s2607_s15  ;;  %v3003_v53 = vld [vmem:[%s6186_s0 + $0x1a0] sm:$0xff]  ;;  %6313 = vst [vmem:[#allocation22_spill] sm:$0xff] %v3021_v51 }
  0x7c   :  { %v2970_v54 = vpop.permute.xlu2 %165  ;;  %v144_v55 = vpop.permute.xlu1 %143  ;;  %6311 = vst [vmem:[#allocation20_spill] sm:$0xff] %v3003_v53 }
  0x7d   :  { %v140_v56 = vpop.permute.xlu0 %139  ;;  %v3113_v50 = vadd.f32 %v144_v55, %v2655_v4 }
  0x7e   :  { %v3091_v35 = vadd.f32 %v140_v56, %v2660_v5  ;;  %v3106_v5 = vadd.f32 %v2878_v36, %v2629_v0 }
  0x7f   :  { %6320 = vst [vmem:[#allocation29_spill] sm:$0xff] %v3113_v50 }
  0x82   :  { %237 = vrot.lane.b32.xlu2 %v2975_v57, %s2607_s15  ;;  %235 = vrot.lane.b32.xlu1 %v2980_v58, %s2607_s15  ;;  %v3008_v58 = vld [vmem:[%s6186_s0 + $0x198] sm:$0xff] }
  0x83   :  { %233 = vrot.lane.b32.xlu0 %v2985_v59, %s2607_s15  ;;  %6312 = vst [vmem:[#allocation21_spill] sm:$0xff] %v3008_v58 }
  0x84   :  { %v2993_v60 = vpop.permute.xlu2 %171  ;;  %v152_v61 = vpop.permute.xlu1 %151 }
  0x85   :  { %v150_v62 = vpop.permute.xlu0 %149  ;;  %v3128_v4 = vadd.f32 %v152_v61, %v2676_v7  ;;  %v3143_v7 = vadd.f32 %v2947_v48, %v2692_v9 }
  0x86   :  { %v3131_v40 = vadd.f32 %v150_v62, %v2681_v8 }
  0x8a   :  { %243 = vrot.lane.b32.xlu2 %v2998_v63, %s2607_s15  ;;  %241 = vrot.lane.b32.xlu1 %v3003_v53, %s2607_s15  ;;  %v3031_v53 = vld [vmem:[%s6186_s0 + $0x1b0] sm:$0xff] }
  0x8b   :  { %239 = vrot.lane.b32.xlu0 %v3008_v58, %s2607_s15  ;;  %6315 = vst [vmem:[#allocation24_spill] sm:$0xff] %v3031_v53 }
  0x8c   :  { %v3016_v59 = vpop.permute.xlu2 %177  ;;  %v158_v57 = vpop.permute.xlu1 %157 }
  0x8d   :  { %v156_v52 = vpop.permute.xlu0 %155  ;;  %v3146_v8 = vadd.f32 %v158_v57, %v2697_v10  ;;  %v3161_v10 = vadd.f32 %v2970_v54, %v2713_v12 }
  0x8e   :  { %v3149_v44 = vadd.f32 %v156_v52, %v2702_v11 }
  0x92   :  { %249 = vrot.lane.b32.xlu2 %v3021_v51, %s2607_s15  ;;  %247 = vrot.lane.b32.xlu1 %v3026_v47, %s2607_s15  ;;  %v3054_v47 = vld [vmem:[%s6186_s0 + $0x1c8] sm:$0xff] }
  0x93   :  { %245 = vrot.lane.b32.xlu0 %v3031_v53, %s2607_s15  ;;  %6318 = vst [vmem:[#allocation27_spill] sm:$0xff] %v3054_v47 }
  0x94   :  { %v3039_v58 = vpop.permute.xlu2 %183  ;;  %v164_v63 = vpop.permute.xlu1 %163 }
  0x95   :  { %v162_v46 = vpop.permute.xlu0 %161  ;;  %v3164_v11 = vadd.f32 %v164_v63, %v2718_v13  ;;  %v3179_v13 = vadd.f32 %v2993_v60, %v2734_v15 }
  0x96   :  { %v3167_v48 = vadd.f32 %v162_v46, %v2723_v14 }
  0x9a   :  { %255 = vrot.lane.b32.xlu2 %v3044_v45, %s2607_s15  ;;  %253 = vrot.lane.b32.xlu1 %v3049_v43, %s2607_s15  ;;  %v3077_v43 = vld [vmem:[%s6186_s0 + $0x1e0] sm:$0xff]  ;;  %s2608_s0 = smov 120  }
  0x9b   :  { %251 = vrot.lane.b32.xlu0 %v3054_v47, %s2607_s15  ;;  %6319 = vst [vmem:[#allocation28_spill] sm:$0xff] %v3077_v43 }
  0x9c   :  { %v3062_v53 = vpop.permute.xlu2 %189  ;;  %v170_v51 = vpop.permute.xlu1 %169 }
  0x9d   :  { %v168_v42 = vpop.permute.xlu0 %167  ;;  %v3182_v14 = vadd.f32 %v170_v51, %v2739_v16  ;;  %v3197_v16 = vadd.f32 %v3016_v59, %v2755_v18 }
  0x9e   :  { %v3185_v46 = vadd.f32 %v168_v42, %v2744_v17 }
  0xa2   :  { %261 = vrot.lane.b32.xlu2 %v3067_v41, %s2607_s15  ;;  %259 = vrot.lane.b32.xlu1 %v3072_v39, %s2607_s15 }
  0xa3   :  { %257 = vrot.lane.b32.xlu0 %v3077_v43, %s2607_s15  ;;  %s2609_s15 = smov 124  }
  0xa4   :  { %v3085_v47 = vpop.permute.xlu2 %195  ;;  %v176_v45 = vpop.permute.xlu1 %175 }
  0xa5   :  { %v174_v38 = vpop.permute.xlu0 %173  ;;  %v3200_v17 = vadd.f32 %v176_v45, %v2760_v19  ;;  %v3215_v19 = vadd.f32 %v3039_v58, %v2776_v21 }
  0xa6   :  { %v3203_v42 = vadd.f32 %v174_v38, %v2765_v20 }
  0xaa   :  { %456 = vrot.lane.b32.xlu2 %v3088_v37, %s2608_s0  ;;  %454 = vrot.lane.b32.xlu1 %v3091_v35, %s2608_s0 }
  0xab   :  { %452 = vrot.lane.b32.xlu0 %v3094_v34, %s2608_s0 }
  0xac   :  { %v3102_v43 = vpop.permute.xlu2 %201  ;;  %v182_v1 = vpop.permute.xlu1 %181 }
  0xad   :  { %v180_v49 = vpop.permute.xlu0 %179  ;;  %v3218_v20 = vadd.f32 %v182_v1, %v2781_v22  ;;  %v3233_v22 = vadd.f32 %v3062_v53, %v2797_v24 }
  0xae   :  { %v3221_v38 = vadd.f32 %v180_v49, %v2786_v23 }
  0xb2   :  { %462 = vrot.lane.b32.xlu2 %v3110_v2, %s2608_s0  ;;  %460 = vrot.lane.b32.xlu1 %v3106_v5, %s2608_s0 }
  0xb3   :  { %458 = vrot.lane.b32.xlu0 %v3113_v50, %s2608_s0 }
  0xb4   :  { %v3121_v56 = vpop.permute.xlu2 %207  ;;  %v188_v0 = vpop.permute.xlu1 %187 }
  0xb5   :  { %v186_v36 = vpop.permute.xlu0 %185  ;;  %v3236_v23 = vadd.f32 %v188_v0, %v2802_v25  ;;  %v3251_v25 = vadd.f32 %v3085_v47, %v2818_v27 }
  0xb6   :  { %v3239_v58 = vadd.f32 %v186_v36, %v2807_v26 }
  0xba   :  { %468 = vrot.lane.b32.xlu2 %v3125_v3, %s2608_s0  ;;  %466 = vrot.lane.b32.xlu1 %v3128_v4, %s2608_s0 }
  0xbb   :  { %464 = vrot.lane.b32.xlu0 %v3131_v40, %s2608_s0 }
  0xbc   :  { %v3139_v55 = vpop.permute.xlu2 %213  ;;  %v194_v50 = vpop.permute.xlu1 %193 }
  0xbd   :  { %v192_v6 = vpop.permute.xlu0 %191  ;;  %v3254_v26 = vadd.f32 %v194_v50, %v2823_v28  ;;  %v3269_v28 = vadd.f32 %v3102_v43, %v2839_v30  ;;  %v6325_v43 = vld [vmem:[#allocation2_spill] sm:$0xff] }
  0xbe   :  { %v3257_v53 = vadd.f32 %v192_v6, %v2828_v29 }
  0xbf   :  { %6321 = vst [vmem:[#allocation30_spill] sm:$0xff] %v3269_v28 }
  0xc2   :  { %474 = vrot.lane.b32.xlu2 %v3143_v7, %s2608_s0  ;;  %472 = vrot.lane.b32.xlu1 %v3146_v8, %s2608_s0 }
  0xc3   :  { %470 = vrot.lane.b32.xlu0 %v3149_v44, %s2608_s0 }
  0xc4   :  { %v3157_v61 = vpop.permute.xlu2 %219  ;;  %v200_v62 = vpop.permute.xlu1 %199 }
  0xc5   :  { %v198_v9 = vpop.permute.xlu0 %197  ;;  %v3272_v29 = vadd.f32 %v200_v62, %v2844_v31  ;;  %v3287_v31 = vadd.f32 %v3121_v56, %v2860_v33  ;;  %v6327_v62 = vld [vmem:[#allocation3_spill] sm:$0xff]  ;;  %v6329_v56 = vld [vmem:[#allocation4_spill] sm:$0xff] }
  0xc6   :  { %v3275_v47 = vadd.f32 %v198_v9, %v2849_v32 }
  0xc7   :  { %6322 = vst [vmem:[#allocation31_spill] sm:$0xff] %v3272_v29 }
  0xc8   :  { %6323 = vst [vmem:[#allocation32_spill] sm:$0xff] %v3275_v47 }
  0xc9   :  { %6324 = vst [vmem:[#allocation33_spill] sm:$0xff] %v3287_v31 }
  0xca   :  { %480 = vrot.lane.b32.xlu2 %v3161_v10, %s2608_s0  ;;  %478 = vrot.lane.b32.xlu1 %v3164_v11, %s2608_s0 }
  0xcb   :  { %476 = vrot.lane.b32.xlu0 %v3167_v48, %s2608_s0 }
  0xcc   :  { %v3175_v52 = vpop.permute.xlu2 %225  ;;  %v206_v57 = vpop.permute.xlu1 %205 }
  0xcd   :  { %v204_v12 = vpop.permute.xlu0 %203  ;;  %v3290_v32 = vadd.f32 %v206_v57, %v6325_v43  ;;  %v3305_v57 = vadd.f32 %v3139_v55, %v6329_v56  ;;  %v6331_v43 = vld [vmem:[#allocation5_spill] sm:$0xff]  ;;  %v6335_v56 = vld [vmem:[#allocation7_spill] sm:$0xff] }
  0xce   :  { %v3293_v9 = vadd.f32 %v204_v12, %v6327_v62  ;;  %v6333_v62 = vld [vmem:[#allocation6_spill] sm:$0xff] }
  0xcf   :  { %6326 = vst [vmem:[#allocation2_spill] sm:$0xff] %v3290_v32 }
  0xd0   :  { %6328 = vst [vmem:[#allocation3_spill] sm:$0xff] %v3293_v9 }
  0xd1   :  { %6330 = vst [vmem:[#allocation4_spill] sm:$0xff] %v3305_v57 }
  0xd2   :  { %486 = vrot.lane.b32.xlu2 %v3179_v13, %s2608_s0  ;;  %484 = vrot.lane.b32.xlu1 %v3182_v14, %s2608_s0 }
  0xd3   :  { %482 = vrot.lane.b32.xlu0 %v3185_v46, %s2608_s0 }
  0xd4   :  { %v3193_v54 = vpop.permute.xlu2 %231  ;;  %v212_v63 = vpop.permute.xlu1 %211 }
  0xd5   :  { %v210_v15 = vpop.permute.xlu0 %209  ;;  %v3308_v12 = vadd.f32 %v212_v63, %v6331_v43  ;;  %v3323_v63 = vadd.f32 %v3157_v61, %v6335_v56  ;;  %v6337_v43 = vld [vmem:[#allocation8_spill] sm:$0xff]  ;;  %v6341_v56 = vld [vmem:[#allocation10_spill] sm:$0xff] }
  0xd7   :  { %6332 = vst [vmem:[#allocation5_spill] sm:$0xff] %v3308_v12 }
  0xd8   :  { %6336 = vst [vmem:[#allocation7_spill] sm:$0xff] %v3323_v63 }
  0xda   :  { %492 = vrot.lane.b32.xlu2 %v3197_v16, %s2608_s0  ;;  %490 = vrot.lane.b32.xlu1 %v3200_v17, %s2608_s0 }
  0xdb   :  { %488 = vrot.lane.b32.xlu0 %v3203_v42, %s2608_s0 }
  0xdc   :  { %v3211_v51 = vpop.permute.xlu2 %237  ;;  %v218_v60 = vpop.permute.xlu1 %217 }
  0xdd   :  { %v216_v18 = vpop.permute.xlu0 %215 }
  0xe2   :  { %498 = vrot.lane.b32.xlu2 %v3215_v19, %s2608_s0  ;;  %496 = vrot.lane.b32.xlu1 %v3218_v20, %s2608_s0 }
  0xe3   :  { %494 = vrot.lane.b32.xlu0 %v3221_v38, %s2608_s0 }
  0xe4   :  { %v3229_v45 = vpop.permute.xlu2 %243  ;;  %v224_v59 = vpop.permute.xlu1 %223 }
  0xe5   :  { %v222_v21 = vpop.permute.xlu0 %221 }
  0xea   :  { %504 = vrot.lane.b32.xlu2 %v3233_v22, %s2608_s0  ;;  %502 = vrot.lane.b32.xlu1 %v3236_v23, %s2608_s0 }
  0xeb   :  { %500 = vrot.lane.b32.xlu0 %v3239_v58, %s2608_s0 }
  0xec   :  { %v3247_v1 = vpop.permute.xlu2 %249  ;;  %v230_v49 = vpop.permute.xlu1 %229 }
  0xed   :  { %v228_v24 = vpop.permute.xlu0 %227 }
  0xf2   :  { %510 = vrot.lane.b32.xlu2 %v3251_v25, %s2608_s0  ;;  %508 = vrot.lane.b32.xlu1 %v3254_v26, %s2608_s0 }
  0xf3   :  { %506 = vrot.lane.b32.xlu0 %v3257_v53, %s2608_s0 }
  0xf4   :  { %v3265_v0 = vpop.permute.xlu2 %255  ;;  %v236_v36 = vpop.permute.xlu1 %235 }
  0xf5   :  { %v234_v27 = vpop.permute.xlu0 %233 }
  0xfa   :  { %516 = vrot.lane.b32.xlu2 %v3269_v28, %s2608_s0  ;;  %514 = vrot.lane.b32.xlu1 %v3272_v29, %s2608_s0  ;;  %v3311_v28 = vadd.f32 %v210_v15, %v6333_v62  ;;  %v3326_v15 = vadd.f32 %v218_v60, %v6337_v43  ;;  %v6339_v62 = vld [vmem:[#allocation9_spill] sm:$0xff]  ;;  %v3341_v60 = vadd.f32 %v3175_v52, %v6341_v56  ;;  %v6343_v43 = vld [vmem:[#allocation11_spill] sm:$0xff] }
  0xfb   :  { %512 = vrot.lane.b32.xlu0 %v3275_v47, %s2608_s0  ;;  %v6347_v56 = vld [vmem:[#allocation13_spill] sm:$0xff] }
  0xfc   :  { %v3283_v50 = vpop.permute.xlu2 %261  ;;  %v242_v6 = vpop.permute.xlu1 %241  ;;  %6334 = vst [vmem:[#allocation6_spill] sm:$0xff] %v3311_v28 }
  0xfd   :  { %v240_v30 = vpop.permute.xlu0 %239  ;;  %6338 = vst [vmem:[#allocation8_spill] sm:$0xff] %v3326_v15 }
  0xfe   :  { %6342 = vst [vmem:[#allocation10_spill] sm:$0xff] %v3341_v60 }
 0x102   :  { %522 = vrot.lane.b32.xlu2 %v3287_v31, %s2608_s0  ;;  %520 = vrot.lane.b32.xlu1 %v3290_v32, %s2608_s0  ;;  %v3329_v31 = vadd.f32 %v216_v18, %v6339_v62  ;;  %v3344_v18 = vadd.f32 %v224_v59, %v6343_v43  ;;  %v6345_v62 = vld [vmem:[#allocation12_spill] sm:$0xff]  ;;  %v3359_v59 = vadd.f32 %v3193_v54, %v6347_v56  ;;  %v6349_v43 = vld [vmem:[#allocation14_spill] sm:$0xff] }
 0x103   :  { %518 = vrot.lane.b32.xlu0 %v3293_v9, %s2608_s0  ;;  %v6353_v56 = vld [vmem:[#allocation16_spill] sm:$0xff] }
 0x104   :  { %v3301_v47 = vpop.permute.xlu2 %456  ;;  %v248_v29 = vpop.permute.xlu1 %247  ;;  %6340 = vst [vmem:[#allocation9_spill] sm:$0xff] %v3329_v31 }
 0x105   :  { %v246_v33 = vpop.permute.xlu0 %245  ;;  %6344 = vst [vmem:[#allocation11_spill] sm:$0xff] %v3344_v18 }
 0x106   :  { %6348 = vst [vmem:[#allocation13_spill] sm:$0xff] %v3359_v59 }
 0x10a   :  { %528 = vrot.lane.b32.xlu2 %v3305_v57, %s2608_s0  ;;  %526 = vrot.lane.b32.xlu1 %v3308_v12, %s2608_s0  ;;  %v3347_v57 = vadd.f32 %v222_v21, %v6345_v62  ;;  %v3362_v21 = vadd.f32 %v230_v49, %v6349_v43  ;;  %v6351_v62 = vld [vmem:[#allocation15_spill] sm:$0xff]  ;;  %v3377_v49 = vadd.f32 %v3211_v51, %v6353_v56  ;;  %v6355_v43 = vld [vmem:[#allocation17_spill] sm:$0xff] }
 0x10b   :  { %524 = vrot.lane.b32.xlu0 %v3311_v28, %s2608_s0  ;;  %v6359_v56 = vld [vmem:[#allocation19_spill] sm:$0xff] }
 0x10c   :  { %v3319_v9 = vpop.permute.xlu2 %462  ;;  %v254_v32 = vpop.permute.xlu1 %253  ;;  %6346 = vst [vmem:[#allocation12_spill] sm:$0xff] %v3347_v57 }
 0x10d   :  { %v252_v55 = vpop.permute.xlu0 %251  ;;  %6350 = vst [vmem:[#allocation14_spill] sm:$0xff] %v3362_v21 }
 0x10e   :  { %6354 = vst [vmem:[#allocation16_spill] sm:$0xff] %v3377_v49 }
 0x112   :  { %534 = vrot.lane.b32.xlu2 %v3323_v63, %s2608_s0  ;;  %532 = vrot.lane.b32.xlu1 %v3326_v15, %s2608_s0  ;;  %v3365_v63 = vadd.f32 %v228_v24, %v6351_v62  ;;  %v3380_v24 = vadd.f32 %v236_v36, %v6355_v43  ;;  %v6357_v62 = vld [vmem:[#allocation18_spill] sm:$0xff]  ;;  %v3395_v36 = vadd.f32 %v3229_v45, %v6359_v56  ;;  %v6361_v43 = vld [vmem:[#allocation20_spill] sm:$0xff] }
 0x113   :  { %530 = vrot.lane.b32.xlu0 %v3329_v31, %s2608_s0  ;;  %v6365_v56 = vld [vmem:[#allocation22_spill] sm:$0xff] }
 0x114   :  { %v3337_v28 = vpop.permute.xlu2 %468  ;;  %v260_v12 = vpop.permute.xlu1 %259  ;;  %6352 = vst [vmem:[#allocation15_spill] sm:$0xff] %v3365_v63 }
 0x115   :  { %v258_v61 = vpop.permute.xlu0 %257  ;;  %6356 = vst [vmem:[#allocation17_spill] sm:$0xff] %v3380_v24 }
 0x116   :  { %6360 = vst [vmem:[#allocation19_spill] sm:$0xff] %v3395_v36 }
 0x11a   :  { %540 = vrot.lane.b32.xlu2 %v3341_v60, %s2608_s0  ;;  %538 = vrot.lane.b32.xlu1 %v3344_v18, %s2608_s0  ;;  %v3383_v60 = vadd.f32 %v234_v27, %v6357_v62  ;;  %v3398_v27 = vadd.f32 %v242_v6, %v6361_v43  ;;  %v6363_v62 = vld [vmem:[#allocation21_spill] sm:$0xff]  ;;  %v3413_v6 = vadd.f32 %v3247_v1, %v6365_v56  ;;  %v6366_v43 = vld [vmem:[#allocation23_spill] sm:$0xff] }
 0x11b   :  { %536 = vrot.lane.b32.xlu0 %v3347_v57, %s2608_s0  ;;  %v6370_v56 = vld [vmem:[#allocation25_spill] sm:$0xff] }
 0x11c   :  { %v3355_v31 = vpop.permute.xlu2 %474  ;;  %v455_v15 = vpop.permute.xlu1 %454  ;;  %6358 = vst [vmem:[#allocation18_spill] sm:$0xff] %v3383_v60 }
 0x11d   :  { %v453_v52 = vpop.permute.xlu0 %452  ;;  %6362 = vst [vmem:[#allocation20_spill] sm:$0xff] %v3398_v27 }
 0x122   :  { %546 = vrot.lane.b32.xlu2 %v3359_v59, %s2608_s0  ;;  %544 = vrot.lane.b32.xlu1 %v3362_v21, %s2608_s0  ;;  %v3401_v59 = vadd.f32 %v240_v30, %v6363_v62  ;;  %v3416_v30 = vadd.f32 %v248_v29, %v6366_v43  ;;  %v6368_v62 = vld [vmem:[#allocation24_spill] sm:$0xff]  ;;  %v3431_v29 = vadd.f32 %v3265_v0, %v6370_v56  ;;  %v6371_v43 = vld [vmem:[#allocation26_spill] sm:$0xff] }
 0x123   :  { %542 = vrot.lane.b32.xlu0 %v3365_v63, %s2608_s0  ;;  %v6374_v56 = vld [vmem:[#allocation28_spill] sm:$0xff] }
 0x124   :  { %v3373_v57 = vpop.permute.xlu2 %480  ;;  %v461_v18 = vpop.permute.xlu1 %460  ;;  %6364 = vst [vmem:[#allocation21_spill] sm:$0xff] %v3401_v59 }
 0x125   :  { %v459_v54 = vpop.permute.xlu0 %458  ;;  %6367 = vst [vmem:[#allocation22_spill] sm:$0xff] %v3416_v30 }
 0x12a   :  { %552 = vrot.lane.b32.xlu2 %v3377_v49, %s2608_s0  ;;  %550 = vrot.lane.b32.xlu1 %v3380_v24, %s2608_s0  ;;  %v3419_v49 = vadd.f32 %v246_v33, %v6368_v62  ;;  %v3434_v33 = vadd.f32 %v254_v32, %v6371_v43  ;;  %v6372_v62 = vld [vmem:[#allocation27_spill] sm:$0xff]  ;;  %v3449_v32 = vadd.f32 %v3283_v50, %v3067_v41 }
 0x12b   :  { %548 = vrot.lane.b32.xlu0 %v3383_v60, %s2608_s0  ;;  %v3455_v43 = vadd.f32 %v258_v61, %v6374_v56  ;;  %v3470_v50 = vadd.f32 %v455_v15, %v3091_v35  ;;  %v3485_v35 = vadd.f32 %v3319_v9, %v3110_v2  ;;  %v6376_v15 = vld [vmem:[#allocation29_spill] sm:$0xff] }
 0x12c   :  { %v3391_v63 = vpop.permute.xlu2 %486  ;;  %v467_v21 = vpop.permute.xlu1 %466  ;;  %6369 = vst [vmem:[#allocation23_spill] sm:$0xff] %v3419_v49 }
 0x12d   :  { %v465_v51 = vpop.permute.xlu0 %464  ;;  %v3506_v9 = vadd.f32 %v467_v21, %v3128_v4  ;;  %v3521_v4 = vadd.f32 %v3355_v31, %v3143_v7 }
 0x132   :  { %558 = vrot.lane.b32.xlu2 %v3395_v36, %s2608_s0  ;;  %556 = vrot.lane.b32.xlu1 %v3398_v27, %s2608_s0  ;;  %v3437_v36 = vadd.f32 %v252_v55, %v6372_v62  ;;  %v3452_v55 = vadd.f32 %v260_v12, %v3072_v39  ;;  %v3467_v39 = vadd.f32 %v3301_v47, %v3088_v37 }
 0x133   :  { %554 = vrot.lane.b32.xlu0 %v3401_v59, %s2608_s0  ;;  %v3473_v12 = vadd.f32 %v453_v52, %v3094_v34  ;;  %v3488_v34 = vadd.f32 %v461_v18, %v3106_v5  ;;  %v3491_v52 = vadd.f32 %v459_v54, %v6376_v15  ;;  %v3503_v5 = vadd.f32 %v3337_v28, %v3125_v3 }
 0x134   :  { %v3409_v60 = vpop.permute.xlu2 %492  ;;  %v473_v24 = vpop.permute.xlu1 %472  ;;  %6373 = vst [vmem:[#allocation24_spill] sm:$0xff] %v3437_v36  ;;  %v3509_v18 = vadd.f32 %v465_v51, %v3131_v40 }
 0x135   :  { %v471_v45 = vpop.permute.xlu0 %470  ;;  %6375 = vst [vmem:[#allocation25_spill] sm:$0xff] %v3473_v12  ;;  %v3524_v40 = vadd.f32 %v473_v24, %v3146_v8  ;;  %v3539_v8 = vadd.f32 %v3373_v57, %v3161_v10 }
 0x136   :  { %v3527_v28 = vadd.f32 %v471_v45, %v3149_v44 }
 0x13a   :  { %564 = vrot.lane.b32.xlu2 %v3413_v6, %s2608_s0  ;;  %562 = vrot.lane.b32.xlu1 %v3416_v30, %s2608_s0 }
 0x13b   :  { %560 = vrot.lane.b32.xlu0 %v3419_v49, %s2608_s0 }
 0x13c   :  { %v3427_v59 = vpop.permute.xlu2 %498  ;;  %v479_v27 = vpop.permute.xlu1 %478 }
 0x13d   :  { %v477_v1 = vpop.permute.xlu0 %476  ;;  %v3542_v44 = vadd.f32 %v479_v27, %v3164_v11  ;;  %v3557_v11 = vadd.f32 %v3391_v63, %v3179_v13 }
 0x13e   :  { %v3545_v31 = vadd.f32 %v477_v1, %v3167_v48 }
 0x13f   :  { %6377 = vst [vmem:[#allocation26_spill] sm:$0xff] %v3542_v44 }
 0x140   :  { %6378 = vst [vmem:[#allocation27_spill] sm:$0xff] %v3545_v31 }
 0x142   :  { %570 = vrot.lane.b32.xlu2 %v3431_v29, %s2608_s0  ;;  %568 = vrot.lane.b32.xlu1 %v3434_v33, %s2608_s0 }
 0x143   :  { %566 = vrot.lane.b32.xlu0 %v3437_v36, %s2608_s0 }
 0x144   :  { %v3445_v49 = vpop.permute.xlu2 %504  ;;  %v485_v30 = vpop.permute.xlu1 %484 }
 0x145   :  { %v483_v0 = vpop.permute.xlu0 %482  ;;  %v3560_v48 = vadd.f32 %v485_v30, %v3182_v14  ;;  %v3575_v14 = vadd.f32 %v3409_v60, %v3197_v16 }
 0x146   :  { %v3563_v57 = vadd.f32 %v483_v0, %v3185_v46 }
 0x147   :  { %6379 = vst [vmem:[#allocation28_spill] sm:$0xff] %v3560_v48 }
 0x148   :  { %6380 = vst [vmem:[#allocation29_spill] sm:$0xff] %v3563_v57 }
 0x14a   :  { %576 = vrot.lane.b32.xlu2 %v3449_v32, %s2608_s0  ;;  %574 = vrot.lane.b32.xlu1 %v3452_v55, %s2608_s0 }
 0x14b   :  { %572 = vrot.lane.b32.xlu0 %v3455_v43, %s2608_s0 }
 0x14c   :  { %v3463_v62 = vpop.permute.xlu2 %510  ;;  %v491_v36 = vpop.permute.xlu1 %490 }
 0x14d   :  { %v489_v41 = vpop.permute.xlu0 %488  ;;  %v3578_v46 = vadd.f32 %v491_v36, %v3200_v17  ;;  %v3593_v17 = vadd.f32 %v3427_v59, %v3215_v19 }
 0x14e   :  { %v3581_v63 = vadd.f32 %v489_v41, %v3203_v42 }
 0x14f   :  { %6381 = vst [vmem:[#allocation34_spill] sm:$0xff] %v3578_v46 }
 0x150   :  { %6382 = vst [vmem:[#allocation35_spill] sm:$0xff] %v3581_v63 }
 0x151   :  { %6383 = vst [vmem:[#allocation36_spill] sm:$0xff] %v3593_v17 }
 0x152   :  { %771 = vrot.lane.b32.xlu2 %v3467_v39, %s2609_s15  ;;  %769 = vrot.lane.b32.xlu1 %v3470_v50, %s2609_s15 }
 0x153   :  { %767 = vrot.lane.b32.xlu0 %v3473_v12, %s2609_s15 }
 0x154   :  { %v3481_v61 = vpop.permute.xlu2 %516  ;;  %v497_v37 = vpop.permute.xlu1 %496 }
 0x155   :  { %v495_v47 = vpop.permute.xlu0 %494  ;;  %v3596_v42 = vadd.f32 %v497_v37, %v3218_v20  ;;  %v3611_v20 = vadd.f32 %v3445_v49, %v3233_v22 }
 0x156   :  { %v3599_v60 = vadd.f32 %v495_v47, %v3221_v38 }
 0x157   :  { %6384 = vst [vmem:[#allocation37_spill] sm:$0xff] %v3596_v42 }
 0x158   :  { %6385 = vst [vmem:[#allocation38_spill] sm:$0xff] %v3599_v60 }
 0x159   :  { %6386 = vst [vmem:[#allocation39_spill] sm:$0xff] %v3611_v20 }
 0x15a   :  { %777 = vrot.lane.b32.xlu2 %v3485_v35, %s2609_s15  ;;  %775 = vrot.lane.b32.xlu1 %v3488_v34, %s2609_s15 }
 0x15b   :  { %773 = vrot.lane.b32.xlu0 %v3491_v52, %s2609_s15 }
 0x15c   :  { %v3499_v56 = vpop.permute.xlu2 %522  ;;  %v503_v12 = vpop.permute.xlu1 %502 }
 0x15d   :  { %v501_v2 = vpop.permute.xlu0 %500  ;;  %v3614_v38 = vadd.f32 %v503_v12, %v3236_v23  ;;  %v3629_v23 = vadd.f32 %v3463_v62, %v3251_v25 }
 0x15e   :  { %v3617_v59 = vadd.f32 %v501_v2, %v3239_v58 }
 0x15f   :  { %6387 = vst [vmem:[#allocation40_spill] sm:$0xff] %v3614_v38 }
 0x160   :  { %6388 = vst [vmem:[#allocation41_spill] sm:$0xff] %v3617_v59 }
 0x161   :  { %6389 = vst [vmem:[#allocation42_spill] sm:$0xff] %v3629_v23 }
 0x162   :  { %783 = vrot.lane.b32.xlu2 %v3503_v5, %s2609_s15  ;;  %781 = vrot.lane.b32.xlu1 %v3506_v9, %s2609_s15 }
 0x163   :  { %779 = vrot.lane.b32.xlu0 %v3509_v18, %s2609_s15 }
 0x164   :  { %v3517_v54 = vpop.permute.xlu2 %528  ;;  %v509_v15 = vpop.permute.xlu1 %508 }
 0x165   :  { %v507_v3 = vpop.permute.xlu0 %506  ;;  %v3632_v58 = vadd.f32 %v509_v15, %v3254_v26  ;;  %v6392_v26 = vld [vmem:[#allocation30_spill] sm:$0xff] }
 0x166   :  { %v3635_v49 = vadd.f32 %v507_v3, %v3257_v53  ;;  %v3651_v62 = vadd.f32 %v3481_v61, %v6392_v26  ;;  %v6394_v53 = vld [vmem:[#allocation31_spill] sm:$0xff]  ;;  %v6396_v3 = vld [vmem:[#allocation32_spill] sm:$0xff] }
 0x167   :  { %6390 = vst [vmem:[#allocation43_spill] sm:$0xff] %v3632_v58 }
 0x168   :  { %6391 = vst [vmem:[#allocation44_spill] sm:$0xff] %v3635_v49 }
 0x169   :  { %6393 = vst [vmem:[#allocation30_spill] sm:$0xff] %v3651_v62 }
 0x16a   :  { %789 = vrot.lane.b32.xlu2 %v3521_v4, %s2609_s15  ;;  %787 = vrot.lane.b32.xlu1 %v3524_v40, %s2609_s15 }
 0x16b   :  { %785 = vrot.lane.b32.xlu0 %v3527_v28, %s2609_s15 }
 0x16c   :  { %v3535_v21 = vpop.permute.xlu2 %534  ;;  %v515_v51 = vpop.permute.xlu1 %514 }
 0x16d   :  { %v513_v7 = vpop.permute.xlu0 %512  ;;  %v3654_v15 = vadd.f32 %v515_v51, %v6394_v53  ;;  %v6398_v51 = vld [vmem:[#allocation33_spill] sm:$0xff] }
 0x16e   :  { %v3673_v26 = vadd.f32 %v3499_v56, %v6398_v51 }
 0x16f   :  { %6395 = vst [vmem:[#allocation31_spill] sm:$0xff] %v3654_v15 }
 0x170   :  { %6399 = vst [vmem:[#allocation33_spill] sm:$0xff] %v3673_v26 }
 0x172   :  { %795 = vrot.lane.b32.xlu2 %v3539_v8, %s2609_s15  ;;  %793 = vrot.lane.b32.xlu1 %v3542_v44, %s2609_s15 }
 0x173   :  { %791 = vrot.lane.b32.xlu0 %v3545_v31, %s2609_s15  ;;  %v6438_v31 = vld [vmem:[#allocation21_spill] sm:$0xff] }
 0x174   :  { %v3553_v24 = vpop.permute.xlu2 %540  ;;  %v521_v45 = vpop.permute.xlu1 %520 }
 0x175   :  { %v519_v10 = vpop.permute.xlu0 %518 }
 0x17a   :  { %801 = vrot.lane.b32.xlu2 %v3557_v11, %s2609_s15  ;;  %799 = vrot.lane.b32.xlu1 %v3560_v48, %s2609_s15  ;;  %v6436_v48 = vld [vmem:[#allocation20_spill] sm:$0xff] }
 0x17b   :  { %797 = vrot.lane.b32.xlu0 %v3563_v57, %s2609_s15 }
 0x17c   :  { %v3571_v27 = vpop.permute.xlu2 %546  ;;  %v527_v1 = vpop.permute.xlu1 %526 }
 0x17d   :  { %v525_v13 = vpop.permute.xlu0 %524 }
 0x182   :  { %807 = vrot.lane.b32.xlu2 %v3575_v14, %s2609_s15  ;;  %805 = vrot.lane.b32.xlu1 %v3578_v46, %s2609_s15 }
 0x183   :  { %803 = vrot.lane.b32.xlu0 %v3581_v63, %s2609_s15  ;;  %v2610_v63 = vmov 0  }
 0x184   :  { %v3589_v30 = vpop.permute.xlu2 %552  ;;  %v533_v0 = vpop.permute.xlu1 %532  ;;  %2480 = vset.pattern.permute.xlu2 %v2610_v63  ;;  %2479 = vset.pattern.permute.xlu1 %v2610_v63 }
 0x185   :  { %v531_v16 = vpop.permute.xlu0 %530  ;;  %2478 = vset.pattern.permute.xlu0 %v2610_v63 }
 0x18a   :  { %813 = vrot.lane.b32.xlu2 %v3593_v17, %s2609_s15  ;;  %811 = vrot.lane.b32.xlu1 %v3596_v42, %s2609_s15 }
 0x18b   :  { %809 = vrot.lane.b32.xlu0 %v3599_v60, %s2609_s15  ;;  %v6432_v60 = vld [vmem:[#allocation18_spill] sm:$0xff] }
 0x18c   :  { %v3607_v36 = vpop.permute.xlu2 %558  ;;  %v539_v41 = vpop.permute.xlu1 %538 }
 0x18d   :  { %v537_v19 = vpop.permute.xlu0 %536 }
 0x192   :  { %819 = vrot.lane.b32.xlu2 %v3611_v20, %s2609_s15  ;;  %817 = vrot.lane.b32.xlu1 %v3614_v38, %s2609_s15 }
 0x193   :  { %815 = vrot.lane.b32.xlu0 %v3617_v59, %s2609_s15  ;;  %v3657_v59 = vadd.f32 %v513_v7, %v6396_v3  ;;  %v6400_v7 = vld [vmem:[#allocation2_spill] sm:$0xff]  ;;  %v6402_v3 = vld [vmem:[#allocation3_spill] sm:$0xff] }
 0x194   :  { %v3625_v37 = vpop.permute.xlu2 %564  ;;  %v545_v47 = vpop.permute.xlu1 %544  ;;  %v3676_v53 = vadd.f32 %v521_v45, %v6400_v7  ;;  %v6404_v45 = vld [vmem:[#allocation4_spill] sm:$0xff] }
 0x195   :  { %v543_v22 = vpop.permute.xlu0 %542  ;;  %6397 = vst [vmem:[#allocation32_spill] sm:$0xff] %v3657_v59  ;;  %v3695_v51 = vadd.f32 %v3517_v54, %v6404_v45 }
 0x196   :  { %6401 = vst [vmem:[#allocation2_spill] sm:$0xff] %v3676_v53 }
 0x197   :  { %6405 = vst [vmem:[#allocation4_spill] sm:$0xff] %v3695_v51 }
 0x19a   :  { %825 = vrot.lane.b32.xlu2 %v3629_v23, %s2609_s15  ;;  %823 = vrot.lane.b32.xlu1 %v3632_v58, %s2609_s15  ;;  %v6434_v23 = vld [vmem:[#allocation19_spill] sm:$0xff] }
 0x19b   :  { %821 = vrot.lane.b32.xlu0 %v3635_v49, %s2609_s15  ;;  %v3849_v57 = vadd.f32 %v3607_v36, %v6434_v23 }
 0x19c   :  { %v3643_v12 = vpop.permute.xlu2 %570  ;;  %v3645_v2 = vpop.permute.xlu1 %550 }
 0x19d   :  { %v3647_v25 = vpop.permute.xlu0 %548  ;;  %6435 = vst [vmem:[#allocation19_spill] sm:$0xff] %v3849_v57  ;;  %v3879_v63 = vadd.f32 %v3643_v12, %v3431_v29  ;;  %v6449_v12 = vld [vmem:[#allocation24_spill] sm:$0xff] }
 0x19e   :  { %v3811_v42 = vadd.f32 %v3647_v25, %v6432_v60  ;;  %v1022_v60 = vld [vmem:[%s6187_s1 + $0x18] sm:$0xff]  ;;  %v1024_v25 = vld [vmem:[%s6187_s1 + $0x28] sm:$0xff] }
 0x19f   :  { %v3845_v46 = vmax.f32 %v1024_v25, 1.0  ;;  %6441 = vst [vmem:[#allocation46_spill] sm:$0xff] %v3879_v63  ;;  %v6443_v25 = vld [vmem:[#allocation22_spill] sm:$0xff] }
 0x1a0   :  { %6433 = vst [vmem:[#allocation18_spill] sm:$0xff] %v3811_v42 }
 0x1a2   :  { %831 = vrot.lane.b32.xlu2 %v3651_v62, %s2609_s15  ;;  %829 = vrot.lane.b32.xlu1 %v3654_v15, %s2609_s15  ;;  %v3679_v62 = vadd.f32 %v519_v10, %v6402_v3  ;;  %v6406_v10 = vld [vmem:[#allocation5_spill] sm:$0xff]  ;;  %v6408_v3 = vld [vmem:[#allocation6_spill] sm:$0xff] }
 0x1a3   :  { %827 = vrot.lane.b32.xlu0 %v3657_v59, %s2609_s15  ;;  %v3698_v7 = vadd.f32 %v527_v1, %v6406_v10  ;;  %v6410_v1 = vld [vmem:[#allocation7_spill] sm:$0xff] }
 0x1a4   :  { %v3665_v49 = vpop.permute.xlu2 %576  ;;  %v3667_v58 = vpop.permute.xlu1 %556  ;;  %6403 = vst [vmem:[#allocation3_spill] sm:$0xff] %v3679_v62  ;;  %v3717_v45 = vadd.f32 %v3535_v21, %v6410_v1 }
 0x1a5   :  { %v3669_v61 = vpop.permute.xlu0 %554  ;;  %6407 = vst [vmem:[#allocation5_spill] sm:$0xff] %v3698_v7  ;;  %v3853_v20 = vadd.f32 %v3667_v58, %v6436_v48  ;;  %v3870_v48 = vadd.f32 %v3625_v37, %v3413_v6  ;;  %v3883_v23 = vadd.f32 %v3665_v49, %v3449_v32 }
 0x1a6   :  { %6411 = vst [vmem:[#allocation7_spill] sm:$0xff] %v3717_v45  ;;  %v3859_v44 = vadd.f32 %v3669_v61, %v6438_v31 }
 0x1a7   :  { %6437 = vst [vmem:[#allocation20_spill] sm:$0xff] %v3853_v20 }
 0x1a8   :  { %6439 = vst [vmem:[#allocation21_spill] sm:$0xff] %v3859_v44 }
 0x1a9   :  { %6440 = vst [vmem:[#allocation45_spill] sm:$0xff] %v3870_v48 }
 0x1aa   :  { %837 = vrot.lane.b32.xlu2 %v3673_v26, %s2609_s15  ;;  %835 = vrot.lane.b32.xlu1 %v3676_v53, %s2609_s15  ;;  %v3701_v26 = vadd.f32 %v525_v13, %v6408_v3  ;;  %v6412_v13 = vld [vmem:[#allocation8_spill] sm:$0xff]  ;;  %v6414_v3 = vld [vmem:[#allocation9_spill] sm:$0xff]  ;;  %6442 = vst [vmem:[#allocation47_spill] sm:$0xff] %v3883_v23 }
 0x1ab   :  { %833 = vrot.lane.b32.xlu0 %v3679_v62, %s2609_s15  ;;  %v3720_v10 = vadd.f32 %v533_v0, %v6412_v13  ;;  %v6416_v0 = vld [vmem:[#allocation10_spill] sm:$0xff] }
 0x1ac   :  { %v3687_v59 = vpop.permute.xlu2 %771  ;;  %v3689_v15 = vpop.permute.xlu1 %562  ;;  %6409 = vst [vmem:[#allocation6_spill] sm:$0xff] %v3701_v26  ;;  %v3739_v1 = vadd.f32 %v3553_v24, %v6416_v0 }
 0x1ad   :  { %v3691_v56 = vpop.permute.xlu0 %560  ;;  %6413 = vst [vmem:[#allocation8_spill] sm:$0xff] %v3720_v10  ;;  %v3887_v58 = vadd.f32 %v3687_v59, %v3467_v39 }
 0x1ae   :  { %6417 = vst [vmem:[#allocation10_spill] sm:$0xff] %v3739_v1 }
 0x1b2   :  { %843 = vrot.lane.b32.xlu2 %v3695_v51, %s2609_s15  ;;  %841 = vrot.lane.b32.xlu1 %v3698_v7, %s2609_s15  ;;  %v3723_v51 = vadd.f32 %v531_v16, %v6414_v3  ;;  %v6418_v16 = vld [vmem:[#allocation11_spill] sm:$0xff]  ;;  %v6420_v3 = vld [vmem:[#allocation12_spill] sm:$0xff] }
 0x1b3   :  { %839 = vrot.lane.b32.xlu0 %v3701_v26, %s2609_s15  ;;  %v3742_v13 = vadd.f32 %v539_v41, %v6418_v16  ;;  %v1021_v41 = vld [vmem:[%s6187_s1 + $0x10] sm:$0xff]  ;;  %v6424_v16 = vld [vmem:[#allocation14_spill] sm:$0xff] }
 0x1b4   :  { %v3709_v62 = vpop.permute.xlu2 %777  ;;  %v3711_v53 = vpop.permute.xlu1 %568  ;;  %6415 = vst [vmem:[#allocation9_spill] sm:$0xff] %v3723_v51 }
 0x1b5   :  { %v3713_v54 = vpop.permute.xlu0 %566  ;;  %6419 = vst [vmem:[#allocation11_spill] sm:$0xff] %v3742_v13  ;;  %v3903_v32 = vadd.f32 %v3709_v62, %v3485_v35  ;;  %v3910_v59 = vadd.f32 %v3711_v53, %v3434_v33 }
 0x1b7   :  { %6447 = vst [vmem:[#allocation48_spill] sm:$0xff] %v3903_v32 }
 0x1b8   :  { %6448 = vst [vmem:[#allocation49_spill] sm:$0xff] %v3910_v59 }
 0x1ba   :  { %849 = vrot.lane.b32.xlu2 %v3717_v45, %s2609_s15  ;;  %847 = vrot.lane.b32.xlu1 %v3720_v10, %s2609_s15  ;;  %v3745_v45 = vadd.f32 %v537_v19, %v6420_v3  ;;  %v6422_v19 = vld [vmem:[#allocation13_spill] sm:$0xff]  ;;  %v3767_v3 = vadd.f32 %v545_v47, %v6424_v16  ;;  %v1023_v16 = vld [vmem:[%s6187_s1 + $0x20] sm:$0xff] }
 0x1bb   :  { %845 = vrot.lane.b32.xlu0 %v3723_v51, %s2609_s15  ;;  %v3764_v0 = vadd.f32 %v3571_v27, %v6422_v19  ;;  %v1019_v27 = vld [vmem:[%s6187_s1] sm:$0xff] }
 0x1bc   :  { %v3731_v26 = vpop.permute.xlu2 %783  ;;  %v3733_v7 = vpop.permute.xlu1 %574  ;;  %6421 = vst [vmem:[#allocation12_spill] sm:$0xff] %v3745_v45 }
 0x1bd   :  { %v3735_v21 = vpop.permute.xlu0 %572  ;;  %6423 = vst [vmem:[#allocation13_spill] sm:$0xff] %v3764_v0  ;;  %v3922_v35 = vadd.f32 %v3733_v7, %v3452_v55 }
 0x1be   :  { %6425 = vst [vmem:[#allocation14_spill] sm:$0xff] %v3767_v3  ;;  %v3932_v62 = vadd.f32 %v3735_v21, %v3455_v43  ;;  %v6458_v21 = vld [vmem:[#allocation25_spill] sm:$0xff] }
 0x1bf   :  { %6452 = vst [vmem:[#allocation51_spill] sm:$0xff] %v3922_v35 }
 0x1c0   :  { %6453 = vst [vmem:[#allocation52_spill] sm:$0xff] %v3932_v62 }
 0x1c2   :  { %855 = vrot.lane.b32.xlu2 %v3739_v1, %s2609_s15  ;;  %853 = vrot.lane.b32.xlu1 %v3742_v13, %s2609_s15  ;;  %v3769_v1 = vmax.f32 %v1021_v41, 1.0  ;;  %v6426_v13 = vld [vmem:[#allocation15_spill] sm:$0xff] }
 0x1c3   :  { %851 = vrot.lane.b32.xlu0 %v3745_v45, %s2609_s15  ;;  %v1020_v45 = vld [vmem:[%s6187_s1 + $0x8] sm:$0xff]  ;;  %v3775_v38 = vadd.f32 %v543_v22, %v6426_v13  ;;  %v3795_v13 = vmax.f32 %v1019_v27, 1.0 }
 0x1c4   :  { %v3753_v51 = vpop.permute.xlu2 %789  ;;  %v3755_v10 = vpop.permute.xlu1 %769  ;;  %v3786_v47 = vmax.f32 %v1020_v45, 1.0  ;;  %2481 = vrcp.f32 %v3769_v1  ;;  %vm1178_vm0 = vweird.f32 %v3769_v1  ;;  %v1184_v43 = vand.u32 2147483648, %v3769_v1 }
 0x1c5   :  { %v3757_v24 = vpop.permute.xlu0 %767  ;;  %6427 = vst [vmem:[#allocation15_spill] sm:$0xff] %v3775_v38  ;;  %v3940_v55 = vadd.f32 %v3755_v10, %v3470_v50  ;;  %vm1150_vm5 = vweird.f32 %v3795_v13 }
 0x1c6   :  { %2483 = vrcp.f32 %v3786_v47  ;;  %vm1164_vm2 = vweird.f32 %v3786_v47 }
 0x1c7   :  { %2485 = vrcp.f32 %v3795_v13  ;;  %6455 = vst [vmem:[#allocation54_spill] sm:$0xff] %v3940_v55 }
 0x1ca   :  { %861 = vrot.lane.b32.xlu2 %v3764_v0, %s2609_s15  ;;  %859 = vrot.lane.b32.xlu1 %v3767_v3, %s2609_s15  ;;  %v6428_v0 = vld [vmem:[#allocation16_spill] sm:$0xff]  ;;  %v3814_v27 = vpop.eup %2481 }
 0x1cb   :  { %857 = vrot.lane.b32.xlu0 %v3775_v38, %s2609_s15  ;;  %v3803_v45 = vadd.f32 %v3589_v30, %v6428_v0  ;;  %v6430_v38 = vld [vmem:[#allocation17_spill] sm:$0xff]  ;;  %v3820_v30 = vmax.f32 %v1023_v16, 1.0  ;;  %v1174_v16 = vmul.f32 %v3814_v27, %v3769_v1  ;;  %vm1179_vm1 = vweird.f32 %v3814_v27 }
 0x1cc   :  { %v3788_v41 = vpop.permute.xlu2 %795  ;;  %v3790_v19 = vpop.permute.xlu1 %775  ;;  %v3807_v3 = vadd.f32 %v3645_v2, %v6430_v38  ;;  %vm3957_vm3 = vmor %vm1178_vm0, %vm1179_vm1 }
 0x1cd   :  { %v3793_v22 = vpop.permute.xlu0 %773  ;;  %6429 = vst [vmem:[#allocation16_spill] sm:$0xff] %v3803_v45  ;;  %v3834_v0 = vpop.eup %2483  ;;  %2487 = vrcp.f32 %v3820_v30  ;;  %v1175_v17 = vsub.f32 1.0, %v1174_v16  ;;  %v3895_v16 = vadd.f32 %v3689_v15, %v6443_v25  ;;  %v3914_v15 = vadd.f32 %v3713_v54, %v6449_v12 }
 0x1ce   :  { %6431 = vst [vmem:[#allocation17_spill] sm:$0xff] %v3807_v3  ;;  %v1182_v54 = vand.u32 2147483647, %v3769_v1  ;;  %vm1165_vm4 = vweird.f32 %v3834_v0  ;;  %vm1206_vm11 = vweird.f32 %v3820_v30 }
 0x1cf   :  { %6444 = vst [vmem:[#allocation22_spill] sm:$0xff] %v3895_v16  ;;  %v1176_v39 = vmul.f32 %v3814_v27, %v1175_v17  ;;  %vm4012_vm8 = vmor %vm1164_vm2, %vm1165_vm4  ;;  %vm1220_vm2 = vweird.f32 %v3845_v46 }
 0x1d0   :  { %6450 = vst [vmem:[#allocation24_spill] sm:$0xff] %v3914_v15  ;;  %vm4004_vm7 = vcmp.eq.f32.partialorder %v1182_v54, 8.507059e+37  ;;  %v1154_v54 = vand.u32 2147483647, %v3795_v13 }
 0x1d1   :  { %v3946_v7 = vadd.f32 %v3814_v27, %v1176_v39 }
 0x1d2   :  { %867 = vrot.lane.b32.xlu2 %v3803_v45, %s2609_s15  ;;  %865 = vrot.lane.b32.xlu1 %v3807_v3, %s2609_s15  ;;  %v3843_v3 = vpop.eup %2485  ;;  %vm4063_vm13 = vcmp.eq.f32.partialorder %v1154_v54, 8.507059e+37 }
 0x1d3   :  { %863 = vrot.lane.b32.xlu0 %v3811_v42, %s2609_s15  ;;  %v3841_v42 = vmax.f32 %v1022_v60, 1.0  ;;  %v1160_v60 = vmul.f32 %v3834_v0, %v3786_v47  ;;  %v1146_v36 = vmul.f32 %v3843_v3, %v3795_v13  ;;  %v3875_v31 = vpop.eup %2487  ;;  %vm1151_vm6 = vweird.f32 %v3843_v3 }
 0x1d4   :  { %v3827_v38 = vpop.permute.xlu2 %801  ;;  %v3829_v2 = vpop.permute.xlu1 %781  ;;  %v1202_v33 = vmul.f32 %v3875_v31, %v3820_v30  ;;  %vm4030_vm10 = vmor %vm1150_vm5, %vm1151_vm6  ;;  %vm1207_vm12 = vweird.f32 %v3875_v31 }
 0x1d5   :  { %v3836_v45 = vpop.permute.xlu0 %779  ;;  %2489 = vrcp.f32 %v3841_v42  ;;  %v1161_v61 = vsub.f32 1.0, %v1160_v60  ;;  %v3967_v60 = vadd.f32 %v3757_v24, %v6458_v21  ;;  %v1026_v24 = vld [vmem:[%s6187_s1 + $0x38] sm:$0xff]  ;;  %vm4084_vm14 = vmor %vm1206_vm11, %vm1207_vm12  ;;  %vm1192_vm0 = vweird.f32 %v3841_v42 }
 0x1d6   :  { %2491 = vrcp.f32 %v3845_v46  ;;  %v1203_v1 = vsub.f32 1.0, %v1202_v33 }
 0x1d7   :  { %6459 = vst [vmem:[#allocation25_spill] sm:$0xff] %v3967_v60 }
 0x1d8   :  { %v1204_v50 = vmul.f32 %v3875_v31, %v1203_v1  ;;  %v1028_v1 = vld [vmem:[%s6187_s1 + $0x48] sm:$0xff] }
 0x1da   :  { %873 = vrot.lane.b32.xlu2 %v3849_v57, %s2609_s15  ;;  %871 = vrot.lane.b32.xlu1 %v3853_v20, %s2609_s15  ;;  %v6445_v57 = vld [vmem:[#allocation23_spill] sm:$0xff] }
 0x1db   :  { %869 = vrot.lane.b32.xlu0 %v3859_v44, %s2609_s15  ;;  %v3899_v29 = vadd.f32 %v3691_v56, %v6445_v57  ;;  %v3918_v57 = vadd.f32 %v3731_v26, %v3503_v5  ;;  %v1147_v56 = vsub.f32 1.0, %v1146_v36  ;;  %v3928_v17 = vpop.eup %2489  ;;  %v3936_v5 = vadd.f32 %v3753_v51, %v3521_v4 }
 0x1dc   :  { %v3889_v6 = vpop.permute.xlu2 %807  ;;  %v3891_v37 = vpop.permute.xlu1 %787  ;;  %v1162_v26 = vmul.f32 %v3834_v0, %v1161_v61  ;;  %v1168_v4 = vand.u32 2147483647, %v3786_v47  ;;  %v1170_v51 = vand.u32 2147483648, %v3786_v47  ;;  %v3971_v36 = vadd.f32 %v3788_v41, %v3539_v8  ;;  %v1025_v41 = vld [vmem:[%s6187_s1 + $0x30] sm:$0xff] }
 0x1dd   :  { %6446 = vst [vmem:[#allocation23_spill] sm:$0xff] %v3899_v29  ;;  %v3905_v49 = vpop.permute.xlu0 %785  ;;  %v3943_v53 = vpop.eup %2491  ;;  %v1148_v10 = vmul.f32 %v3843_v3, %v1147_v56  ;;  %v1188_v61 = vmul.f32 %v3928_v17, %v3841_v42  ;;  %v3996_v56 = vadd.f32 %v3790_v19, %v3488_v34  ;;  %v1027_v34 = vld [vmem:[%s6187_s1 + $0x40] sm:$0xff]  ;;  %v4035_v44 = vmax.f32 %v1026_v24, 1.0 }
 0x1de   :  { %6451 = vst [vmem:[#allocation50_spill] sm:$0xff] %v3918_v57  ;;  %v3982_v12 = vadd.f32 %v3834_v0, %v1162_v26  ;;  %v1216_v8 = vmul.f32 %v3943_v53, %v3845_v46  ;;  %v1181_v26 = vsel %vm3957_vm3, %v3814_v27, %v3946_v7  ;;  %vm4019_vm9 = vcmp.eq.f32.partialorder %v1168_v4, 8.507059e+37  ;;  %v1033_v57 = vld [vmem:[%s6187_s1 + $0x70] sm:$0xff] }
 0x1df   :  { %6454 = vst [vmem:[#allocation53_spill] sm:$0xff] %v3936_v5  ;;  %v1171_v27 = vor.u32 1.1754944e-38, %v1170_v51  ;;  %v1149_v7 = vadd.f32 %v3843_v3, %v1148_v10  ;;  %v1189_v4 = vsub.f32 1.0, %v1188_v61  ;;  %v4037_v51 = vmax.f32 %v1025_v41, 1.0  ;;  %v1029_v10 = vld [vmem:[%s6187_s1 + $0x50] sm:$0xff] }
 0x1e0   :  { %6460 = vst [vmem:[#allocation55_spill] sm:$0xff] %v3971_v36  ;;  %v1217_v20 = vsub.f32 1.0, %v1216_v8  ;;  %v4047_v36 = vmax.f32 %v1027_v34, 1.0  ;;  %v1212_v61 = vand.u32 2147483648, %v3820_v30  ;;  %2493 = vrcp.f32 %v4035_v44 }
 0x1e1   :  { %2495 = vrcp.f32 %v4037_v51  ;;  %v1205_v24 = vadd.f32 %v3875_v31, %v1204_v50  ;;  %v1190_v41 = vmul.f32 %v3928_v17, %v1189_v4  ;;  %v4074_v34 = vmax.f32 %v1028_v1, 1.0 }
 0x1e2   :  { %879 = vrot.lane.b32.xlu2 %v3870_v48, %s2609_s15  ;;  %877 = vrot.lane.b32.xlu1 %v3895_v16, %s2609_s15  ;;  %v1185_v48 = vor.u32 1.1754944e-38, %v1184_v43  ;;  %v1156_v43 = vand.u32 2147483648, %v3795_v13  ;;  %v1167_v13 = vsel %vm4012_vm8, %v3834_v0, %v3982_v12  ;;  %v1210_v16 = vand.u32 2147483647, %v3820_v30 }
 0x1e3   :  { %875 = vrot.lane.b32.xlu0 %v3899_v29, %s2609_s15  ;;  %v1153_v0 = vsel %vm4030_vm10, %v3843_v3, %v1149_v7  ;;  %v4068_v12 = vmax.f32 %v1029_v10, 1.0  ;;  %2497 = vrcp.f32 %v4047_v36  ;;  %v1213_v4 = vor.u32 1.1754944e-38, %v1212_v61 }
 0x1e4   :  { %v3977_v25 = vpop.permute.xlu2 %813  ;;  %v3979_v39 = vpop.permute.xlu1 %793  ;;  %v1157_v8 = vor.u32 1.1754944e-38, %v1156_v43  ;;  %vm4088_vm15 = vcmp.eq.f32.partialorder %v1210_v16, 8.507059e+37  ;;  %v1218_v43 = vmul.f32 %v3943_v53, %v1217_v20  ;;  %vm1193_vm1 = vweird.f32 %v3928_v17 }
 0x1e5   :  { %v3998_v33 = vpop.permute.xlu0 %791  ;;  %v1196_v30 = vand.u32 2147483647, %v3841_v42  ;;  %v1198_v10 = vand.u32 2147483648, %v3841_v42  ;;  %vm1221_vm3 = vweird.f32 %v3943_v53  ;;  %v1224_v16 = vand.u32 2147483647, %v3845_v46  ;;  %vm4131_vm4 = vmor %vm1192_vm0, %vm1193_vm1 }
 0x1e6   :  { %2499 = vrcp.f32 %v4068_v12  ;;  %v4104_v20 = vpop.eup %2493  ;;  %v1209_v1 = vsel %vm4084_vm14, %v3875_v31, %v1205_v24  ;;  %v1191_v61 = vadd.f32 %v3928_v17, %v1190_v41  ;;  %v4119_v5 = vadd.f32 %v3793_v22, %v3491_v52  ;;  %vm4144_vm5 = vmor %vm1220_vm2, %vm1221_vm3 }
 0x1e7   :  { %2501 = vrcp.f32 %v4074_v34  ;;  %v4123_v7 = vadd.f32 %v3827_v38, %v3557_v11  ;;  %v1186_v31 = vsel %vm4004_vm7, %v1185_v48, %v1181_v26  ;;  %v1219_v41 = vadd.f32 %v3943_v53, %v1218_v43 }
 0x1e8   :  { %6475 = vst [vmem:[#allocation56_spill] sm:$0xff] %v4119_v5  ;;  %v1172_v52 = vsel %vm4019_vm9, %v1171_v27, %v1167_v13  ;;  %v1158_v11 = vsel %vm4063_vm13, %v1157_v8, %v1153_v0  ;;  %v1244_v42 = vmul.f32 %v4104_v20, %v4035_v44  ;;  %vm4162_vm6 = vcmp.eq.f32.partialorder %v1196_v30, 8.507059e+37 }
 0x1e9   :  { %6476 = vst [vmem:[#allocation57_spill] sm:$0xff] %v4123_v7  ;;  %v1199_v21 = vor.u32 1.1754944e-38, %v1198_v10  ;;  %v1195_v27 = vsel %vm4131_vm4, %v3928_v17, %v1191_v61  ;;  %vm4173_vm7 = vcmp.eq.f32.partialorder %v1224_v16, 8.507059e+37  ;;  %v1223_v43 = vsel %vm4144_vm5, %v3943_v53, %v1219_v41  ;;  %v1032_v53 = vld [vmem:[%s6187_s1 + $0x68] sm:$0xff] }
 0x1ea   :  { %885 = vrot.lane.b32.xlu2 %v3879_v63, %s2609_s15  ;;  %883 = vrot.lane.b32.xlu1 %v3910_v59, %s2609_s15  ;;  %v1226_v63 = vand.u32 2147483648, %v3845_v46  ;;  %v4115_v59 = vpop.eup %2495  ;;  %v4160_v46 = vsel %vm4088_vm15, %v1213_v4, %v1209_v1  ;;  %v1252_v17 = vand.u32 2147483647, %v4035_v44  ;;  %v1254_v4 = vand.u32 2147483648, %v4035_v44 }
 0x1eb   :  { %881 = vrot.lane.b32.xlu0 %v3914_v15, %s2609_s15  ;;  %v1030_v15 = vld [vmem:[%s6187_s1 + $0x58] sm:$0xff]  ;;  %v1230_v38 = vmul.f32 %v4115_v59, %v4037_v51  ;;  %v4152_v48 = vpop.eup %2497  ;;  %v1245_v10 = vsub.f32 1.0, %v1244_v42  ;;  %v1238_v1 = vand.u32 2147483647, %v4037_v51  ;;  %v1240_v61 = vand.u32 2147483648, %v4037_v51 }
 0x1ec   :  { %v4076_v47 = vpop.permute.xlu2 %819  ;;  %v4078_v3 = vpop.permute.xlu1 %799  ;;  %v4166_v19 = vmax.f32 %v1030_v15, 1.0  ;;  %v1227_v0 = vor.u32 1.1754944e-38, %v1226_v63  ;;  %v1258_v29 = vmul.f32 %v4152_v48, %v4047_v36  ;;  %v4202_v24 = vsel %vm4162_vm6, %v1199_v21, %v1195_v27 }
 0x1ed   :  { %v4095_v50 = vpop.permute.xlu0 %797  ;;  %v4179_v8 = vpop.eup %2499  ;;  %v1231_v16 = vsub.f32 1.0, %v1230_v38  ;;  %vm1248_vm8 = vweird.f32 %v4035_v44  ;;  %vm1234_vm9 = vweird.f32 %v4037_v51  ;;  %v1266_v38 = vand.u32 2147483647, %v4047_v36 }
 0x1ee   :  { %2503 = vrcp.f32 %v4166_v19  ;;  %v4191_v63 = vpop.eup %2501  ;;  %v1286_v41 = vmul.f32 %v4179_v8, %v4068_v12  ;;  %v4210_v22 = vsel %vm4173_vm7, %v1227_v0, %v1223_v43  ;;  %v1259_v42 = vsub.f32 1.0, %v1258_v29 }
 0x1ef   :  { %v4215_v26 = vor.u32 1.1754944e-38, %v1254_v4  ;;  %vm1262_vm10 = vweird.f32 %v4047_v36  ;;  %v1268_v21 = vand.u32 2147483648, %v4047_v36  ;;  %v4219_v27 = vmax.f32 %v1032_v53, 1.0 }
 0x1f0   :  { %vm4222_vm11 = vcmp.eq.f32.partialorder %v1252_v17, 8.507059e+37  ;;  %v1232_v0 = vmul.f32 %v4115_v59, %v1231_v16  ;;  %vm4227_vm12 = vcmp.eq.f32.partialorder %v1238_v1, 8.507059e+37  ;;  %v4231_v43 = vor.u32 1.1754944e-38, %v1240_v61 }
 0x1f1   :  { %v1287_v4 = vsub.f32 1.0, %v1286_v41  ;;  %vm1249_vm13 = vweird.f32 %v4104_v20  ;;  %v1294_v17 = vand.u32 2147483647, %v4068_v12  ;;  %vm1235_vm14 = vweird.f32 %v4115_v59 }
 0x1f2   :  { %891 = vrot.lane.b32.xlu2 %v3883_v23, %s2609_s15  ;;  %889 = vrot.lane.b32.xlu1 %v3922_v35, %s2609_s15  ;;  %v1272_v23 = vmul.f32 %v4191_v63, %v4074_v34  ;;  %v1260_v16 = vmul.f32 %v4152_v48, %v1259_v42  ;;  %vm4240_vm15 = vcmp.eq.f32.partialorder %v1266_v38, 8.507059e+37  ;;  %vm1290_vm0 = vweird.f32 %v4068_v12  ;;  %vm4264_vm2 = vmor %vm1248_vm8, %vm1249_vm13 }
 0x1f3   :  { %887 = vrot.lane.b32.xlu0 %v3932_v62, %s2609_s15  ;;  %v1246_v62 = vmul.f32 %v4104_v20, %v1245_v10  ;;  %v1296_v10 = vand.u32 2147483648, %v4068_v12  ;;  %v1269_v41 = vor.u32 1.1754944e-38, %v1268_v21  ;;  %vm1276_vm1 = vweird.f32 %v4074_v34  ;;  %vm4278_vm4 = vmor %vm1234_vm9, %vm1235_vm14  ;;  %v1036_v21 = vld [vmem:[%s6187_s1 + $0x88] sm:$0xff] }
 0x1f4   :  { %v4181_v54 = vpop.permute.xlu2 %825  ;;  %v4183_v15 = vpop.permute.xlu1 %805  ;;  %v1273_v53 = vsub.f32 1.0, %v1272_v23  ;;  %v1280_v23 = vand.u32 2147483647, %v4074_v34  ;;  %2505 = vrcp.f32 %v4219_v27  ;;  %vm1263_vm3 = vweird.f32 %v4152_v48 }
 0x1f5   :  { %v4193_v30 = vpop.permute.xlu0 %803  ;;  %v4233_v35 = vpop.eup %2503  ;;  %v1247_v38 = vadd.f32 %v4104_v20, %v1246_v62  ;;  %v1288_v7 = vmul.f32 %v4179_v8, %v1287_v4  ;;  %vm4282_vm5 = vcmp.eq.f32.partialorder %v1294_v17, 8.507059e+37  ;;  %v1282_v4 = vand.u32 2147483648, %v4074_v34  ;;  %vm4294_vm7 = vmor %vm1262_vm10, %vm1263_vm3 }
 0x1f6   :  { %v1274_v32 = vmul.f32 %v4191_v63, %v1273_v53  ;;  %v1261_v5 = vadd.f32 %v4152_v48, %v1260_v16  ;;  %vm1291_vm6 = vweird.f32 %v4179_v8  ;;  %vm1277_vm8 = vweird.f32 %v4191_v63 }
 0x1f7   :  { %v1308_v17 = vand.u32 2147483647, %v4166_v19  ;;  %v4301_v53 = vmax.f32 %v1033_v57, 1.0  ;;  %v1251_v16 = vsel %vm4264_vm2, %v4104_v20, %v1247_v38  ;;  %vm4319_vm9 = vmor %vm1290_vm0, %vm1291_vm6  ;;  %vm4324_vm10 = vcmp.eq.f32.partialorder %v1280_v23, 8.507059e+37 }
 0x1f8   :  { %v1265_v12 = vsel %vm4294_vm7, %v4152_v48, %v1261_v5  ;;  %vm4340_vm13 = vmor %vm1276_vm1, %vm1277_vm8  ;;  %vm1304_vm14 = vweird.f32 %v4166_v19  ;;  %v1256_v34 = vsel %vm4222_vm11, %v4215_v26, %v1251_v16  ;;  %vm1305_vm11 = vweird.f32 %v4233_v35 }
 0x1f9   :  { %vm4361_vm0 = vcmp.eq.f32.partialorder %v1308_v17, 8.507059e+37  ;;  %v1336_v51 = vand.u32 2147483647, %v4219_v27  ;;  %v4389_v16 = vmax.f32 %v1036_v21, 1.0 }
 0x1fa   :  { %2039 = vperm.xlu2 %2480, %v1186_v31   ;;  %2034 = vperm.xlu1 %2479, %v1172_v52   ;;  %v1300_v31 = vmul.f32 %v4233_v35, %v4166_v19 }
 0x1fb   :  { %2029 = vperm.xlu0 %2478, %v1158_v11   ;;  %v1031_v11 = vld [vmem:[%s6187_s1 + $0x60] sm:$0xff]  ;;  %vm4411_vm1 = vcmp.eq.f32.partialorder %v1336_v51, 8.507059e+37 }
 0x1fc   :  { %v4247_v52 = vpop.permute.xlu2 %831  ;;  %v4249_v61 = vpop.permute.xlu1 %811  ;;  %v1301_v60 = vsub.f32 1.0, %v1300_v31  ;;  %v4290_v55 = vmax.f32 %v1031_v11, 1.0  ;;  %v1289_v31 = vadd.f32 %v4179_v8, %v1288_v7  ;;  %v1283_v7 = vor.u32 1.1754944e-38, %v1282_v4 }
 0x1fd   :  { %6491 = vst [vmem:[#allocation58_spill] sm:$0xff] %v4247_v52  ;;  %v4257_v42 = vpop.permute.xlu0 %809  ;;  %v1233_v52 = vadd.f32 %v4115_v59, %v1232_v0  ;;  %v1297_v0 = vor.u32 1.1754944e-38, %v1296_v10  ;;  %v1310_v10 = vand.u32 2147483648, %v4166_v19  ;;  %v4311_v11 = vpop.eup %2505 }
 0x1fe   :  { %2507 = vrcp.f32 %v4290_v55  ;;  %v1293_v13 = vsel %vm4319_vm9, %v4179_v8, %v1289_v31  ;;  %v1322_v62 = vand.u32 2147483647, %v4290_v55  ;;  %vm1333_vm2 = vweird.f32 %v4311_v11 }
 0x1ff   :  { %v1237_v36 = vsel %vm4278_vm4, %v4115_v59, %v1233_v52  ;;  %v1275_v59 = vadd.f32 %v4191_v63, %v1274_v32  ;;  %2509 = vrcp.f32 %v4301_v53  ;;  %v1328_v52 = vmul.f32 %v4311_v11, %v4219_v27 }
 0x200   :  { %v1311_v38 = vor.u32 1.1754944e-38, %v1310_v10  ;;  %v1350_v32 = vand.u32 2147483647, %v4301_v53  ;;  %vm1318_vm3 = vweird.f32 %v4290_v55  ;;  %vm4434_vm4 = vcmp.eq.f32.partialorder %v1322_v62, 8.507059e+37 }
 0x201   :  { %v1329_v26 = vsub.f32 1.0, %v1328_v52  ;;  %v1279_v4 = vsel %vm4340_vm13, %v4191_v63, %v1275_v59 }
 0x202   :  { %2049 = vperm.xlu2 %2480, %v4160_v46   ;;  %2044 = vperm.xlu1 %2479, %v4202_v24   ;;  %v1035_v46 = vld [vmem:[%s6187_s1 + $0x80] sm:$0xff]  ;;  %v1302_v24 = vmul.f32 %v4233_v35, %v1301_v60  ;;  %v1242_v60 = vsel %vm4227_vm12, %v4231_v43, %v1237_v36  ;;  %v1270_v43 = vsel %vm4240_vm15, %v1269_v41, %v1265_v12  ;;  %vm1332_vm12 = vweird.f32 %v4219_v27  ;;  %vm4397_vm15 = vmor %vm1304_vm14, %vm1305_vm11 }
 0x203   :  { %2054 = vperm.xlu0 %2478, %v4210_v22   ;;  %v1034_v22 = vld [vmem:[%s6187_s1 + $0x78] sm:$0xff]  ;;  %v4374_v29 = vmax.f32 %v1035_v46, 1.0  ;;  %v1298_v41 = vsel %vm4282_vm5, %v1297_v0, %v1293_v13  ;;  %v1338_v36 = vand.u32 2147483648, %v4219_v27  ;;  %v1284_v57 = vsel %vm4324_vm10, %v1283_v7, %v1279_v4  ;;  %vm4451_vm6 = vmor %vm1332_vm12, %vm1333_vm2 }
 0x204   :  { %v4351_v5 = vpop.permute.xlu2 %837  ;;  %v4353_v48 = vpop.permute.xlu1 %817  ;;  %v4382_v17 = vmax.f32 %v1034_v22, 1.0  ;;  %v1303_v8 = vadd.f32 %v4233_v35, %v1302_v24  ;;  %v1330_v59 = vmul.f32 %v4311_v11, %v1329_v26  ;;  %v1324_v12 = vand.u32 2147483648, %v4290_v55  ;;  %v1038_v4 = vld [vmem:[%s6187_s1 + $0x98] sm:$0xff] }
 0x205   :  { %v4368_v44 = vpop.permute.xlu0 %815  ;;  %v4384_v10 = vpop.eup %2507  ;;  %2511 = vrcp.f32 %v4374_v29  ;;  %v1339_v22 = vor.u32 1.1754944e-38, %v1338_v36  ;;  %vm1346_vm5 = vweird.f32 %v4301_v53  ;;  %vm4459_vm9 = vcmp.eq.f32.partialorder %v1350_v32, 8.507059e+37 }
 0x206   :  { %v4391_v1 = vpop.eup %2509  ;;  %v1314_v31 = vmul.f32 %v4384_v10, %v4290_v55  ;;  %2513 = vrcp.f32 %v4382_v17  ;;  %v1307_v20 = vsel %vm4397_vm15, %v4233_v35, %v1303_v8  ;;  %v1331_v35 = vadd.f32 %v4311_v11, %v1330_v59 }
 0x207   :  { %v1342_v19 = vmul.f32 %v4391_v1, %v4301_v53  ;;  %2515 = vrcp.f32 %v4389_v16  ;;  %v1312_v8 = vsel %vm4361_vm0, %v1311_v38, %v1307_v20  ;;  %vm1319_vm7 = vweird.f32 %v4384_v10 }
 0x208   :  { %v1315_v46 = vsub.f32 1.0, %v1314_v31  ;;  %v1325_v36 = vor.u32 1.1754944e-38, %v1324_v12  ;;  %vm1347_vm8 = vweird.f32 %v4391_v1  ;;  %v1378_v23 = vand.u32 2147483647, %v4374_v29  ;;  %vm4476_vm10 = vmor %vm1318_vm3, %vm1319_vm7 }
 0x209   :  { %v1343_v7 = vsub.f32 1.0, %v1342_v19  ;;  %v1335_v32 = vsel %vm4451_vm6, %v4311_v11, %v1331_v35  ;;  %vm1374_vm13 = vweird.f32 %v4374_v29  ;;  %vm4486_vm14 = vmor %vm1346_vm5, %vm1347_vm8  ;;  %v1380_v55 = vand.u32 2147483648, %v4374_v29 }
 0x20a   :  { %2064 = vperm.xlu2 %2480, %v1256_v34   ;;  %2059 = vperm.xlu1 %2479, %v1242_v60   ;;  %v1316_v34 = vmul.f32 %v4384_v10, %v1315_v46  ;;  %v1352_v60 = vand.u32 2147483648, %v4301_v53  ;;  %v4467_v46 = vmax.f32 %v1038_v4, 1.0  ;;  %vm1360_vm0 = vweird.f32 %v4382_v17 }
 0x20b   :  { %2069 = vperm.xlu0 %2478, %v1270_v43   ;;  %v4429_v21 = vpop.eup %2511  ;;  %v1344_v43 = vmul.f32 %v4391_v1, %v1343_v7  ;;  %v1364_v11 = vand.u32 2147483647, %v4382_v17  ;;  %vm4499_vm11 = vcmp.eq.f32.partialorder %v1378_v23, 8.507059e+37  ;;  %v1366_v4 = vand.u32 2147483648, %v4382_v17 }
 0x20c   :  { %v4422_v24 = vpop.permute.xlu2 %843  ;;  %v4424_v52 = vpop.permute.xlu1 %823  ;;  %v1370_v31 = vmul.f32 %v4429_v21, %v4374_v29  ;;  %v1317_v38 = vadd.f32 %v4384_v10, %v1316_v34  ;;  %v1353_v62 = vor.u32 1.1754944e-38, %v1352_v60  ;;  %2517 = vrcp.f32 %v4467_v46 }
 0x20d   :  { %v4431_v13 = vpop.permute.xlu0 %821  ;;  %v4443_v51 = vpop.eup %2513  ;;  %v1345_v7 = vadd.f32 %v4391_v1, %v1344_v43  ;;  %vm1375_vm12 = vweird.f32 %v4429_v21  ;;  %vm1388_vm2 = vweird.f32 %v4389_v16  ;;  %vm4558_vm5 = vcmp.eq.f32.partialorder %v1364_v11, 8.507059e+37  ;;  %v1040_v11 = vld [vmem:[%s6187_s1 + $0xa8] sm:$0xff] }
 0x20e   :  { %v1356_v27 = vmul.f32 %v4443_v51, %v4382_v17  ;;  %v1371_v19 = vsub.f32 1.0, %v1370_v31  ;;  %v4469_v12 = vpop.eup %2515  ;;  %vm1361_vm15 = vweird.f32 %v4443_v51  ;;  %vm4542_vm3 = vmor %vm1374_vm13, %vm1375_vm12  ;;  %v1420_v17 = vand.u32 2147483647, %v4467_v46 }
 0x20f   :  { %v1384_v35 = vmul.f32 %v4469_v12, %v4389_v16  ;;  %vm1416_vm8 = vweird.f32 %v4467_v46 }
 0x210   :  { %v1357_v34 = vsub.f32 1.0, %v1356_v27  ;;  %v1372_v53 = vmul.f32 %v4429_v21, %v1371_v19  ;;  %v1340_v27 = vsel %vm4411_vm1, %v1339_v22, %v1335_v32  ;;  %vm1389_vm1 = vweird.f32 %v4469_v12 }
 0x211   :  { %v1385_v23 = vsub.f32 1.0, %v1384_v35  ;;  %v1394_v22 = vand.u32 2147483648, %v4389_v16  ;;  %vm4569_vm6 = vmor %vm1388_vm2, %vm1389_vm1 }
 0x212   :  { %2079 = vperm.xlu2 %2480, %v1298_v41   ;;  %2074 = vperm.xlu1 %2479, %v1284_v57   ;;  %v1037_v41 = vld [vmem:[%s6187_s1 + $0x90] sm:$0xff]  ;;  %v1358_v43 = vmul.f32 %v4443_v51, %v1357_v34  ;;  %v1349_v34 = vsel %vm4486_vm14, %v4391_v1, %v1345_v7  ;;  %v1373_v20 = vadd.f32 %v4429_v21, %v1372_v53  ;;  %v4563_v53 = vpop.eup %2517 }
 0x213   :  { %2084 = vperm.xlu0 %2478, %v1312_v8   ;;  %v1321_v8 = vsel %vm4476_vm10, %v4384_v10, %v1317_v38  ;;  %v1386_v0 = vmul.f32 %v4469_v12, %v1385_v23  ;;  %v1392_v10 = vand.u32 2147483647, %v4389_v16  ;;  %v1039_v38 = vld [vmem:[%s6187_s1 + $0xa0] sm:$0xff]  ;;  %v1041_v1 = vld [vmem:[%s6187_s1 + $0xb0] sm:$0xff]  ;;  %v1354_v35 = vsel %vm4459_vm9, %v1353_v62, %v1349_v34 }
 0x214   :  { %v4506_v63 = vpop.permute.xlu2 %849  ;;  %v4508_v31 = vpop.permute.xlu1 %829  ;;  %v1326_v32 = vsel %vm4434_vm4, %v1325_v36, %v1321_v8  ;;  %v1359_v60 = vadd.f32 %v4443_v51, %v1358_v43  ;;  %vm4554_vm4 = vmor %vm1360_vm0, %vm1361_vm15  ;;  %v1367_v43 = vor.u32 1.1754944e-38, %v1366_v4  ;;  %v4574_v62 = vmax.f32 %v1039_v38, 1.0 }
 0x215   :  { %6524 = vst [vmem:[#allocation59_spill] sm:$0xff] %v4506_v63  ;;  %v4516_v19 = vpop.permute.xlu0 %827  ;;  %v4523_v63 = vmax.f32 %v1037_v41, 1.0  ;;  %v1381_v41 = vor.u32 1.1754944e-38, %v1380_v55  ;;  %v1387_v36 = vadd.f32 %v4469_v12, %v1386_v0  ;;  %v4576_v55 = vmax.f32 %v1041_v1, 1.0 }
 0x216   :  { %vm4581_vm7 = vcmp.eq.f32.partialorder %v1392_v10, 8.507059e+37  ;;  %v1395_v16 = vor.u32 1.1754944e-38, %v1394_v22  ;;  %v1412_v8 = vmul.f32 %v4563_v53, %v4467_v46  ;;  %v1422_v23 = vand.u32 2147483648, %v4467_v46 }
 0x217   :  { %2519 = vrcp.f32 %v4523_v63  ;;  %v1377_v34 = vsel %vm4542_vm3, %v4429_v21, %v1373_v20  ;;  %v1391_v22 = vsel %vm4569_vm6, %v4469_v12, %v1387_v36  ;;  %v4604_v21 = vmax.f32 %v1040_v11, 1.0  ;;  %v1042_v36 = vld [vmem:[%s6187_s1 + $0xb8] sm:$0xff]  ;;  %v1044_v11 = vld [vmem:[%s6187_s1 + $0xc8] sm:$0xff] }
 0x218   :  { %2521 = vrcp.f32 %v4574_v62  ;;  %v1413_v38 = vsub.f32 1.0, %v1412_v8  ;;  %vm1417_vm9 = vweird.f32 %v4563_v53  ;;  %vm4609_vm10 = vcmp.eq.f32.partialorder %v1420_v17, 8.507059e+37 }
 0x219   :  { %2523 = vrcp.f32 %v4576_v55  ;;  %v1406_v20 = vand.u32 2147483647, %v4523_v63  ;;  %v1408_v7 = vand.u32 2147483648, %v4523_v63  ;;  %v1382_v12 = vsel %vm4499_vm11, %v1381_v41, %v1377_v34  ;;  %vm4631_vm14 = vmor %vm1416_vm8, %vm1417_vm9 }
 0x21a   :  { %2094 = vperm.xlu2 %2480, %v1340_v27   ;;  %2089 = vperm.xlu1 %2479, %v1326_v32   ;;  %v1363_v27 = vsel %vm4554_vm4, %v4443_v51, %v1359_v60  ;;  %v1414_v60 = vmul.f32 %v4563_v53, %v1413_v38  ;;  %v1396_v17 = vsel %vm4581_vm7, %v1395_v16, %v1391_v22  ;;  %vm1402_vm13 = vweird.f32 %v4523_v63 }
 0x21b   :  { %2099 = vperm.xlu0 %2478, %v1354_v35   ;;  %v1423_v35 = vor.u32 1.1754944e-38, %v1422_v23  ;;  %v1368_v59 = vsel %vm4558_vm5, %v1367_v43, %v1363_v27  ;;  %v1434_v57 = vand.u32 2147483647, %v4574_v62  ;;  %2525 = vrcp.f32 %v4604_v21 }
 0x21c   :  { %v4596_v0 = vpop.permute.xlu2 %855  ;;  %v4598_v10 = vpop.permute.xlu1 %835  ;;  %v1415_v41 = vadd.f32 %v4563_v53, %v1414_v60  ;;  %vm4636_vm11 = vcmp.eq.f32.partialorder %v1406_v20, 8.507059e+37  ;;  %v1409_v4 = vor.u32 1.1754944e-38, %v1408_v7  ;;  %v1436_v16 = vand.u32 2147483648, %v4574_v62 }
 0x21d   :  { %6535 = vst [vmem:[#allocation60_spill] sm:$0xff] %v4596_v0  ;;  %v2520_v1 = vpop.eup %2519  ;;  %v4606_v32 = vpop.permute.xlu0 %833  ;;  %v4641_v23 = vmax.f32 %v1042_v36, 1.0  ;;  %vm1430_vm12 = vweird.f32 %v4574_v62  ;;  %vm1458_vm15 = vweird.f32 %v4576_v55  ;;  %vm4658_vm1 = vcmp.eq.f32.partialorder %v1434_v57, 8.507059e+37 }
 0x21e   :  { %v1398_v26 = vmul.f32 %v2520_v1, %v4523_v63  ;;  %vm1403_vm0 = vweird.f32 %v2520_v1  ;;  %v2522_v29 = vpop.eup %2521  ;;  %v1419_v22 = vsel %vm4631_vm14, %v4563_v53, %v1415_v41  ;;  %v1464_v57 = vand.u32 2147483648, %v4576_v55 }
 0x21f   :  { %v4643_v34 = vpop.eup %2523  ;;  %v1426_v27 = vmul.f32 %v2522_v29, %v4574_v62  ;;  %vm4654_vm2 = vmor %vm1402_vm13, %vm1403_vm0  ;;  %vm1431_vm3 = vweird.f32 %v2522_v29  ;;  %2527 = vrcp.f32 %v4641_v23  ;;  %v1448_v41 = vand.u32 2147483647, %v4604_v21 }
 0x220   :  { %v1399_v8 = vsub.f32 1.0, %v1398_v26  ;;  %v1454_v7 = vmul.f32 %v4643_v34, %v4576_v55  ;;  %vm1459_vm4 = vweird.f32 %v4643_v34  ;;  %vm4688_vm5 = vmor %vm1430_vm12, %vm1431_vm3  ;;  %vm1444_vm7 = vweird.f32 %v4604_v21 }
 0x221   :  { %v1427_v36 = vsub.f32 1.0, %v1426_v27  ;;  %v4702_v62 = vmax.f32 %v1044_v11, 1.0  ;;  %vm4707_vm8 = vmor %vm1458_vm15, %vm1459_vm4  ;;  %vm1472_vm14 = vweird.f32 %v4641_v23  ;;  %v1478_v20 = vand.u32 2147483648, %v4641_v23 }
 0x222   :  { %2109 = vperm.xlu2 %2480, %v1382_v12   ;;  %2104 = vperm.xlu1 %2479, %v1368_v59   ;;  %v1400_v46 = vmul.f32 %v2520_v1, %v1399_v8  ;;  %v1462_v12 = vand.u32 2147483647, %v4576_v55  ;;  %v1437_v59 = vor.u32 1.1754944e-38, %v1436_v16  ;;  %v2526_v8 = vpop.eup %2525  ;;  %v1424_v16 = vsel %vm4609_vm10, %v1423_v35, %v1419_v22 }
 0x223   :  { %2114 = vperm.xlu0 %2478, %v1396_v17   ;;  %v1455_v17 = vsub.f32 1.0, %v1454_v7  ;;  %v1428_v27 = vmul.f32 %v2522_v29, %v1427_v36  ;;  %v1440_v38 = vmul.f32 %v2526_v8, %v4604_v21  ;;  %v1465_v22 = vor.u32 1.1754944e-38, %v1464_v57 }
 0x224   :  { %v4665_v60 = vpop.permute.xlu2 %861  ;;  %v4667_v26 = vpop.permute.xlu1 %841  ;;  %v1401_v53 = vadd.f32 %v2520_v1, %v1400_v46  ;;  %vm4697_vm6 = vcmp.eq.f32.partialorder %v1462_v12, 8.507059e+37  ;;  %vm1445_vm9 = vweird.f32 %v2526_v8  ;;  %v1045_v12 = vld [vmem:[%s6187_s1 + $0xd0] sm:$0xff]  ;;  %vm4716_vm10 = vcmp.eq.f32.partialorder %v1448_v41, 8.507059e+37 }
 0x225   :  { %6546 = vst [vmem:[#allocation61_spill] sm:$0xff] %v4665_v60  ;;  %v4670_v63 = vpop.permute.xlu0 %839  ;;  %v1450_v60 = vand.u32 2147483648, %v4604_v21  ;;  %v1429_v51 = vadd.f32 %v2522_v29, %v1428_v27  ;;  %v1441_v36 = vsub.f32 1.0, %v1440_v38  ;;  %2529 = vrcp.f32 %v4702_v62  ;;  %vm4736_vm13 = vmor %vm1444_vm7, %vm1445_vm9 }
 0x226   :  { %v1405_v46 = vsel %vm4654_vm2, %v2520_v1, %v1401_v53  ;;  %v1456_v1 = vmul.f32 %v4643_v34, %v1455_v17  ;;  %v1043_v53 = vld [vmem:[%s6187_s1 + $0xc0] sm:$0xff]  ;;  %v2528_v17 = vpop.eup %2527  ;;  %v4749_v21 = vadd.f32 %v3829_v2, %v3506_v9  ;;  %vm1500_vm15 = vweird.f32 %v4702_v62 }
 0x227   :  { %v1410_v7 = vsel %vm4636_vm11, %v1409_v4, %v1405_v46  ;;  %v1433_v11 = vsel %vm4688_vm5, %v2522_v29, %v1429_v51  ;;  %v4721_v55 = vmax.f32 %v1043_v53, 1.0  ;;  %v1442_v27 = vmul.f32 %v2526_v8, %v1441_v36  ;;  %v6563_v46 = vld [vmem:[#allocation36_spill] sm:$0xff] }
 0x228   :  { %v1457_v43 = vadd.f32 %v4643_v34, %v1456_v1  ;;  %v1438_v57 = vsel %vm4658_vm1, %v1437_v59, %v1433_v11  ;;  %v1451_v1 = vor.u32 1.1754944e-38, %v1450_v60  ;;  %v1468_v38 = vmul.f32 %v2528_v17, %v4641_v23 }
 0x229   :  { %v4742_v60 = vmax.f32 %v1045_v12, 1.0  ;;  %vm1473_vm0 = vweird.f32 %v2528_v17  ;;  %v4753_v51 = vadd.f32 %v3836_v45, %v3509_v18  ;;  %2531 = vrcp.f32 %v4721_v55  ;;  %v1047_v18 = vld [vmem:[%s6187_s1 + $0xe0] sm:$0xff] }
 0x22a   :  { %2124 = vperm.xlu2 %2480, %v1424_v16   ;;  %2119 = vperm.xlu1 %2479, %v1410_v7   ;;  %v1461_v29 = vsel %vm4707_vm8, %v4643_v34, %v1457_v43  ;;  %v1443_v7 = vadd.f32 %v2526_v8, %v1442_v27  ;;  %v1469_v53 = vsub.f32 1.0, %v1468_v38  ;;  %v1476_v34 = vand.u32 2147483647, %v4641_v23  ;;  %vm4775_vm11 = vmor %vm1472_vm14, %vm1473_vm0  ;;  %v1046_v23 = vld [vmem:[%s6187_s1 + $0xd8] sm:$0xff]  ;;  %v6564_v27 = vld [vmem:[#allocation26_spill] sm:$0xff] }
 0x22b   :  { %2129 = vperm.xlu0 %2478, %v1438_v57   ;;  %v4757_v43 = vadd.f32 %v3889_v6, %v3575_v14  ;;  %v4762_v4 = vadd.f32 %v3891_v37, %v3524_v40  ;;  %v1466_v36 = vsel %vm4697_vm6, %v1465_v22, %v1461_v29  ;;  %v2530_v45 = vpop.eup %2529  ;;  %v1479_v6 = vor.u32 1.1754944e-38, %v1478_v20 }
 0x22c   :  { %v4726_v16 = vpop.permute.xlu2 %867  ;;  %v4728_v0 = vpop.permute.xlu1 %847  ;;  %v1447_v9 = vsel %vm4736_vm13, %v2526_v8, %v1443_v7  ;;  %v1470_v2 = vmul.f32 %v2528_v17, %v1469_v53  ;;  %v1504_v37 = vand.u32 2147483647, %v4702_v62  ;;  %2533 = vrcp.f32 %v4742_v60 }
 0x22d   :  { %6555 = vst [vmem:[#allocation62_spill] sm:$0xff] %v4726_v16  ;;  %v4744_v59 = vpop.permute.xlu0 %845  ;;  %v1452_v14 = vsel %vm4716_vm10, %v1451_v1, %v1447_v9  ;;  %vm4781_vm12 = vcmp.eq.f32.partialorder %v1476_v34, 8.507059e+37  ;;  %v1496_v22 = vmul.f32 %v2530_v45, %v4702_v62  ;;  %v1506_v12 = vand.u32 2147483648, %v4702_v62 }
 0x22e   :  { %6558 = vst [vmem:[#allocation63_spill] sm:$0xff] %v4744_v59  ;;  %v1471_v8 = vadd.f32 %v2528_v17, %v1470_v2  ;;  %v4792_v11 = vadd.f32 %v3905_v49, %v3527_v28  ;;  %v4796_v57 = vadd.f32 %v3977_v25, %v6563_v46  ;;  %v4800_v1 = vadd.f32 %v3979_v39, %v6564_v27  ;;  %v1048_v28 = vld [vmem:[%s6187_s1 + $0xe8] sm:$0xff] }
 0x22f   :  { %v4802_v38 = vmax.f32 %v1047_v18, 1.0  ;;  %v1497_v41 = vsub.f32 1.0, %v1496_v22  ;;  %vm1501_vm2 = vweird.f32 %v2530_v45  ;;  %v2532_v49 = vpop.eup %2531  ;;  %vm4816_vm1 = vcmp.eq.f32.partialorder %v1504_v37, 8.507059e+37 }
 0x230   :  { %v1475_v29 = vsel %vm4775_vm11, %v2528_v17, %v1471_v8  ;;  %v4821_v17 = vmax.f32 %v1046_v23, 1.0  ;;  %v1482_v9 = vmul.f32 %v2532_v49, %v4721_v55  ;;  %vm1486_vm3 = vweird.f32 %v4721_v55  ;;  %vm4830_vm4 = vmor %vm1500_vm15, %vm1501_vm2 }
 0x231   :  { %v1480_v25 = vsel %vm4781_vm12, %v1479_v6, %v1475_v29  ;;  %2535 = vrcp.f32 %v4802_v38  ;;  %v1498_v34 = vmul.f32 %v2530_v45, %v1497_v41  ;;  %v1492_v40 = vand.u32 2147483648, %v4721_v55 }
 0x232   :  { %2139 = vperm.xlu2 %2480, %v1466_v36   ;;  %2134 = vperm.xlu1 %2479, %v1452_v14   ;;  %v1507_v36 = vor.u32 1.1754944e-38, %v1506_v12  ;;  %v2534_v2 = vpop.eup %2533  ;;  %v1490_v14 = vand.u32 2147483647, %v4721_v55  ;;  %vm1514_vm5 = vweird.f32 %v4742_v60  ;;  %v4837_v6 = vmax.f32 %v1048_v28, 1.0  ;;  %v6575_v55 = vld [vmem:[#allocation27_spill] sm:$0xff] }
 0x233   :  { %2144 = vperm.xlu0 %2478, %v1480_v25   ;;  %v1499_v37 = vadd.f32 %v2530_v45, %v1498_v34  ;;  %v1483_v8 = vsub.f32 1.0, %v1482_v9  ;;  %vm1487_vm6 = vweird.f32 %v2532_v49  ;;  %v1510_v35 = vmul.f32 %v2534_v2, %v4742_v60 }
 0x234   :  { %v4812_v39 = vpop.permute.xlu2 %873  ;;  %v4814_v20 = vpop.permute.xlu1 %853  ;;  %v1518_v22 = vand.u32 2147483647, %v4742_v60  ;;  %v1520_v62 = vand.u32 2147483648, %v4742_v60  ;;  %v1546_v12 = vand.u32 2147483647, %v4802_v38  ;;  %2537 = vrcp.f32 %v4821_v17  ;;  %vm4852_vm8 = vmor %vm1486_vm3, %vm1487_vm6 }
 0x235   :  { %6565 = vst [vmem:[#allocation36_spill] sm:$0xff] %v4812_v39  ;;  %v4823_v53 = vpop.permute.xlu0 %851  ;;  %v1503_v23 = vsel %vm4830_vm4, %v2530_v45, %v1499_v37  ;;  %v1484_v46 = vmul.f32 %v2532_v49, %v1483_v8  ;;  %v1511_v27 = vsub.f32 1.0, %v1510_v35  ;;  %vm1515_vm7 = vweird.f32 %v2534_v2 }
 0x236   :  { %6568 = vst [vmem:[#allocation26_spill] sm:$0xff] %v4823_v53  ;;  %v1508_v41 = vsel %vm4816_vm1, %v1507_v36, %v1503_v23  ;;  %vm4856_vm9 = vcmp.eq.f32.partialorder %v1490_v14, 8.507059e+37  ;;  %v1493_v34 = vor.u32 1.1754944e-38, %v1492_v40  ;;  %2539 = vrcp.f32 %v4837_v6  ;;  %vm4870_vm10 = vmor %vm1514_vm5, %vm1515_vm7 }
 0x237   :  { %v4846_v29 = vpop.eup %2535  ;;  %v1485_v45 = vadd.f32 %v2532_v49, %v1484_v46  ;;  %v1512_v9 = vmul.f32 %v2534_v2, %v1511_v27  ;;  %v1548_v36 = vand.u32 2147483648, %v4802_v38  ;;  %v4866_v18 = vadd.f32 %v3998_v33, %v6575_v55 }
 0x238   :  { %v1538_v7 = vmul.f32 %v4846_v29, %v4802_v38  ;;  %vm4874_vm13 = vcmp.eq.f32.partialorder %v1518_v22, 8.507059e+37  ;;  %v1521_v37 = vor.u32 1.1754944e-38, %v1520_v62  ;;  %vm1542_vm14 = vweird.f32 %v4802_v38  ;;  %v1050_v22 = vld [vmem:[%s6187_s1 + $0xf8] sm:$0xff]  ;;  %v1049_v62 = vld [vmem:[%s6187_s1 + $0xf0] sm:$0xff] }
 0x239   :  { %v1489_v33 = vsel %vm4852_vm8, %v2532_v49, %v1485_v45  ;;  %v1513_v23 = vadd.f32 %v2534_v2, %v1512_v9  ;;  %vm4887_vm0 = vcmp.eq.f32.partialorder %v1546_v12, 8.507059e+37  ;;  %vm1528_vm11 = vweird.f32 %v4821_v17 }
 0x23a   :  { %2154 = vperm.xlu2 %2480, %v1508_v41   ;;  %v2538_v27 = vpop.eup %2537  ;;  %v1494_v49 = vsel %vm4856_vm9, %v1493_v34, %v1489_v33  ;;  %v1539_v41 = vsub.f32 1.0, %v1538_v7  ;;  %vm1543_vm12 = vweird.f32 %v4846_v29  ;;  %v1532_v12 = vand.u32 2147483647, %v4821_v17 }
 0x23b   :  { %2149 = vperm.xlu1 %2479, %v1494_v49   ;;  %v1517_v28 = vsel %vm4870_vm10, %v2534_v2, %v1513_v23  ;;  %v1549_v45 = vor.u32 1.1754944e-38, %v1548_v36  ;;  %v1524_v9 = vmul.f32 %v2538_v27, %v4821_v17  ;;  %v1534_v55 = vand.u32 2147483648, %v4821_v17  ;;  %vm4915_vm15 = vmor %vm1542_vm14, %vm1543_vm12  ;;  %v6586_v23 = vld [vmem:[#allocation39_spill] sm:$0xff] }
 0x23c   :  { %v4878_v8 = vpop.permute.xlu2 %879  ;;  %v4880_v35 = vpop.permute.xlu1 %859  ;;  %v1522_v39 = vsel %vm4874_vm13, %v1521_v37, %v1517_v28  ;;  %v1540_v25 = vmul.f32 %v4846_v29, %v1539_v41  ;;  %v4909_v34 = vmax.f32 %v1050_v22, 1.0  ;;  %v4911_v7 = vmax.f32 %v1049_v62, 1.0  ;;  %v6587_v62 = vld [vmem:[#allocation28_spill] sm:$0xff] }
 0x23d   :  { %6580 = vst [vmem:[#allocation27_spill] sm:$0xff] %v4878_v8  ;;  %v4885_v60 = vpop.permute.xlu0 %857  ;;  %v2540_v8 = vpop.eup %2539  ;;  %2159 = vperm.xlu0 %2478, %v1522_v39   ;;  %v1525_v36 = vsub.f32 1.0, %v1524_v9  ;;  %vm1529_vm2 = vweird.f32 %v2538_v27  ;;  %vm1556_vm1 = vweird.f32 %v4837_v6  ;;  %v1560_v37 = vand.u32 2147483647, %v4837_v6 }
 0x23e   :  { %6581 = vst [vmem:[#allocation64_spill] sm:$0xff] %v4885_v60  ;;  %v1552_v14 = vmul.f32 %v2540_v8, %v4837_v6  ;;  %v1541_v40 = vadd.f32 %v4846_v29, %v1540_v25  ;;  %v1562_v33 = vand.u32 2147483648, %v4837_v6  ;;  %2541 = vrcp.f32 %v4909_v34  ;;  %vm4939_vm4 = vmor %vm1528_vm11, %vm1529_vm2  ;;  %v1052_v6 = vld [vmem:[%s6187_s1 + $0x108] sm:$0xff] }
 0x23f   :  { %v1526_v39 = vmul.f32 %v2538_v27, %v1525_v36  ;;  %vm1557_vm3 = vweird.f32 %v2540_v8  ;;  %2543 = vrcp.f32 %v4911_v7  ;;  %v4928_v22 = vadd.f32 %v4076_v47, %v6586_v23  ;;  %v1051_v47 = vld [vmem:[%s6187_s1 + $0x100] sm:$0xff] }
 0x240   :  { %v1553_v38 = vsub.f32 1.0, %v1552_v14  ;;  %v4932_v49 = vadd.f32 %v4078_v3, %v6587_v62  ;;  %v1545_v41 = vsel %vm4915_vm15, %v4846_v29, %v1541_v40  ;;  %v1535_v9 = vor.u32 1.1754944e-38, %v1534_v55  ;;  %v1053_v55 = vld [vmem:[%s6187_s1 + $0x110] sm:$0xff]  ;;  %v6593_v14 = vld [vmem:[#allocation29_spill] sm:$0xff]  ;;  %v6594_v23 = vld [vmem:[#allocation42_spill] sm:$0xff] }
 0x241   :  { %v1550_v3 = vsel %vm4887_vm0, %v1549_v45, %v1545_v41  ;;  %v1527_v2 = vadd.f32 %v2538_v27, %v1526_v39  ;;  %vm1533_vm5 = vcmp.eq.f32.partialorder %v1532_v12, 8.507059e+37  ;;  %v4959_v40 = vadd.f32 %v4095_v50, %v6593_v14  ;;  %vm4972_vm6 = vmor %vm1556_vm1, %vm1557_vm3 }
 0x242   :  { %v1554_v29 = vmul.f32 %v2540_v8, %v1553_v38  ;;  %v4963_v62 = vadd.f32 %v4181_v54, %v6594_v23  ;;  %2169 = vperm.xlu2 %2480, %v1550_v3   ;;  %v1563_v45 = vor.u32 1.1754944e-38, %v1562_v33  ;;  %vm1561_vm7 = vcmp.eq.f32.partialorder %v1560_v37, 8.507059e+37 }
 0x243   :  { %v1531_v50 = vsel %vm4939_vm4, %v2538_v27, %v1527_v2  ;;  %v4978_v54 = vmax.f32 %v1051_v47, 1.0  ;;  %vm1584_vm8 = vweird.f32 %v4909_v34  ;;  %v1590_v28 = vand.u32 2147483648, %v4909_v34 }
 0x244   :  { %v4943_v25 = vpop.permute.xlu2 %885  ;;  %v4945_v36 = vpop.permute.xlu1 %865  ;;  %v1555_v39 = vadd.f32 %v2540_v8, %v1554_v29  ;;  %v1536_v41 = vsel %vm1533_vm5, %v1535_v9, %v1531_v50  ;;  %vm1570_vm9 = vweird.f32 %v4911_v7  ;;  %v1054_v9 = vld [vmem:[%s6187_s1 + $0x118] sm:$0xff]  ;;  %v1574_v2 = vand.u32 2147483647, %v4911_v7  ;;  %v6600_v50 = vld [vmem:[#allocation35_spill] sm:$0xff] }
 0x245   :  { %6590 = vst [vmem:[#allocation39_spill] sm:$0xff] %v4943_v25  ;;  %v4952_v17 = vpop.permute.xlu0 %863  ;;  %v6595_v25 = vld [vmem:[#allocation34_spill] sm:$0xff]  ;;  %v2542_v38 = vpop.eup %2541  ;;  %2164 = vperm.xlu1 %2479, %v1536_v41   ;;  %2545 = vrcp.f32 %v4978_v54  ;;  %vm1598_vm15 = vweird.f32 %v4978_v54 }
 0x246   :  { %6591 = vst [vmem:[#allocation28_spill] sm:$0xff] %v4945_v36  ;;  %v4967_v46 = vadd.f32 %v4183_v15, %v6595_v25  ;;  %v1588_v15 = vand.u32 2147483647, %v4909_v34  ;;  %v4982_v25 = vmax.f32 %v1053_v55, 1.0  ;;  %v2544_v33 = vpop.eup %2543  ;;  %v1559_v27 = vsel %vm4972_vm6, %v2540_v8, %v1555_v39 }
 0x247   :  { %6592 = vst [vmem:[#allocation65_spill] sm:$0xff] %v4952_v17  ;;  %v1580_v37 = vmul.f32 %v2542_v38, %v4909_v34  ;;  %v1564_v47 = vsel %vm1561_vm7, %v1563_v45, %v1559_v27  ;;  %v1566_v3 = vmul.f32 %v2544_v33, %v4911_v7  ;;  %vm1585_vm10 = vweird.f32 %v2542_v38 }
 0x248   :  { %2174 = vperm.xlu0 %2478, %v1564_v47   ;;  %v1576_v8 = vand.u32 2147483648, %v4911_v7  ;;  %v4999_v55 = vmax.f32 %v1052_v6, 1.0  ;;  %vm1571_vm13 = vweird.f32 %v2544_v33  ;;  %2547 = vrcp.f32 %v4982_v25  ;;  %vm5018_vm14 = vmor %vm1584_vm8, %vm1585_vm10 }
 0x249   :  { %v1581_v29 = vsub.f32 1.0, %v1580_v37  ;;  %v1567_v14 = vsub.f32 1.0, %v1566_v3  ;;  %v5006_v45 = vmax.f32 %v1054_v9, 1.0  ;;  %v5010_v39 = vadd.f32 %v4193_v30, %v6600_v50  ;;  %vm5030_vm11 = vmor %vm1570_vm9, %vm1571_vm13 }
 0x24a   :  { %v1602_v27 = vand.u32 2147483647, %v4978_v54  ;;  %v1604_v6 = vand.u32 2147483648, %v4978_v54  ;;  %vm5022_vm0 = vcmp.eq.f32.partialorder %v1588_v15, 8.507059e+37  ;;  %v1591_v3 = vor.u32 1.1754944e-38, %v1590_v28 }
 0x24b   :  { %v1582_v41 = vmul.f32 %v2542_v38, %v1581_v29  ;;  %v1568_v30 = vmul.f32 %v2544_v33, %v1567_v14  ;;  %v1630_v29 = vand.u32 2147483647, %v4982_v25  ;;  %vm5034_vm12 = vcmp.eq.f32.partialorder %v1574_v2, 8.507059e+37 }
 0x24c   :  { %v5001_v23 = vpop.permute.xlu2 %891  ;;  %v5003_v12 = vpop.permute.xlu1 %871  ;;  %v1577_v15 = vor.u32 1.1754944e-38, %v1576_v8  ;;  %2549 = vrcp.f32 %v4999_v55  ;;  %vm1626_vm2 = vweird.f32 %v4982_v25  ;;  %vm5045_vm1 = vcmp.eq.f32.partialorder %v1602_v27, 8.507059e+37 }
 0x24d   :  { %6598 = vst [vmem:[#allocation29_spill] sm:$0xff] %v5001_v23  ;;  %v5014_v37 = vpop.permute.xlu0 %869  ;;  %v1583_v50 = vadd.f32 %v2542_v38, %v1582_v41  ;;  %v1569_v28 = vadd.f32 %v2544_v33, %v1568_v30  ;;  %2551 = vrcp.f32 %v5006_v45  ;;  %v1605_v8 = vor.u32 1.1754944e-38, %v1604_v6 }
 0x24e   :  { %6599 = vst [vmem:[#allocation42_spill] sm:$0xff] %v5003_v12  ;;  %vm5053_vm3 = vcmp.eq.f32.partialorder %v1630_v29, 8.507059e+37  ;;  %vm1612_vm5 = vweird.f32 %v4999_v55  ;;  %v1616_v23 = vand.u32 2147483647, %v4999_v55  ;;  %vm2405_vm6 = vcmask 31744  }
 0x24f   :  { %6601 = vst [vmem:[#allocation34_spill] sm:$0xff] %v5014_v37  ;;  %v2546_v37 = vpop.eup %2545  ;;  %v1587_v7 = vsel %vm5018_vm14, %v2542_v38, %v1583_v50  ;;  %v1573_v16 = vsel %vm5030_vm11, %v2544_v33, %v1569_v28  ;;  %v1632_v38 = vand.u32 2147483648, %v4982_v25  ;;  %v1618_v33 = vand.u32 2147483648, %v4999_v55 }
 0x250   :  { %v1594_v14 = vmul.f32 %v2546_v37, %v4978_v54  ;;  %v2548_v41 = vpop.eup %2547  ;;  %v1592_v30 = vsel %vm5022_vm0, %v1591_v3, %v1587_v7  ;;  %v1578_v27 = vsel %vm5034_vm12, %v1577_v15, %v1573_v16  ;;  %vm1599_vm4 = vweird.f32 %v2546_v37  ;;  %v1056_v15 = vld [vmem:[%s6187_s1 + $0x128] sm:$0xff]  ;;  %v1055_v7 = vld [vmem:[%s6187_s1 + $0x120] sm:$0xff]  ;;  %v1057_v54 = vld [vmem:[%s6187_s1 + $0x130] sm:$0xff] }
 0x251   :  { %2184 = vperm.xlu2 %2480, %v1592_v30   ;;  %v1622_v6 = vmul.f32 %v2548_v41, %v4982_v25  ;;  %2179 = vperm.xlu1 %2479, %v1578_v27   ;;  %vm1627_vm7 = vweird.f32 %v2548_v41  ;;  %vm5078_vm8 = vmor %vm1598_vm15, %vm1599_vm4  ;;  %v1633_v27 = vor.u32 1.1754944e-38, %v1632_v38  ;;  %vm1640_vm9 = vweird.f32 %v5006_v45  ;;  %v6631_v38 = vld [vmem:[#allocation41_spill] sm:$0xff] }
 0x252   :  { %v1595_v47 = vsub.f32 1.0, %v1594_v14  ;;  %v2550_v29 = vpop.eup %2549  ;;  %vm5097_vm10 = vmor %vm1626_vm2, %vm1627_vm7  ;;  %v5103_v60 = vmax.f32 %v1055_v7, 1.0  ;;  %v5110_v59 = vmax.f32 %v1057_v54, 1.0  ;;  %vm5120_vm11 = vcmp.eq.f32.partialorder %v1616_v23, 8.507059e+37 }
 0x253   :  { %v1623_v28 = vsub.f32 1.0, %v1622_v6  ;;  %v2552_v14 = vpop.eup %2551  ;;  %vm1613_vm13 = vweird.f32 %v2550_v29  ;;  %v1619_v2 = vor.u32 1.1754944e-38, %v1618_v33 }
 0x254   :  { %v2040_v9 = vpop.permute.xlu2 %2039  ;;  %v5064_v3 = vpop.permute.xlu1 %877  ;;  %v1596_v50 = vmul.f32 %v2546_v37, %v1595_v47  ;;  %v1644_v47 = vand.u32 2147483647, %v5006_v45  ;;  %vm1641_vm14 = vweird.f32 %v2552_v14  ;;  %vm5116_vm0 = vmor %vm1612_vm5, %vm1613_vm13  ;;  %vm1682_vm4 = vweird.f32 %v5110_v59 }
 0x255   :  { %6614 = vst [vmem:[#allocation35_spill] sm:$0xff] %v5064_v3  ;;  %v2344_v16 = vmul.f32 %v2040_v9, %v3887_v58  ;;  %v5067_v34 = vpop.permute.xlu0 %875  ;;  %v1608_v58 = vmul.f32 %v2550_v29, %v4999_v55  ;;  %v1624_v9 = vmul.f32 %v2548_v41, %v1623_v28  ;;  %v1646_v3 = vand.u32 2147483648, %v5006_v45  ;;  %vm5128_vm12 = vmor %vm1640_vm9, %vm1641_vm14 }
 0x256   :  { %6615 = vst [vmem:[#allocation66_spill] sm:$0xff] %v5067_v34  ;;  %v1597_v6 = vadd.f32 %v2546_v37, %v1596_v50  ;;  %v1636_v34 = vmul.f32 %v2552_v14, %v5006_v45  ;;  %v5101_v28 = vmax.f32 %v1056_v15, 1.0  ;;  %vm5135_vm15 = vcmp.eq.f32.partialorder %v1644_v47, 8.507059e+37 }
 0x257   :  { %2408 = vst.msk [vmem:[%s6188_s2 + $0x10] sm:$0xff] %vm2405_vm6, %v2344_v16  ;;  %v1609_v50 = vsub.f32 1.0, %v1608_v58  ;;  %v1625_v12 = vadd.f32 %v2548_v41, %v1624_v9  ;;  %v1647_v55 = vor.u32 1.1754944e-38, %v1646_v3  ;;  %v6629_v58 = vld [vmem:[#allocation38_spill] sm:$0xff]  ;;  %v6630_v9 = vld [vmem:[#allocation40_spill] sm:$0xff] }
 0x258   :  { %v1601_v16 = vsel %vm5078_vm8, %v2546_v37, %v1597_v6  ;;  %v1637_v53 = vsub.f32 1.0, %v1636_v34  ;;  %2553 = vrcp.f32 %v5101_v28  ;;  %v1672_v17 = vand.u32 2147483647, %v5101_v28 }
 0x259   :  { %v1606_v36 = vsel %vm5045_vm1, %v1605_v8, %v1601_v16  ;;  %v1610_v25 = vmul.f32 %v2550_v29, %v1609_v50  ;;  %v1629_v15 = vsel %vm5097_vm10, %v2548_v41, %v1625_v12  ;;  %2555 = vrcp.f32 %v5103_v60  ;;  %v1058_v16 = vld [vmem:[%s6187_s1 + $0x138] sm:$0xff] }
 0x25a   :  { %2189 = vperm.xlu0 %2478, %v1606_v36   ;;  %v1638_v8 = vmul.f32 %v2552_v14, %v1637_v53  ;;  %v1634_v34 = vsel %vm5053_vm3, %v1633_v27, %v1629_v15  ;;  %v1674_v45 = vand.u32 2147483648, %v5101_v28  ;;  %v6628_v27 = vld [vmem:[#allocation37_spill] sm:$0xff]  ;;  %v5149_v6 = vadd.f32 %v4257_v42, %v6629_v58 }
 0x25b   :  { %v1611_v30 = vadd.f32 %v2550_v29, %v1610_v25  ;;  %2199 = vperm.xlu2 %2480, %v1634_v34   ;;  %v5145_v3 = vadd.f32 %v4249_v61, %v6628_v27  ;;  %2557 = vrcp.f32 %v5110_v59  ;;  %v5156_v54 = vadd.f32 %v4353_v48, %v6630_v9 }
 0x25c   :  { %v2050_v12 = vpop.permute.xlu2 %2049  ;;  %v5133_v41 = vpop.permute.xlu1 %883  ;;  %v1639_v23 = vadd.f32 %v2552_v14, %v1638_v8  ;;  %v5160_v50 = vadd.f32 %v4368_v44, %v6631_v38  ;;  %vm1668_vm2 = vweird.f32 %v5101_v28  ;;  %vm1654_vm1 = vweird.f32 %v5103_v60 }
 0x25d   :  { %v5141_v33 = vpop.permute.xlu0 %881  ;;  %v1615_v47 = vsel %vm5116_vm0, %v2550_v29, %v1611_v30  ;;  %v1059_v29 = vld [vmem:[%s6187_s1 + $0x140] sm:$0xff]  ;;  %v2346_v25 = vmul.f32 %v2050_v12, %v3996_v56  ;;  %vm5178_vm3 = vcmp.eq.f32.partialorder %v1672_v17, 8.507059e+37  ;;  %v1675_v7 = vor.u32 1.1754944e-38, %v1674_v45 }
 0x25e   :  { %v1620_v61 = vsel %vm5120_vm11, %v1619_v2, %v1615_v47  ;;  %v1643_v42 = vsel %vm5128_vm12, %v2552_v14, %v1639_v23  ;;  %v2554_v48 = vpop.eup %2553  ;;  %v1658_v37 = vand.u32 2147483647, %v5103_v60  ;;  %v1060_v2 = vld [vmem:[%s6187_s1 + $0x148] sm:$0xff]  ;;  %v1660_v34 = vand.u32 2147483648, %v5103_v60 }
 0x25f   :  { %2194 = vperm.xlu1 %2479, %v1620_v61   ;;  %v1648_v44 = vsel %vm5135_vm15, %v1647_v55, %v1643_v42  ;;  %v1664_v14 = vmul.f32 %v2554_v48, %v5101_v28  ;;  %v2556_v8 = vpop.eup %2555  ;;  %2410 = vst.msk [vmem:[%s6188_s2 + $0x20] sm:$0xff] %vm2405_vm6, %v2346_v25  ;;  %v5192_v56 = vmax.f32 %v1059_v29, 1.0  ;;  %v5194_v30 = vmax.f32 %v1058_v16, 1.0 }
 0x260   :  { %vm1669_vm5 = vweird.f32 %v2554_v48  ;;  %v1650_v55 = vmul.f32 %v2556_v8, %v5103_v60  ;;  %v1686_v12 = vand.u32 2147483647, %v5110_v59  ;;  %vm1655_vm7 = vweird.f32 %v2556_v8  ;;  %v1068_v60 = vld [vmem:[%s6187_s1 + $0x188] sm:$0xff] }
 0x261   :  { %v1665_v36 = vsub.f32 1.0, %v1664_v14  ;;  %v2558_v23 = vpop.eup %2557  ;;  %v1688_v53 = vand.u32 2147483648, %v5110_v59  ;;  %2559 = vrcp.f32 %v5192_v56  ;;  %v5200_v17 = vmax.f32 %v1060_v2, 1.0  ;;  %vm5211_vm8 = vmor %vm1668_vm2, %vm1669_vm5 }
 0x262   :  { %2204 = vperm.xlu0 %2478, %v1648_v44   ;;  %v1651_v47 = vsub.f32 1.0, %v1650_v55  ;;  %v1678_v9 = vmul.f32 %v2558_v23, %v5110_v59  ;;  %v1714_v38 = vand.u32 2147483647, %v5192_v56  ;;  %vm5215_vm9 = vcmp.eq.f32.partialorder %v1658_v37, 8.507059e+37  ;;  %vm5224_vm13 = vmor %vm1654_vm1, %vm1655_vm7  ;;  %v1062_v59 = vld [vmem:[%s6187_s1 + $0x158] sm:$0xff] }
 0x263   :  { %v1666_v58 = vmul.f32 %v2554_v48, %v1665_v36  ;;  %v1661_v16 = vor.u32 1.1754944e-38, %v1660_v34  ;;  %v1716_v44 = vand.u32 2147483648, %v5192_v56  ;;  %2561 = vrcp.f32 %v5194_v30 }
 0x264   :  { %v2065_v45 = vpop.permute.xlu2 %2064  ;;  %v5202_v27 = vpop.permute.xlu1 %889  ;;  %v1652_v14 = vmul.f32 %v2556_v8, %v1651_v47  ;;  %v1679_v2 = vsub.f32 1.0, %v1678_v9  ;;  %vm1683_vm10 = vweird.f32 %v2558_v23  ;;  %vm5228_vm14 = vcmp.eq.f32.partialorder %v1686_v12, 8.507059e+37 }
 0x265   :  { %v5206_v61 = vpop.permute.xlu0 %887  ;;  %v1667_v25 = vadd.f32 %v2554_v48, %v1666_v58  ;;  %v1689_v34 = vor.u32 1.1754944e-38, %v1688_v53  ;;  %vm1710_vm0 = vweird.f32 %v5192_v56  ;;  %2563 = vrcp.f32 %v5200_v17  ;;  %vm5244_vm12 = vmor %vm1682_vm4, %vm1683_vm10 }
 0x266   :  { %6634 = vst [vmem:[#allocation37_spill] sm:$0xff] %v5206_v61  ;;  %v1653_v55 = vadd.f32 %v2556_v8, %v1652_v14  ;;  %v1680_v58 = vmul.f32 %v2558_v23, %v1679_v2  ;;  %vm5236_vm11 = vcmp.eq.f32.partialorder %v1714_v38, 8.507059e+37  ;;  %v1717_v9 = vor.u32 1.1754944e-38, %v1716_v44 }
 0x267   :  { %v1671_v36 = vsel %vm5211_vm8, %v2554_v48, %v1667_v25  ;;  %v2560_v47 = vpop.eup %2559  ;;  %vm1696_vm15 = vweird.f32 %v5194_v30  ;;  %v1700_v48 = vand.u32 2147483647, %v5194_v30  ;;  %v1702_v15 = vand.u32 2147483648, %v5194_v30 }
 0x268   :  { %v1676_v12 = vsel %vm5178_vm3, %v1675_v7, %v1671_v36  ;;  %v1657_v38 = vsel %vm5224_vm13, %v2556_v8, %v1653_v55  ;;  %v1681_v42 = vadd.f32 %v2558_v23, %v1680_v58  ;;  %v1706_v25 = vmul.f32 %v2560_v47, %v5192_v56  ;;  %v1061_v7 = vld [vmem:[%s6187_s1 + $0x150] sm:$0xff]  ;;  %v1063_v56 = vld [vmem:[%s6187_s1 + $0x160] sm:$0xff] }
 0x269   :  { %2214 = vperm.xlu2 %2480, %v1676_v12   ;;  %v2562_v44 = vpop.eup %2561  ;;  %v1662_v14 = vsel %vm5215_vm9, %v1661_v16, %v1657_v38  ;;  %vm1724_vm2 = vweird.f32 %v5200_v17  ;;  %v1728_v8 = vand.u32 2147483647, %v5200_v17  ;;  %v2349_v2 = vmul.f32 %v2065_v45, %v4749_v21 }
 0x26a   :  { %2209 = vperm.xlu1 %2479, %v1662_v14   ;;  %v1685_v28 = vsel %vm5244_vm12, %v2558_v23, %v1681_v42  ;;  %v1707_v36 = vsub.f32 1.0, %v1706_v25  ;;  %vm1711_vm1 = vweird.f32 %v2560_v47  ;;  %v1692_v55 = vmul.f32 %v2562_v44, %v5194_v30 }
 0x26b   :  { %v2564_v61 = vpop.eup %2563  ;;  %v1690_v29 = vsel %vm5228_vm14, %v1689_v34, %v1685_v28  ;;  %v1730_v16 = vand.u32 2147483648, %v5200_v17  ;;  %2413 = vst.msk [vmem:[%s6188_s2 + $0x38] sm:$0xff] %vm2405_vm6, %v2349_v2  ;;  %v5275_v21 = vmax.f32 %v1062_v59, 1.0  ;;  %v5277_v23 = vmax.f32 %v1061_v7, 1.0  ;;  %vm5283_vm4 = vmor %vm1710_vm0, %vm1711_vm1 }
 0x26c   :  { %v2080_v58 = vpop.permute.xlu2 %2079  ;;  %v2035_v12 = vpop.permute.xlu1 %2034  ;;  %2219 = vperm.xlu0 %2478, %v1690_v29   ;;  %v1708_v53 = vmul.f32 %v2560_v47, %v1707_v36  ;;  %v1693_v38 = vsub.f32 1.0, %v1692_v55  ;;  %vm1697_vm3 = vweird.f32 %v2562_v44  ;;  %v1720_v42 = vmul.f32 %v2564_v61, %v5200_v17  ;;  %v6659_v17 = vld [vmem:[#allocation54_spill] sm:$0xff] }
 0x26d   :  { %v2030_v45 = vpop.permute.xlu0 %2029  ;;  %vm5287_vm5 = vcmp.eq.f32.partialorder %v1700_v48, 8.507059e+37  ;;  %vm1725_vm7 = vweird.f32 %v2564_v61  ;;  %2565 = vrcp.f32 %v5275_v21  ;;  %v1756_v25 = vand.u32 2147483647, %v5275_v21  ;;  %vm5299_vm8 = vmor %vm1696_vm15, %vm1697_vm3 }
 0x26e   :  { %v1709_v59 = vadd.f32 %v2560_v47, %v1708_v53  ;;  %v1694_v7 = vmul.f32 %v2562_v44, %v1693_v38  ;;  %v1721_v14 = vsub.f32 1.0, %v1720_v42  ;;  %2567 = vrcp.f32 %v5277_v23  ;;  %vm5316_vm10 = vmor %vm1724_vm2, %vm1725_vm7 }
 0x26f   :  { %v1703_v2 = vor.u32 1.1754944e-38, %v1702_v15  ;;  %vm5303_vm9 = vcmp.eq.f32.partialorder %v1728_v8, 8.507059e+37  ;;  %v1731_v36 = vor.u32 1.1754944e-38, %v1730_v16  ;;  %v1758_v55 = vand.u32 2147483648, %v5275_v21  ;;  %v6662_v15 = vld [vmem:[#allocation25_spill] sm:$0xff] }
 0x270   :  { %v1713_v29 = vsel %vm5283_vm4, %v2560_v47, %v1709_v59  ;;  %v1695_v53 = vadd.f32 %v2562_v44, %v1694_v7  ;;  %v1722_v38 = vmul.f32 %v2564_v61, %v1721_v14  ;;  %v1742_v42 = vand.u32 2147483647, %v5277_v23 }
 0x271   :  { %v1718_v30 = vsel %vm5236_vm11, %v1717_v9, %v1713_v29  ;;  %vm1752_vm13 = vweird.f32 %v5275_v21  ;;  %v5321_v8 = vmax.f32 %v1063_v56, 1.0  ;;  %v2352_v47 = vmul.f32 %v2080_v58, %v4762_v4  ;;  %v1065_v4 = vld [vmem:[%s6187_s1 + $0x170] sm:$0xff]  ;;  %v1064_v56 = vld [vmem:[%s6187_s1 + $0x168] sm:$0xff] }
 0x272   :  { %2229 = vperm.xlu2 %2480, %v1718_v30   ;;  %v1699_v16 = vsel %vm5299_vm8, %v2562_v44, %v1695_v53  ;;  %v1723_v37 = vadd.f32 %v2564_v61, %v1722_v38  ;;  %vm5326_vm14 = vcmp.eq.f32.partialorder %v1756_v25, 8.507059e+37  ;;  %v2343_v9 = vmul.f32 %v2035_v12, %v6659_v17  ;;  %v1066_v53 = vld [vmem:[%s6187_s1 + $0x178] sm:$0xff] }
 0x273   :  { %v2566_v59 = vpop.eup %2565  ;;  %v1704_v7 = vsel %vm5287_vm5, %v1703_v2, %v1699_v16  ;;  %v1759_v14 = vor.u32 1.1754944e-38, %v1758_v55  ;;  %vm1738_vm0 = vweird.f32 %v5277_v23  ;;  %2569 = vrcp.f32 %v5321_v8  ;;  %2416 = vst.msk [vmem:[%s6188_s2 + $0x50] sm:$0xff] %vm2405_vm6, %v2352_v47 }
 0x274   :  { %v2568_v44 = vpop.eup %2567  ;;  %2224 = vperm.xlu1 %2479, %v1704_v7   ;;  %v1727_v58 = vsel %vm5316_vm10, %v2564_v61, %v1723_v37  ;;  %v1748_v12 = vmul.f32 %v2566_v59, %v5275_v21  ;;  %vm5345_vm11 = vcmp.eq.f32.partialorder %v1742_v42, 8.507059e+37  ;;  %v1744_v25 = vand.u32 2147483648, %v5277_v23  ;;  %2407 = vst.msk [vmem:[%s6188_s2 + $0x8] sm:$0xff] %vm2405_vm6, %v2343_v9  ;;  %v2095_v48 = vpop.permute.xlu2 %2094  ;;  %v6674_v21 = vld [vmem:[#allocation48_spill] sm:$0xff] }
 0x275   :  { %v2045_v2 = vpop.permute.xlu1 %2044  ;;  %v1732_v61 = vsel %vm5303_vm9, %v1731_v36, %v1727_v58  ;;  %vm1753_vm12 = vweird.f32 %v2566_v59  ;;  %v1734_v55 = vmul.f32 %v2568_v44, %v5277_v23  ;;  %v1770_v29 = vand.u32 2147483647, %v5321_v8  ;;  %v2055_v38 = vpop.permute.xlu0 %2054 }
 0x276   :  { %2234 = vperm.xlu0 %2478, %v1732_v61   ;;  %v1749_v42 = vsub.f32 1.0, %v1748_v12  ;;  %v1772_v30 = vand.u32 2147483648, %v5321_v8  ;;  %v2342_v47 = vmul.f32 %v2030_v45, %v6662_v15  ;;  %v5366_v16 = vmax.f32 %v1065_v4, 1.0  ;;  %vm5381_vm2 = vmor %vm1752_vm13, %vm1753_vm12 }
 0x277   :  { %v1735_v28 = vsub.f32 1.0, %v1734_v55  ;;  %vm1739_vm15 = vweird.f32 %v2568_v44  ;;  %v5368_v36 = vmax.f32 %v1064_v56, 1.0  ;;  %v2355_v37 = vmul.f32 %v2095_v48, %v4800_v1 }
 0x278   :  { %v1750_v17 = vmul.f32 %v2566_v59, %v1749_v42  ;;  %v1745_v9 = vor.u32 1.1754944e-38, %v1744_v25  ;;  %2406 = vst.msk [vmem:[%s6188_s2] sm:$0xff] %vm2405_vm6, %v2342_v47  ;;  %2571 = vrcp.f32 %v5366_v16  ;;  %v5376_v7 = vmax.f32 %v1066_v53, 1.0  ;;  %vm5395_vm3 = vmor %vm1738_vm0, %vm1739_vm15 }
 0x279   :  { %v2570_v45 = vpop.eup %2569  ;;  %v1736_v1 = vmul.f32 %v2568_v44, %v1735_v28  ;;  %vm1766_vm1 = vweird.f32 %v5321_v8  ;;  %v1798_v58 = vand.u32 2147483647, %v5366_v16  ;;  %2573 = vrcp.f32 %v5368_v36  ;;  %2419 = vst.msk [vmem:[%s6188_s2 + $0x68] sm:$0xff] %vm2405_vm6, %v2355_v37 }
 0x27a   :  { %v1751_v12 = vadd.f32 %v2566_v59, %v1750_v17  ;;  %v1762_v25 = vmul.f32 %v2570_v45, %v5321_v8  ;;  %vm5400_vm4 = vcmp.eq.f32.partialorder %v1770_v29, 8.507059e+37  ;;  %v1800_v48 = vand.u32 2147483648, %v5366_v16 }
 0x27b   :  { %v1737_v61 = vadd.f32 %v2568_v44, %v1736_v1  ;;  %vm1767_vm5 = vweird.f32 %v2570_v45  ;;  %v1773_v55 = vor.u32 1.1754944e-38, %v1772_v30  ;;  %vm1794_vm7 = vweird.f32 %v5366_v16 }
 0x27c   :  { %v1755_v23 = vsel %vm5381_vm2, %v2566_v59, %v1751_v12  ;;  %v1763_v53 = vsub.f32 1.0, %v1762_v25  ;;  %v1786_v42 = vand.u32 2147483648, %v5368_v36  ;;  %2575 = vrcp.f32 %v5376_v7  ;;  %vm5433_vm10 = vmor %vm1766_vm1, %vm1767_vm5 }
 0x27d   :  { %v1760_v29 = vsel %vm5326_vm14, %v1759_v14, %v1755_v23  ;;  %v1741_v15 = vsel %vm5395_vm3, %v2568_v44, %v1737_v61  ;;  %vm5414_vm8 = vcmp.eq.f32.partialorder %v1798_v58, 8.507059e+37  ;;  %vm1780_vm9 = vweird.f32 %v5368_v36  ;;  %v1067_v14 = vld [vmem:[%s6187_s1 + $0x180] sm:$0xff]  ;;  %v2110_v44 = vpop.permute.xlu2 %2109  ;;  %v5428_v4 = vpop.permute.xlu1 %2059  ;;  %v6673_v58 = vld [vmem:[#allocation56_spill] sm:$0xff] }
 0x27e   :  { %v2572_v30 = vpop.eup %2571  ;;  %2244 = vperm.xlu2 %2480, %v1760_v29   ;;  %v1746_v59 = vsel %vm5345_vm11, %v1745_v9, %v1741_v15  ;;  %v1764_v28 = vmul.f32 %v2570_v45, %v1763_v53  ;;  %v1801_v37 = vor.u32 1.1754944e-38, %v1800_v48  ;;  %v1784_v17 = vand.u32 2147483647, %v5368_v36  ;;  %v2070_v48 = vpop.permute.xlu0 %2069 }
 0x27f   :  { %v2574_v1 = vpop.eup %2573  ;;  %2239 = vperm.xlu1 %2479, %v1746_v59   ;;  %v1790_v9 = vmul.f32 %v2572_v30, %v5366_v16  ;;  %vm1808_vm13 = vweird.f32 %v5376_v7  ;;  %v2345_v12 = vmul.f32 %v2045_v2, %v6673_v58  ;;  %v2347_v25 = vmul.f32 %v2055_v38, %v6674_v21  ;;  %v1069_v2 = vld [vmem:[%s6187_s1 + $0x190] sm:$0xff]  ;;  %v6679_v21 = vld [vmem:[#allocation43_spill] sm:$0xff] }
 0x280   :  { %v1765_v61 = vadd.f32 %v2570_v45, %v1764_v28  ;;  %v1776_v23 = vmul.f32 %v2574_v1, %v5368_v36  ;;  %v1787_v53 = vor.u32 1.1754944e-38, %v1786_v42  ;;  %v1812_v29 = vand.u32 2147483647, %v5376_v7 }
 0x281   :  { %v1791_v8 = vsub.f32 1.0, %v1790_v9  ;;  %vm1795_vm14 = vweird.f32 %v2572_v30  ;;  %2409 = vst.msk [vmem:[%s6188_s2 + $0x18] sm:$0xff] %vm2405_vm6, %v2345_v12  ;;  %v5447_v15 = vmax.f32 %v1068_v60, 1.0  ;;  %v5449_v59 = vmax.f32 %v1067_v14, 1.0 }
 0x282   :  { %v2576_v38 = vpop.eup %2575  ;;  %v1769_v42 = vsel %vm5433_vm10, %v2570_v45, %v1765_v61  ;;  %v1777_v28 = vsub.f32 1.0, %v1776_v23  ;;  %vm1781_vm0 = vweird.f32 %v2574_v1  ;;  %2411 = vst.msk [vmem:[%s6188_s2 + $0x28] sm:$0xff] %vm2405_vm6, %v2347_v25  ;;  %v2358_v60 = vmul.f32 %v2110_v44, %v4932_v49  ;;  %vm5468_vm11 = vmor %vm1794_vm7, %vm1795_vm14  ;;  %v6686_v45 = vld [vmem:[#allocation50_spill] sm:$0xff] }
 0x283   :  { %v1774_v14 = vsel %vm5400_vm4, %v1773_v55, %v1769_v42  ;;  %v1792_v9 = vmul.f32 %v2572_v30, %v1791_v8  ;;  %v1804_v58 = vmul.f32 %v2576_v38, %v5376_v7  ;;  %v1814_v12 = vand.u32 2147483648, %v5376_v7  ;;  %vm5482_vm15 = vmor %vm1780_vm9, %vm1781_vm0 }
 0x284   :  { %2249 = vperm.xlu0 %2478, %v1774_v14   ;;  %v1778_v34 = vmul.f32 %v2574_v1, %v1777_v28  ;;  %vm1809_vm12 = vweird.f32 %v2576_v38  ;;  %2577 = vrcp.f32 %v5447_v15  ;;  %v5473_v49 = vmax.f32 %v1069_v2, 1.0  ;;  %2422 = vst.msk [vmem:[%s6188_s2 + $0x80] sm:$0xff] %vm2405_vm6, %v2358_v60 }
 0x285   :  { %v1793_v56 = vadd.f32 %v2572_v30, %v1792_v9  ;;  %v1805_v55 = vsub.f32 1.0, %v1804_v58  ;;  %v1840_v44 = vand.u32 2147483647, %v5447_v15  ;;  %2579 = vrcp.f32 %v5449_v59  ;;  %vm5506_vm3 = vmor %vm1808_vm13, %vm1809_vm12  ;;  %v5515_v47 = vpop.permute.xlu2 %2124 }
 0x286   :  { %v5490_v25 = vadd.f32 %v4424_v52, %v6679_v21  ;;  %v1779_v61 = vadd.f32 %v2574_v1, %v1778_v34  ;;  %vm1785_vm2 = vcmp.eq.f32.partialorder %v1784_v17, 8.507059e+37  ;;  %v1842_v23 = vand.u32 2147483648, %v5447_v15  ;;  %v5524_v14 = vpop.permute.xlu0 %2084  ;;  %v1070_v21 = vld [vmem:[%s6187_s1 + $0x198] sm:$0xff] }
 0x287   :  { %v1797_v36 = vsel %vm5468_vm11, %v2572_v30, %v1793_v56  ;;  %v1806_v8 = vmul.f32 %v2576_v38, %v1805_v55  ;;  %vm5495_vm1 = vcmp.eq.f32.partialorder %v1812_v29, 8.507059e+37  ;;  %v1815_v42 = vor.u32 1.1754944e-38, %v1814_v12  ;;  %v1071_v29 = vld [vmem:[%s6187_s1 + $0x1a0] sm:$0xff] }
 0x288   :  { %v1802_v28 = vsel %vm5414_vm8, %v1801_v37, %v1797_v36  ;;  %v1783_v52 = vsel %vm5482_vm15, %v2574_v1, %v1779_v61  ;;  %v1826_v30 = vand.u32 2147483647, %v5449_v59  ;;  %2581 = vrcp.f32 %v5473_v49  ;;  %v5517_v37 = vpop.permute.xlu1 %2074 }
 0x289   :  { %2259 = vperm.xlu2 %2480, %v1802_v28   ;;  %v1788_v1 = vsel %vm1785_vm2, %v1787_v53, %v1783_v52  ;;  %v1807_v60 = vadd.f32 %v2576_v38, %v1806_v8  ;;  %vm1836_vm4 = vweird.f32 %v5447_v15  ;;  %vm5520_vm5 = vcmp.eq.f32.partialorder %v1840_v44, 8.507059e+37 }
 0x28a   :  { %v2578_v9 = vpop.eup %2577  ;;  %2254 = vperm.xlu1 %2479, %v1788_v1   ;;  %v1843_v58 = vor.u32 1.1754944e-38, %v1842_v23  ;;  %vm1822_vm7 = vweird.f32 %v5449_v59  ;;  %v2348_v12 = vmul.f32 %v5428_v4, %v4753_v51  ;;  %v2350_v34 = vmul.f32 %v2070_v48, %v6686_v45 }
 0x28b   :  { %v2580_v53 = vpop.eup %2579  ;;  %v1811_v56 = vsel %vm5506_vm3, %v2576_v38, %v1807_v60  ;;  %v1832_v16 = vmul.f32 %v2578_v9, %v5447_v15  ;;  %v1828_v55 = vand.u32 2147483648, %v5449_v59  ;;  %v5534_v44 = vmax.f32 %v1071_v29, 1.0  ;;  %v1072_v38 = vld [vmem:[%s6187_s1 + $0x1a8] sm:$0xff] }
 0x28c   :  { %v1816_v61 = vsel %vm5495_vm1, %v1815_v42, %v1811_v56  ;;  %v1818_v51 = vmul.f32 %v2580_v53, %v5449_v59  ;;  %vm5542_vm8 = vcmp.eq.f32.partialorder %v1826_v30, 8.507059e+37  ;;  %v1854_v48 = vand.u32 2147483647, %v5473_v49  ;;  %2412 = vst.msk [vmem:[%s6188_s2 + $0x30] sm:$0xff] %vm2405_vm6, %v2348_v12 }
 0x28d   :  { %2264 = vperm.xlu0 %2478, %v1816_v61   ;;  %v1833_v23 = vsub.f32 1.0, %v1832_v16  ;;  %vm1837_vm9 = vweird.f32 %v2578_v9  ;;  %v1856_v36 = vand.u32 2147483648, %v5473_v49  ;;  %2414 = vst.msk [vmem:[%s6188_s2 + $0x40] sm:$0xff] %vm2405_vm6, %v2350_v34  ;;  %2583 = vrcp.f32 %v5534_v44 }
 0x28e   :  { %v2582_v8 = vpop.eup %2581  ;;  %v1819_v2 = vsub.f32 1.0, %v1818_v51  ;;  %vm1823_vm10 = vweird.f32 %v2580_v53  ;;  %v1882_v42 = vand.u32 2147483647, %v5534_v44  ;;  %v5561_v28 = vmax.f32 %v1070_v21, 1.0  ;;  %vm5569_vm13 = vmor %vm1836_vm4, %vm1837_vm9 }
 0x28f   :  { %v1834_v52 = vmul.f32 %v2578_v9, %v1833_v23  ;;  %v1846_v17 = vmul.f32 %v2582_v8, %v5473_v49  ;;  %v1884_v30 = vand.u32 2147483648, %v5534_v44  ;;  %v5565_v29 = vmax.f32 %v1072_v38, 1.0  ;;  %vm5577_vm0 = vmor %vm1822_vm7, %vm1823_vm10 }
 0x290   :  { %v1820_v60 = vmul.f32 %v2580_v53, %v1819_v2  ;;  %v1829_v12 = vor.u32 1.1754944e-38, %v1828_v55  ;;  %vm1850_vm14 = vweird.f32 %v5473_v49  ;;  %2585 = vrcp.f32 %v5561_v28  ;;  %v5587_v55 = vpop.permute.xlu2 %2139  ;;  %v5589_v61 = vpop.permute.xlu1 %2089  ;;  %v1074_v49 = vld [vmem:[%s6187_s1 + $0x1b8] sm:$0xff] }
 0x291   :  { %v1835_v45 = vadd.f32 %v2578_v9, %v1834_v52  ;;  %v1847_v56 = vsub.f32 1.0, %v1846_v17  ;;  %vm1851_vm11 = vweird.f32 %v2582_v8  ;;  %vm5581_vm12 = vcmp.eq.f32.partialorder %v1854_v48, 8.507059e+37  ;;  %v5597_v2 = vpop.permute.xlu0 %2099 }
 0x292   :  { %v1821_v16 = vadd.f32 %v2580_v53, %v1820_v60  ;;  %v1857_v21 = vor.u32 1.1754944e-38, %v1856_v36  ;;  %vm1878_vm15 = vweird.f32 %v5534_v44  ;;  %2587 = vrcp.f32 %v5565_v29  ;;  %vm5606_vm1 = vmor %vm1850_vm14, %vm1851_vm11 }
 0x293   :  { %v2584_v59 = vpop.eup %2583  ;;  %v1839_v51 = vsel %vm5569_vm13, %v2578_v9, %v1835_v45  ;;  %v1848_v38 = vmul.f32 %v2582_v8, %v1847_v56  ;;  %vm5593_vm2 = vcmp.eq.f32.partialorder %v1882_v42, 8.507059e+37  ;;  %v1885_v23 = vor.u32 1.1754944e-38, %v1884_v30  ;;  %v6699_v56 = vld [vmem:[#allocation53_spill] sm:$0xff] }
 0x294   :  { %v1844_v36 = vsel %vm5520_vm5, %v1843_v58, %v1839_v51  ;;  %v1825_v52 = vsel %vm5577_vm0, %v2580_v53, %v1821_v16  ;;  %v1874_v9 = vmul.f32 %v2584_v59, %v5534_v44  ;;  %vm1864_vm3 = vweird.f32 %v5561_v28 }
 0x295   :  { %2274 = vperm.xlu2 %2480, %v1844_v36   ;;  %v1830_v42 = vsel %vm5542_vm8, %v1829_v12, %v1825_v52  ;;  %v1849_v7 = vadd.f32 %v2582_v8, %v1848_v38  ;;  %v1868_v58 = vand.u32 2147483647, %v5561_v28  ;;  %v1870_v53 = vand.u32 2147483648, %v5561_v28  ;;  %v1073_v12 = vld [vmem:[%s6187_s1 + $0x1b0] sm:$0xff] }
 0x296   :  { %v2586_v30 = vpop.eup %2585  ;;  %2269 = vperm.xlu1 %2479, %v1830_v42   ;;  %v1875_v1 = vsub.f32 1.0, %v1874_v9  ;;  %vm1879_vm4 = vweird.f32 %v2584_v59  ;;  %v2361_v60 = vmul.f32 %v5515_v47, %v4967_v46  ;;  %v2351_v4 = vmul.f32 %v5517_v37, %v4792_v11  ;;  %v1075_v9 = vld [vmem:[%s6187_s1 + $0x1c0] sm:$0xff] }
 0x297   :  { %v1853_v45 = vsel %vm5606_vm1, %v2582_v8, %v1849_v7  ;;  %v1860_v34 = vmul.f32 %v2586_v30, %v5561_v28  ;;  %vm1892_vm5 = vweird.f32 %v5565_v29  ;;  %v2353_v16 = vmul.f32 %v5524_v14, %v6699_v56  ;;  %vm5644_vm7 = vmor %vm1878_vm15, %vm1879_vm4 }
 0x298   :  { %v2588_v51 = vpop.eup %2587  ;;  %v1858_v46 = vsel %vm5581_vm12, %v1857_v21, %v1853_v45  ;;  %v1876_v47 = vmul.f32 %v2584_v59, %v1875_v1  ;;  %v1896_v11 = vand.u32 2147483647, %v5565_v29  ;;  %2425 = vst.msk [vmem:[%s6188_s2 + $0x98] sm:$0xff] %vm2405_vm6, %v2361_v60  ;;  %v5639_v37 = vmax.f32 %v1074_v49, 1.0  ;;  %v2155_v60 = vpop.permute.xlu2 %2154 }
 0x299   :  { %2279 = vperm.xlu0 %2478, %v1858_v46   ;;  %v1861_v8 = vsub.f32 1.0, %v1860_v34  ;;  %vm1865_vm8 = vweird.f32 %v2586_v30  ;;  %v1888_v15 = vmul.f32 %v2588_v51, %v5565_v29  ;;  %2415 = vst.msk [vmem:[%s6188_s2 + $0x48] sm:$0xff] %vm2405_vm6, %v2351_v4  ;;  %v5653_v21 = vmax.f32 %v1073_v12, 1.0  ;;  %v5683_v4 = vpop.permute.xlu1 %2104  ;;  %v5688_v34 = vpop.permute.xlu0 %2114 }
 0x29a   :  { %v1877_v38 = vadd.f32 %v2584_v59, %v1876_v47  ;;  %vm5655_vm9 = vcmp.eq.f32.partialorder %v1868_v58, 8.507059e+37  ;;  %v1898_v44 = vand.u32 2147483648, %v5565_v29  ;;  %2417 = vst.msk [vmem:[%s6188_s2 + $0x58] sm:$0xff] %vm2405_vm6, %v2353_v16  ;;  %2589 = vrcp.f32 %v5639_v37  ;;  %vm5674_vm13 = vmor %vm1864_vm3, %vm1865_vm8  ;;  %v6710_v29 = vld [vmem:[#allocation55_spill] sm:$0xff] }
 0x29b   :  { %v1862_v52 = vmul.f32 %v2586_v30, %v1861_v8  ;;  %v1889_v17 = vsub.f32 1.0, %v1888_v15  ;;  %vm1893_vm10 = vweird.f32 %v2588_v51  ;;  %2591 = vrcp.f32 %v5653_v21 }
 0x29c   :  { %v1881_v42 = vsel %vm5644_vm7, %v2584_v59, %v1877_v38  ;;  %v1871_v58 = vor.u32 1.1754944e-38, %v1870_v53  ;;  %vm5678_vm14 = vcmp.eq.f32.partialorder %v1896_v11, 8.507059e+37  ;;  %v1924_v1 = vand.u32 2147483647, %v5639_v37  ;;  %vm5693_vm0 = vmor %vm1892_vm5, %vm1893_vm10 }
 0x29d   :  { %v1886_v59 = vsel %vm5593_vm2, %v1885_v23, %v1881_v42  ;;  %v1863_v12 = vadd.f32 %v2586_v30, %v1862_v52  ;;  %v1890_v45 = vmul.f32 %v2588_v51, %v1889_v17  ;;  %v1926_v28 = vand.u32 2147483648, %v5639_v37 }
 0x29e   :  { %2289 = vperm.xlu2 %2480, %v1886_v59   ;;  %v1899_v56 = vor.u32 1.1754944e-38, %v1898_v44  ;;  %vm1920_vm11 = vweird.f32 %v5639_v37  ;;  %v5698_v16 = vmax.f32 %v1075_v9, 1.0  ;;  %v2364_v48 = vmul.f32 %v5587_v55, %v5145_v3  ;;  %v1076_v3 = vld [vmem:[%s6187_s1 + $0x1c8] sm:$0xff] }
 0x29f   :  { %v1867_v23 = vsel %vm5674_vm13, %v2586_v30, %v1863_v12  ;;  %v1891_v46 = vadd.f32 %v2588_v51, %v1890_v45  ;;  %v2354_v47 = vmul.f32 %v5589_v61, %v4866_v18  ;;  %v2356_v11 = vmul.f32 %v5597_v2, %v6710_v29  ;;  %v1077_v18 = vld [vmem:[%s6187_s1 + $0x1d0] sm:$0xff] }
 0x2a0   :  { %v2590_v14 = vpop.eup %2589  ;;  %v1872_v8 = vsel %vm5655_vm9, %v1871_v58, %v1867_v23  ;;  %vm5710_vm12 = vcmp.eq.f32.partialorder %v1924_v1, 8.507059e+37  ;;  %vm1906_vm15 = vweird.f32 %v5653_v21  ;;  %2593 = vrcp.f32 %v5698_v16  ;;  %2428 = vst.msk [vmem:[%s6188_s2 + $0xb0] sm:$0xff] %vm2405_vm6, %v2364_v48 }
 0x2a1   :  { %v2592_v55 = vpop.eup %2591  ;;  %2284 = vperm.xlu1 %2479, %v1872_v8   ;;  %v1895_v61 = vsel %vm5693_vm0, %v2588_v51, %v1891_v46  ;;  %v1916_v2 = vmul.f32 %v2590_v14, %v5639_v37  ;;  %v1927_v30 = vor.u32 1.1754944e-38, %v1926_v28  ;;  %v1910_v38 = vand.u32 2147483647, %v5653_v21  ;;  %2418 = vst.msk [vmem:[%s6188_s2 + $0x60] sm:$0xff] %vm2405_vm6, %v2354_v47  ;;  %v1078_v51 = vld [vmem:[%s6187_s1 + $0x1d8] sm:$0xff]  ;;  %v5774_v48 = vpop.permute.xlu1 %2119 }
 0x2a2   :  { %v1900_v36 = vsel %vm5678_vm14, %v1899_v56, %v1895_v61  ;;  %vm1921_vm2 = vweird.f32 %v2590_v14  ;;  %v1902_v44 = vmul.f32 %v2592_v55, %v5653_v21  ;;  %v1912_v52 = vand.u32 2147483648, %v5653_v21  ;;  %2420 = vst.msk [vmem:[%s6188_s2 + $0x70] sm:$0xff] %vm2405_vm6, %v2356_v11  ;;  %v5787_v11 = vpop.permute.xlu0 %2129 }
 0x2a3   :  { %2294 = vperm.xlu0 %2478, %v1900_v36   ;;  %v1917_v17 = vsub.f32 1.0, %v1916_v2  ;;  %v1938_v9 = vand.u32 2147483647, %v5698_v16  ;;  %v5746_v42 = vmax.f32 %v1077_v18, 1.0  ;;  %v5748_v7 = vmax.f32 %v1076_v3, 1.0  ;;  %vm5764_vm4 = vmor %vm1920_vm11, %vm1921_vm2 }
 0x2a4   :  { %v1903_v58 = vsub.f32 1.0, %v1902_v44  ;;  %vm1907_vm1 = vweird.f32 %v2592_v55  ;;  %v1940_v49 = vand.u32 2147483648, %v5698_v16  ;;  %v2367_v1 = vmul.f32 %v2155_v60, %v5156_v54  ;;  %v2170_v60 = vpop.permute.xlu2 %2169 }
 0x2a5   :  { %v1918_v59 = vmul.f32 %v2590_v14, %v1917_v17  ;;  %vm5752_vm3 = vcmp.eq.f32.partialorder %v1910_v38, 8.507059e+37  ;;  %2595 = vrcp.f32 %v5746_v42  ;;  %v5757_v45 = vmax.f32 %v1078_v51, 1.0  ;;  %vm5779_vm7 = vmor %vm1906_vm15, %vm1907_vm1 }
 0x2a6   :  { %v5759_v28 = vpop.eup %2593  ;;  %v1904_v56 = vmul.f32 %v2592_v55, %v1903_v58  ;;  %v1913_v54 = vor.u32 1.1754944e-38, %v1912_v52  ;;  %vm1934_vm5 = vweird.f32 %v5698_v16  ;;  %2597 = vrcp.f32 %v5748_v7  ;;  %2431 = vst.msk [vmem:[%s6188_s2 + $0xc8] sm:$0xff] %vm2405_vm6, %v2367_v1 }
 0x2a7   :  { %v1919_v23 = vadd.f32 %v2590_v14, %v1918_v59  ;;  %v1930_v46 = vmul.f32 %v5759_v28, %v5698_v16  ;;  %v1966_v47 = vand.u32 2147483647, %v5746_v42  ;;  %v1968_v29 = vand.u32 2147483648, %v5746_v42  ;;  %v6725_v59 = vld [vmem:[#allocation57_spill] sm:$0xff] }
 0x2a8   :  { %v1905_v8 = vadd.f32 %v2592_v55, %v1904_v56  ;;  %vm1935_vm8 = vweird.f32 %v5759_v28  ;;  %vm5790_vm9 = vcmp.eq.f32.partialorder %v1938_v9, 8.507059e+37  ;;  %v1941_v21 = vor.u32 1.1754944e-38, %v1940_v49 }
 0x2a9   :  { %v1923_v3 = vsel %vm5764_vm4, %v2590_v14, %v1919_v23  ;;  %v1931_v61 = vsub.f32 1.0, %v1930_v46  ;;  %v1954_v2 = vand.u32 2147483648, %v5748_v7  ;;  %2599 = vrcp.f32 %v5757_v45  ;;  %vm5821_vm0 = vmor %vm1934_vm5, %vm1935_vm8  ;;  %v5845_v37 = vpop.permute.xlu1 %2134 }
 0x2aa   :  { %v1928_v38 = vsel %vm5710_vm12, %v1927_v30, %v1923_v3  ;;  %v1909_v36 = vsel %vm5779_vm7, %v2592_v55, %v1905_v8  ;;  %vm1962_vm10 = vweird.f32 %v5746_v42  ;;  %vm1948_vm13 = vweird.f32 %v5748_v7  ;;  %v1080_v55 = vld [vmem:[%s6187_s1 + $0x1e8] sm:$0xff]  ;;  %v1079_v30 = vld [vmem:[%s6187_s1 + $0x1e0] sm:$0xff]  ;;  %v2145_v3 = vpop.permute.xlu0 %2144 }
 0x2ab   :  { %v2596_v44 = vpop.eup %2595  ;;  %2304 = vperm.xlu2 %2480, %v1928_v38   ;;  %v1914_v14 = vsel %vm5752_vm3, %v1913_v54, %v1909_v36  ;;  %v1932_v52 = vmul.f32 %v5759_v28, %v1931_v61  ;;  %vm5807_vm14 = vcmp.eq.f32.partialorder %v1966_v47, 8.507059e+37  ;;  %v1969_v15 = vor.u32 1.1754944e-38, %v1968_v29 }
 0x2ac   :  { %v2598_v17 = vpop.eup %2597  ;;  %2299 = vperm.xlu1 %2479, %v1914_v14   ;;  %v1958_v58 = vmul.f32 %v2596_v44, %v5746_v42  ;;  %v1952_v49 = vand.u32 2147483647, %v5748_v7  ;;  %v2357_v1 = vmul.f32 %v5683_v4, %v4959_v40  ;;  %v2359_v12 = vmul.f32 %v5688_v34, %v6725_v59  ;;  %v1081_v4 = vld [vmem:[%s6187_s1 + $0x1f0] sm:$0xf]  ;;  %v2185_v34 = vpop.permute.xlu2 %2184 }
 0x2ad   :  { %v1933_v53 = vadd.f32 %v5759_v28, %v1932_v52  ;;  %v1944_v56 = vmul.f32 %v2598_v17, %v5748_v7  ;;  %v1955_v54 = vor.u32 1.1754944e-38, %v1954_v2  ;;  %vm1976_vm11 = vweird.f32 %v5757_v45  ;;  %v6730_v52 = vld [vmem:[#allocation44_spill] sm:$0xff]  ;;  %v6732_v7 = vld [vmem:[#allocation2_spill] sm:$0xff] }
 0x2ae   :  { %v1959_v16 = vsub.f32 1.0, %v1958_v58  ;;  %vm1963_vm12 = vweird.f32 %v2596_v44  ;;  %2421 = vst.msk [vmem:[%s6188_s2 + $0x78] sm:$0xff] %vm2405_vm6, %v2357_v1  ;;  %v5838_v23 = vmax.f32 %v1080_v55, 1.0  ;;  %v5840_v40 = vmax.f32 %v1079_v30, 1.0  ;;  %v6731_v58 = vld [vmem:[#allocation31_spill] sm:$0xff] }
 0x2af   :  { %v2600_v46 = vpop.eup %2599  ;;  %v1937_v47 = vsel %vm5821_vm0, %v5759_v28, %v1933_v53  ;;  %v1945_v29 = vsub.f32 1.0, %v1944_v56  ;;  %vm1949_vm15 = vweird.f32 %v2598_v17  ;;  %2423 = vst.msk [vmem:[%s6188_s2 + $0x88] sm:$0xff] %vm2405_vm6, %v2359_v12  ;;  %v2370_v8 = vmul.f32 %v2170_v60, %v5490_v25  ;;  %vm5862_vm2 = vmor %vm1962_vm10, %vm1963_vm12 }
 0x2b0   :  { %v1942_v61 = vsel %vm5790_vm9, %v1941_v21, %v1937_v47  ;;  %v1960_v2 = vmul.f32 %v2596_v44, %v1959_v16  ;;  %v1972_v38 = vmul.f32 %v2600_v46, %v5757_v45  ;;  %v1980_v36 = vand.u32 2147483647, %v5757_v45  ;;  %vm5877_vm1 = vmor %vm1948_vm13, %vm1949_vm15 }
 0x2b1   :  { %2309 = vperm.xlu0 %2478, %v1942_v61   ;;  %v1946_v14 = vmul.f32 %v2598_v17, %v1945_v29  ;;  %v1982_v25 = vand.u32 2147483648, %v5757_v45  ;;  %2601 = vrcp.f32 %v5838_v23  ;;  %v5868_v60 = vmax.f32 %v1081_v4, 1.0  ;;  %2434 = vst.msk [vmem:[%s6188_s2 + $0xe0] sm:$0xff] %vm2405_vm6, %v2370_v8  ;;  %v2150_v51 = vpop.permute.xlu1 %2149 }
 0x2b2   :  { %v1961_v18 = vadd.f32 %v2596_v44, %v1960_v2  ;;  %v1973_v21 = vsub.f32 1.0, %v1972_v38  ;;  %vm1977_vm3 = vweird.f32 %v2600_v46  ;;  %2603 = vrcp.f32 %v5840_v40  ;;  %v2160_v47 = vpop.permute.xlu0 %2159 }
 0x2b3   :  { %v5884_v55 = vadd.f32 %v4431_v13, %v6730_v52  ;;  %v1947_v30 = vadd.f32 %v2598_v17, %v1946_v14  ;;  %vm1953_vm4 = vcmp.eq.f32.partialorder %v1952_v49, 8.507059e+37  ;;  %v2008_v9 = vand.u32 2147483647, %v5838_v23  ;;  %vm5899_vm5 = vmor %vm1976_vm11, %vm1977_vm3 }
 0x2b4   :  { %v987_v1 = vadd.f32 %v4508_v31, %v6731_v58  ;;  %v990_v59 = vadd.f32 %v4598_v10, %v6732_v7  ;;  %v1965_v12 = vsel %vm5862_vm2, %v2596_v44, %v1961_v18  ;;  %v1974_v53 = vmul.f32 %v2600_v46, %v1973_v21  ;;  %v6744_v44 = vld [vmem:[#allocation32_spill] sm:$0xff] }
 0x2b5   :  { %v1970_v56 = vsel %vm5807_vm14, %v1969_v15, %v1965_v12  ;;  %v1951_v13 = vsel %vm5877_vm1, %v2598_v17, %v1947_v30  ;;  %v1983_v31 = vor.u32 1.1754944e-38, %v1982_v25  ;;  %2605 = vrcp.f32 %v5868_v60  ;;  %v2200_v38 = vpop.permute.xlu2 %2199 }
 0x2b6   :  { %2319 = vperm.xlu2 %2480, %v1970_v56   ;;  %v1956_v10 = vsel %vm1953_vm4, %v1955_v54, %v1951_v13  ;;  %v1975_v16 = vadd.f32 %v2600_v46, %v1974_v53  ;;  %vm5904_vm7 = vcmp.eq.f32.partialorder %v1980_v36, 8.507059e+37  ;;  %vm2004_vm8 = vweird.f32 %v5838_v23  ;;  %v6743_v56 = vld [vmem:[#allocation5_spill] sm:$0xff] }
 0x2b7   :  { %v2602_v15 = vpop.eup %2601  ;;  %2314 = vperm.xlu1 %2479, %v1956_v10   ;;  %vm5909_vm9 = vcmp.eq.f32.partialorder %v2008_v9, 8.507059e+37  ;;  %v2010_v17 = vand.u32 2147483648, %v5838_v23  ;;  %v2360_v4 = vmul.f32 %v5774_v48, %v5010_v39  ;;  %v2362_v54 = vmul.f32 %v5787_v11, %v4757_v43 }
 0x2b8   :  { %v2604_v29 = vpop.eup %2603  ;;  %v1979_v8 = vsel %vm5899_vm5, %v2600_v46, %v1975_v16  ;;  %v2000_v61 = vmul.f32 %v2602_v15, %v5838_v23  ;;  %vm1990_vm10 = vweird.f32 %v5840_v40  ;;  %v2373_v2 = vmul.f32 %v2185_v34, %v987_v1 }
 0x2b9   :  { %v1984_v36 = vsel %vm5904_vm7, %v1983_v31, %v1979_v8  ;;  %v1986_v28 = vmul.f32 %v2604_v29, %v5840_v40  ;;  %v1994_v39 = vand.u32 2147483647, %v5840_v40  ;;  %v1996_v43 = vand.u32 2147483648, %v5840_v40  ;;  %2424 = vst.msk [vmem:[%s6188_s2 + $0x90] sm:$0xff] %vm2405_vm6, %v2360_v4  ;;  %v2165_v58 = vpop.permute.xlu1 %2164  ;;  %v6745_v4 = vld [vmem:[#allocation30_spill] sm:$0xff]  ;;  %v6747_v8 = vld [vmem:[#allocation8_spill] sm:$0xff] }
 0x2ba   :  { %2324 = vperm.xlu0 %2478, %v1984_v36   ;;  %v2001_v48 = vsub.f32 1.0, %v2000_v61  ;;  %vm2005_vm13 = vweird.f32 %v2602_v15  ;;  %2426 = vst.msk [vmem:[%s6188_s2 + $0xa0] sm:$0xff] %vm2405_vm6, %v2362_v54  ;;  %v2363_v11 = vmul.f32 %v5845_v37, %v5149_v6  ;;  %v2365_v34 = vmul.f32 %v2145_v3, %v4796_v57  ;;  %v2175_v7 = vpop.permute.xlu0 %2174  ;;  %v6746_v54 = vld [vmem:[#allocation58_spill] sm:$0xff]  ;;  %v6748_v36 = vld [vmem:[#allocation3_spill] sm:$0xff] }
 0x2bb   :  { %v2606_v46 = vpop.eup %2605  ;;  %v1987_v14 = vsub.f32 1.0, %v1986_v28  ;;  %vm1991_vm14 = vweird.f32 %v2604_v29  ;;  %2437 = vst.msk [vmem:[%s6188_s2 + $0xf8] sm:$0xff] %vm2405_vm6, %v2373_v2  ;;  %v2376_v25 = vmul.f32 %v2200_v38, %v990_v59  ;;  %v2366_v18 = vmul.f32 %v2150_v51, %v5160_v50  ;;  %vm5952_vm0 = vmor %vm2004_vm8, %vm2005_vm13 }
 0x2bc   :  { %v2002_v42 = vmul.f32 %v2602_v15, %v2001_v48  ;;  %v2011_v21 = vor.u32 1.1754944e-38, %v2010_v17  ;;  %v2014_v52 = vmul.f32 %v2606_v46, %v5868_v60  ;;  %2427 = vst.msk [vmem:[%s6188_s2 + $0xa8] sm:$0xff] %vm2405_vm6, %v2363_v11  ;;  %v2368_v57 = vmul.f32 %v2160_v47, %v4928_v22  ;;  %vm5965_vm12 = vmor %vm1990_vm10, %vm1991_vm14  ;;  %v6749_v48 = vld [vmem:[#allocation33_spill] sm:$0xff] }
 0x2bd   :  { %v1988_v37 = vmul.f32 %v2604_v29, %v1987_v14  ;;  %v1997_v50 = vor.u32 1.1754944e-38, %v1996_v43  ;;  %vm2018_vm11 = vweird.f32 %v5868_v60  ;;  %v2024_v3 = vand.u32 2147483648, %v5868_v60  ;;  %2429 = vst.msk [vmem:[%s6188_s2 + $0xb8] sm:$0xff] %vm2405_vm6, %v2365_v34 }
 0x2be   :  { %v2003_v30 = vadd.f32 %v2602_v15, %v2002_v42  ;;  %v2015_v23 = vsub.f32 1.0, %v2014_v52  ;;  %vm2019_vm15 = vweird.f32 %v2606_v46  ;;  %v2022_v9 = vand.u32 2147483647, %v5868_v60  ;;  %2440 = vst.msk [vmem:[%s6188_s2 + $0x110] sm:$0xff] %vm2405_vm6, %v2376_v25 }
 0x2bf   :  { %v1989_v1 = vadd.f32 %v2604_v29, %v1988_v37  ;;  %vm1995_vm2 = vcmp.eq.f32.partialorder %v1994_v39, 8.507059e+37  ;;  %2430 = vst.msk [vmem:[%s6188_s2 + $0xc0] sm:$0xff] %vm2405_vm6, %v2366_v18  ;;  %v2369_v40 = vmul.f32 %v2165_v58, %v5884_v55  ;;  %v2371_v53 = vmul.f32 %v2175_v7, %v4963_v62  ;;  %vm2020_vm1 = vmor %vm2018_vm11, %vm2019_vm15  ;;  %v6751_v18 = vld [vmem:[#allocation6_spill] sm:$0xff]  ;;  %v6757_v58 = vld [vmem:[#allocation59_spill] sm:$0xff] }
 0x2c0   :  { %v2007_v59 = vsel %vm5952_vm0, %v2602_v15, %v2003_v30  ;;  %v2016_v12 = vmul.f32 %v2606_v46, %v2015_v23  ;;  %2432 = vst.msk [vmem:[%s6188_s2 + $0xd0] sm:$0xff] %vm2405_vm6, %v2368_v57  ;;  %v993_v13 = vadd.f32 %v4667_v26, %v6743_v56  ;;  %v2025_v31 = vor.u32 1.1754944e-38, %v2024_v3  ;;  %v6754_v30 = vld [vmem:[#allocation9_spill] sm:$0xff] }
 0x2c1   :  { %v2012_v49 = vsel %vm5909_vm9, %v2011_v21, %v2007_v59  ;;  %v1993_v55 = vsel %vm5965_vm12, %v2604_v29, %v1989_v1  ;;  %2433 = vst.msk [vmem:[%s6188_s2 + $0xd8] sm:$0xff] %vm2405_vm6, %v2369_v40  ;;  %vm2023_vm3 = vcmp.eq.f32.partialorder %v2022_v9, 8.507059e+37  ;;  %v986_v51 = vadd.f32 %v4516_v19, %v6744_v44  ;;  %v6752_v21 = vld [vmem:[#allocation4_spill] sm:$0xff]  ;;  %v6756_v9 = vld [vmem:[#allocation7_spill] sm:$0xff]  ;;  %v6758_v59 = vld [vmem:[#allocation17_spill] sm:$0xff] }
 0x2c2   :  { %2334 = vperm.xlu2 %2480, %v2012_v49   ;;  %v1998_v62 = vsel %vm1995_vm2, %v1997_v50, %v1993_v55  ;;  %v2017_v10 = vadd.f32 %v2606_v46, %v2016_v12  ;;  %2435 = vst.msk [vmem:[%s6188_s2 + $0xe8] sm:$0xff] %vm2405_vm6, %v2371_v53  ;;  %v988_v47 = vadd.f32 %v6746_v54, %v6745_v4  ;;  %v6759_v12 = vld [vmem:[#allocation28_spill] sm:$0xff]  ;;  %v6761_v49 = vld [vmem:[#allocation26_spill] sm:$0xff]  ;;  %vm2468_vm4 = vcmask 27648  }
 0x2c3   :  { %v2215_v26 = vpop.permute.xlu2 %2214  ;;  %2329 = vperm.xlu1 %2479, %v1998_v62   ;;  %v2180_v45 = vpop.permute.xlu1 %2179  ;;  %v996_v19 = vadd.f32 %v4728_v0, %v6747_v8  ;;  %v989_v28 = vadd.f32 %v4606_v32, %v6748_v36  ;;  %v991_v0 = vadd.f32 %v4351_v5, %v6749_v48  ;;  %v6750_v32 = vld [vmem:[#allocation11_spill] sm:$0xff]  ;;  %v992_v5 = vadd.f32 %v4670_v63, %v6751_v18  ;;  %v6753_v63 = vld [vmem:[#allocation14_spill] sm:$0xff] }
 0x2c4   :  { %v2379_v16 = vmul.f32 %v2215_v26, %v993_v13  ;;  %v2021_v60 = vsel %vm2020_vm1, %v2606_v46, %v2017_v10  ;;  %v2372_v17 = vmul.f32 %v2180_v45, %v986_v51  ;;  %v999_v46 = vadd.f32 %v4814_v20, %v6750_v32  ;;  %v6760_v13 = vld [vmem:[#allocation12_spill] sm:$0xff]  ;;  %v6762_v26 = vld [vmem:[#allocation10_spill] sm:$0xff]  ;;  %v6771_v48 = vld [vmem:[#allocation35_spill] sm:$0xff] }
 0x2c5   :  { %v2026_v15 = vsel %vm2023_vm3, %v2025_v31, %v2021_v60  ;;  %v994_v52 = vadd.f32 %v4422_v24, %v6752_v21  ;;  %v1002_v37 = vadd.f32 %v4880_v35, %v6753_v63  ;;  %v6755_v24 = vld [vmem:[#allocation63_spill] sm:$0xff]  ;;  %v997_v1 = vadd.f32 %v6757_v58, %v6756_v9  ;;  %v6764_v51 = vld [vmem:[#allocation20_spill] sm:$0xff]  ;;  %v6772_v32 = vld [vmem:[#allocation18_spill] sm:$0xff] }
 0x2c6   :  { %2443 = vst.msk [vmem:[%s6188_s2 + $0x128] sm:$0xff] %vm2405_vm6, %v2379_v16  ;;  %2339 = vperm.xlu0 %2478, %v2026_v15   ;;  %v995_v22 = vadd.f32 %v6755_v24, %v6754_v30  ;;  %v1005_v53 = vadd.f32 %v6759_v12, %v6758_v59  ;;  %v998_v55 = vadd.f32 %v6761_v49, %v6760_v13  ;;  %v6763_v16 = vld [vmem:[#allocation60_spill] sm:$0xff]  ;;  %v6765_v15 = vld [vmem:[#allocation42_spill] sm:$0xff]  ;;  %v6782_v59 = vld [vmem:[#allocation23_spill] sm:$0xff] }
 0x2c7   :  { %2436 = vst.msk [vmem:[%s6188_s2 + $0xf0] sm:$0xff] %vm2405_vm6, %v2372_v17  ;;  %v1000_v60 = vadd.f32 %v6763_v16, %v6762_v26  ;;  %v1008_v45 = vadd.f32 %v6765_v15, %v6764_v51  ;;  %v6783_v12 = vld [vmem:[#allocation66_spill] sm:$0xff]  ;;  %v6786_v26 = vld [vmem:[#allocation24_spill] sm:$0xff]  ;;  %v6788_v15 = vld [vmem:[#allocation39_spill] sm:$0xff] }
 0x2c8   :  { %v1013_v16 = vadd.f32 %v5141_v33, %v6786_v26  ;;  %v6787_v51 = vld [vmem:[#allocation46_spill] sm:$0xff] }
 0x2cc   :  { %v2190_v29 = vpop.permute.xlu0 %2189  ;;  %v2230_v2 = vpop.permute.xlu2 %2229 }
 0x2cd   :  { %v2374_v61 = vmul.f32 %v2190_v29, %v988_v47  ;;  %v2382_v38 = vmul.f32 %v2230_v2, %v996_v19  ;;  %v6766_v47 = vld [vmem:[#allocation15_spill] sm:$0xff]  ;;  %v6767_v29 = vld [vmem:[#allocation64_spill] sm:$0xff]  ;;  %v6768_v2 = vld [vmem:[#allocation13_spill] sm:$0xff] }
 0x2ce   :  { %v1001_v8 = vadd.f32 %v6767_v29, %v6766_v47  ;;  %v6790_v47 = vld [vmem:[#allocation37_spill] sm:$0xff] }
 0x2cf   :  { %2438 = vst.msk [vmem:[%s6188_s2 + $0x100] sm:$0xff] %vm2405_vm6, %v2374_v61 }
 0x2d0   :  { %2446 = vst.msk [vmem:[%s6188_s2 + $0x140] sm:$0xff] %vm2405_vm6, %v2382_v38  ;;  %v6769_v38 = vld [vmem:[#allocation61_spill] sm:$0xff] }
 0x2d1   :  { %v2195_v39 = vpop.permute.xlu1 %2194  ;;  %v1003_v36 = vadd.f32 %v6769_v38, %v6768_v2 }
 0x2d2   :  { %v2375_v43 = vmul.f32 %v2195_v39, %v989_v28 }
 0x2d4   :  { %2439 = vst.msk [vmem:[%s6188_s2 + $0x108] sm:$0xff] %vm2405_vm6, %v2375_v43  ;;  %v2205_v11 = vpop.permute.xlu0 %2204  ;;  %v6770_v43 = vld [vmem:[#allocation22_spill] sm:$0xff] }
 0x2d5   :  { %v2377_v34 = vmul.f32 %v2205_v11, %v991_v0  ;;  %v1011_v0 = vadd.f32 %v6771_v48, %v6770_v43 }
 0x2d7   :  { %2441 = vst.msk [vmem:[%s6188_s2 + $0x118] sm:$0xff] %vm2405_vm6, %v2377_v34 }
 0x2d8   :  { %v2245_v14 = vpop.permute.xlu2 %2244 }
 0x2d9   :  { %v2385_v25 = vmul.f32 %v2245_v14, %v999_v46  ;;  %v6773_v46 = vld [vmem:[#allocation65_spill] sm:$0xff] }
 0x2da   :  { %v1004_v14 = vadd.f32 %v6773_v46, %v6772_v32 }
 0x2db   :  { %2449 = vst.msk [vmem:[%s6188_s2 + $0x158] sm:$0xff] %vm2405_vm6, %v2385_v25 }
 0x2dc   :  { %v2210_v42 = vpop.permute.xlu1 %2209 }
 0x2dd   :  { %v2378_v57 = vmul.f32 %v2210_v42, %v992_v5  ;;  %v6774_v5 = vld [vmem:[#allocation16_spill] sm:$0xff]  ;;  %v6775_v42 = vld [vmem:[#allocation62_spill] sm:$0xff] }
 0x2de   :  { %v2220_v6 = vpop.permute.xlu0 %2219  ;;  %v1006_v21 = vadd.f32 %v6775_v42, %v6774_v5 }
 0x2df   :  { %2442 = vst.msk [vmem:[%s6188_s2 + $0x120] sm:$0xff] %vm2405_vm6, %v2378_v57  ;;  %v2380_v20 = vmul.f32 %v2220_v6, %v994_v52  ;;  %v6776_v6 = vld [vmem:[#allocation49_spill] sm:$0xff] }
 0x2e1   :  { %2444 = vst.msk [vmem:[%s6188_s2 + $0x130] sm:$0xff] %vm2405_vm6, %v2380_v20  ;;  %v1014_v20 = vadd.f32 %v5133_v41, %v6776_v6 }
 0x2e3   :  { %v2260_v50 = vpop.permute.xlu2 %2259 }
 0x2e4   :  { %v2388_v3 = vmul.f32 %v2260_v50, %v1002_v37  ;;  %v6777_v50 = vld [vmem:[#allocation21_spill] sm:$0xff] }
 0x2e6   :  { %2452 = vst.msk [vmem:[%s6188_s2 + $0x170] sm:$0xff] %vm2405_vm6, %v2388_v3  ;;  %v2225_v23 = vpop.permute.xlu1 %2224  ;;  %v6778_v3 = vld [vmem:[#allocation34_spill] sm:$0xff] }
 0x2e7   :  { %v2381_v40 = vmul.f32 %v2225_v23, %v995_v22  ;;  %v1007_v30 = vadd.f32 %v6778_v3, %v6777_v50  ;;  %v6779_v22 = vld [vmem:[#allocation19_spill] sm:$0xff]  ;;  %v6780_v23 = vld [vmem:[#allocation36_spill] sm:$0xff] }
 0x2e8   :  { %v2235_v7 = vpop.permute.xlu0 %2234  ;;  %v1009_v9 = vadd.f32 %v6780_v23, %v6779_v22 }
 0x2e9   :  { %2445 = vst.msk [vmem:[%s6188_s2 + $0x138] sm:$0xff] %vm2405_vm6, %v2381_v40  ;;  %v2383_v35 = vmul.f32 %v2235_v7, %v997_v1  ;;  %v6781_v40 = vld [vmem:[#allocation51_spill] sm:$0xff] }
 0x2ea   :  { %v1017_v7 = vadd.f32 %v5202_v27, %v6781_v40 }
 0x2eb   :  { %2447 = vst.msk [vmem:[%s6188_s2 + $0x148] sm:$0xff] %vm2405_vm6, %v2383_v35 }
 0x2ef   :  { %v2275_v56 = vpop.permute.xlu2 %2274 }
 0x2f0   :  { %v2391_v31 = vmul.f32 %v2275_v56, %v1005_v53  ;;  %v1010_v53 = vadd.f32 %v6783_v12, %v6782_v59 }
 0x2f1   :  { %v2240_v62 = vpop.permute.xlu1 %2239 }
 0x2f2   :  { %2455 = vst.msk [vmem:[%s6188_s2 + $0x188] sm:$0xff] %vm2405_vm6, %v2391_v31  ;;  %v2384_v10 = vmul.f32 %v2240_v62, %v998_v55  ;;  %v6784_v55 = vld [vmem:[#allocation45_spill] sm:$0xff]  ;;  %v6785_v31 = vld [vmem:[#allocation27_spill] sm:$0xff] }
 0x2f3   :  { %v1012_v27 = vadd.f32 %v6785_v31, %v6784_v55 }
 0x2f4   :  { %2448 = vst.msk [vmem:[%s6188_s2 + $0x150] sm:$0xff] %vm2405_vm6, %v2384_v10 }
 0x2f6   :  { %v2250_v44 = vpop.permute.xlu0 %2249 }
 0x2f7   :  { %v2386_v17 = vmul.f32 %v2250_v44, %v1000_v60 }
 0x2f8   :  { %v2290_v4 = vpop.permute.xlu2 %2289 }
 0x2f9   :  { %v2394_v54 = vmul.f32 %v2290_v4, %v1008_v45  ;;  %2450 = vst.msk [vmem:[%s6188_s2 + $0x160] sm:$0xff] %vm2405_vm6, %v2386_v17  ;;  %v1015_v45 = vadd.f32 %v6788_v15, %v6787_v51 }
 0x2fb   :  { %2458 = vst.msk [vmem:[%s6188_s2 + $0x1a0] sm:$0xff] %vm2405_vm6, %v2394_v54  ;;  %v6789_v54 = vld [vmem:[#allocation52_spill] sm:$0xff] }
 0x2fc   :  { %v2255_v19 = vpop.permute.xlu1 %2254  ;;  %v1016_v33 = vadd.f32 %v6790_v47, %v6789_v54 }
 0x2fd   :  { %v2387_v61 = vmul.f32 %v2255_v19, %v1001_v8  ;;  %v6791_v19 = vld [vmem:[#allocation47_spill] sm:$0xff] }
 0x2ff   :  { %2451 = vst.msk [vmem:[%s6188_s2 + $0x168] sm:$0xff] %vm2405_vm6, %v2387_v61  ;;  %v2265_v28 = vpop.permute.xlu0 %2264  ;;  %v6792_v61 = vld [vmem:[#allocation29_spill] sm:$0xff] }
 0x300   :  { %v2389_v39 = vmul.f32 %v2265_v28, %v1003_v36  ;;  %v1018_v2 = vadd.f32 %v6792_v61, %v6791_v19 }
 0x302   :  { %2453 = vst.msk [vmem:[%s6188_s2 + $0x178] sm:$0xff] %vm2405_vm6, %v2389_v39 }
 0x305   :  { %v2305_v11 = vpop.permute.xlu2 %2304 }
 0x306   :  { %v2397_v34 = vmul.f32 %v2305_v11, %v1011_v0 }
 0x308   :  { %2461 = vst.msk [vmem:[%s6188_s2 + $0x1b8] sm:$0xff] %vm2405_vm6, %v2397_v34  ;;  %v2270_v25 = vpop.permute.xlu1 %2269 }
 0x309   :  { %v2390_v18 = vmul.f32 %v2270_v25, %v1004_v14 }
 0x30b   :  { %2454 = vst.msk [vmem:[%s6188_s2 + $0x180] sm:$0xff] %vm2405_vm6, %v2390_v18  ;;  %v2280_v52 = vpop.permute.xlu0 %2279 }
 0x30c   :  { %v2392_v57 = vmul.f32 %v2280_v52, %v1006_v21 }
 0x30e   :  { %2456 = vst.msk [vmem:[%s6188_s2 + $0x190] sm:$0xff] %vm2405_vm6, %v2392_v57 }
 0x310   :  { %v2320_v63 = vpop.permute.xlu2 %2319 }
 0x311   :  { %v2400_v37 = vmul.f32 %v2320_v63, %v1014_v20 }
 0x313   :  { %2464 = vst.msk [vmem:[%s6188_s2 + $0x1d0] sm:$0xff] %vm2405_vm6, %v2400_v37  ;;  %v2285_v24 = vpop.permute.xlu1 %2284 }
 0x314   :  { %v2393_v58 = vmul.f32 %v2285_v24, %v1007_v30 }
 0x315   :  { %v2295_v1 = vpop.permute.xlu0 %2294 }
 0x316   :  { %2457 = vst.msk [vmem:[%s6188_s2 + $0x198] sm:$0xff] %vm2405_vm6, %v2393_v58  ;;  %v2395_v41 = vmul.f32 %v2295_v1, %v1009_v9 }
 0x318   :  { %2459 = vst.msk [vmem:[%s6188_s2 + $0x1a8] sm:$0xff] %vm2405_vm6, %v2395_v41 }
 0x31c   :  { %v2335_v35 = vpop.permute.xlu2 %2334 }
 0x31d   :  { %v2403_v56 = vmul.f32 %v2335_v35, %v1017_v7 }
 0x31e   :  { %v2300_v13 = vpop.permute.xlu1 %2299 }
 0x31f   :  { %2467 = vst.msk [vmem:[%s6188_s2 + $0x1e8] sm:$0xff] %vm2405_vm6, %v2403_v56  ;;  %v2396_v49 = vmul.f32 %v2300_v13, %v1010_v53 }
 0x321   :  { %2460 = vst.msk [vmem:[%s6188_s2 + $0x1b0] sm:$0xff] %vm2405_vm6, %v2396_v49 }
 0x323   :  { %v2310_v62 = vpop.permute.xlu0 %2309 }
 0x324   :  { %v2398_v10 = vmul.f32 %v2310_v62, %v1012_v27 }
 0x326   :  { %2462 = vst.msk [vmem:[%s6188_s2 + $0x1c0] sm:$0xff] %vm2405_vm6, %v2398_v10 }
 0x329   :  { %v2315_v60 = vpop.permute.xlu1 %2314 }
 0x32a   :  { %v2399_v44 = vmul.f32 %v2315_v60, %v1013_v16 }
 0x32c   :  { %2463 = vst.msk [vmem:[%s6188_s2 + $0x1c8] sm:$0xff] %vm2405_vm6, %v2399_v44  ;;  %v2325_v17 = vpop.permute.xlu0 %2324 }
 0x32d   :  { %v2401_v4 = vmul.f32 %v2325_v17, %v1015_v45 }
 0x32f   :  { %2465 = vst.msk [vmem:[%s6188_s2 + $0x1d8] sm:$0xff] %vm2405_vm6, %v2401_v4 }
 0x335   :  { %v2330_v29 = vpop.permute.xlu1 %2329 }
 0x336   :  { %v2402_v8 = vmul.f32 %v2330_v29, %v1016_v33 }
 0x338   :  { %2466 = vst.msk [vmem:[%s6188_s2 + $0x1e0] sm:$0xff] %vm2405_vm6, %v2402_v8  ;;  %v2340_v38 = vpop.permute.xlu0 %2339 }
 0x339   :  { %v2404_v36 = vmul.f32 %v2340_v38, %v1018_v2 }
 0x33b   :  { %2469 = vst.msk [vmem:[%s6188_s2 + $0x1f0] sm:$0xf] %vm2468_vm4, %v2404_v36 }

</bundles_post_ra>
